<compile_context>
chip_gen: v5e
topology: v5e:2x2
jax: 0.10.0
libtpu: 0.0.40
codegen_flags: <defaults>
</compile_context>

<pallas_src>
import jax
import jax.numpy as jnp
from jax import lax
from jax.experimental import pallas as pl
from jax.experimental.pallas import tpu as pltpu

# ---------------- small model config (consistent with the module) ----------
BATCH = 2
IMG = 16
PATCH = 4
IN_CHANS = 3
EMBED = 64
DEPTH = 2
HEADS = 4
MLP_RATIO = 2.0
NUM_CLASSES = 10

HEAD_DIM = EMBED // HEADS
HIDDEN = int(EMBED * MLP_RATIO)   # 128
NP = (IMG // PATCH) ** 2          # patches per image
NTOK = NP + 1                     # + cls token
PD = IN_CHANS * PATCH * PATCH     # flattened patch dim (48)
SCALE = HEAD_DIM ** (-0.5)
LN_EPS = 1e-5                     # nn.LayerNorm default
LANE = 128                        # lane-padded slab / classifier width

_SQRT_2_OVER_PI = 0.7978845608028654


# ---------------- in-kernel math helpers ------------------------------------
def _gelu(x):
    # TODO(synk): tanh-approx GELU (~1e-3 max dev vs torch.nn.GELU exact erf);
    # keeps the transcendental on the EUP slot.
    return 0.5 * x * (1.0 + jnp.tanh(_SQRT_2_OVER_PI * (x + 0.044715 * x * x * x)))


def _layernorm(x, w, b):
    mu = jnp.mean(x, axis=-1, keepdims=True)
    xc = x - mu
    var = jnp.mean(xc * xc, axis=-1, keepdims=True)   # biased var, as PyTorch LN
    return xc * lax.rsqrt(var + LN_EPS) * w + b


# ---------------- fused forward kernel ---------------------------------------
def make_vit_kernel(nb):
    """Build the fused ViT kernel processing `nb` images per grid step."""

    def vit_kernel(patches_ref, wemb_ref, pos_ref, wqkv_ref, wproj_ref,
                   wmlp_ref, bias_ref, o_ref):
        bf = jnp.bfloat16
        f32 = jnp.float32

        # ---- unpack packed weight slabs (static value slices, tiny) ----
        wemb = wemb_ref[...]                           # (PD+EMBED, 128) bf16
        pw = wemb[0:PD, 0:EMBED]                       # patch-embed weight (48,64)
        head_w = wemb[PD:PD + EMBED, :]                # classifier weight (64,128)

        pos_all = pos_ref[...]                         # (NTOK+3, 128) f32
        pos_adj = pos_all[0:NTOK, 0:EMBED]             # cls/pos/proj_b folded (17,64)
        norm_w = pos_all[NTOK:NTOK + 1, 0:EMBED]
        norm_b = pos_all[NTOK + 1:NTOK + 2, 0:EMBED]
        head_b = pos_all[NTOK + 2:NTOK + 3, :]         # (1,128)

        # ---- per-image forward (unrolled; nb==1 on 2-TC chips) ----
        for b in range(nb):
            # patch embedding: padded-patch row 0 is zero, cls folded into pos_adj
            x = jnp.dot(patches_ref[b], pw,
                        preferred_element_type=f32) + pos_adj        # (NTOK, D) f32

            for d in range(DEPTH):
                bias = bias_ref[d]                                   # (7,128) f32
                ln1w, ln1b = bias[0:1, 0:EMBED], bias[1:2, 0:EMBED]
                b_proj = bias[2:3, 0:EMBED]
                ln2w, ln2b = bias[3:4, 0:EMBED], bias[4:5, 0:EMBED]
                b_fc2 = bias[5:6, 0:EMBED]
                b_fc1 = bias[6:7, 0:HIDDEN]

                # --- MSA branch ---
                h1 = _layernorm(x, ln1w, ln1b).astype(bf)            # (NTOK, D)
                # single lane-dense qkv matmul; SCALE pre-folded into q columns
                qkv = jnp.dot(h1, wqkv_ref[d],
                              preferred_element_type=f32)            # (NTOK, 3D)
                ctx_heads = []
                for h in range(HEADS):
                    q = qkv[:, h * HEAD_DIM:(h + 1) * HEAD_DIM].astype(bf)
                    k = qkv[:, EMBED + h * HEAD_DIM:
                               EMBED + (h + 1) * HEAD_DIM].astype(bf)
                    v = qkv[:, 2 * EMBED + h * HEAD_DIM:
                               2 * EMBED + (h + 1) * HEAD_DIM].astype(bf)
                    s = lax.dot_general(q, k, (((1,), (1,)), ((), ())),
                                        preferred_element_type=f32)  # (NTOK, NTOK)
                    s = jnp.exp(s - jnp.max(s, axis=-1, keepdims=True))
                    # TODO(synk): approx reciprocal (~1e-3 rel err vs exact divide)
                    s = s * pl.reciprocal(jnp.sum(s, axis=-1, keepdims=True),
                                          approx=True)
                    ctx_heads.append(jnp.dot(s.astype(bf), v,
                                             preferred_element_type=f32))
                ctx = jnp.concatenate(ctx_heads, axis=-1).astype(bf)  # (NTOK, D)
                x = x + jnp.dot(ctx, wproj_ref[d],
                                preferred_element_type=f32) + b_proj

                # --- MLP branch ---
                h2 = _layernorm(x, ln2w, ln2b).astype(bf)
                wmlp_d = wmlp_ref[d]                                  # (192,128) bf16
                w_fc1 = wmlp_d[0:EMBED, :]                            # (64,128)
                w_fc2 = wmlp_d[EMBED:EMBED + HIDDEN, 0:EMBED]         # (128,64)
                m = jnp.dot(h2, w_fc1, preferred_element_type=f32) + b_fc1
                m = _gelu(m).astype(bf)
                x = x + jnp.dot(m, w_fc2, preferred_element_type=f32) + b_fc2

            # --- final LN on cls token + lane-padded classifier head ---
            cls_tok = _layernorm(x[0:1, :], norm_w, norm_b).astype(bf)  # (1, D)
            logits = jnp.dot(cls_tok, head_w,
                             preferred_element_type=f32) + head_b       # (1, 128)
            o_ref[b] = logits.astype(o_ref.dtype)

    return vit_kernel


# ---------------- wrapper -----------------------------------------------------
def _const_spec(shape):
    zeros = (0,) * len(shape)
    return pl.BlockSpec(shape, lambda i, z=zeros: z)


def _images_per_step(batch):
    """1 image/step on 2-TensorCore chips (v7x) so the parallel grid feeds both
    cores; fold the whole batch into one step on single-TC v5e/v6e."""
    kind = ""
    try:
        kind = jax.devices()[0].device_kind.lower()
    except Exception:
        pass
    if "v7" in kind or "tpu7" in kind:
        return 1
    return batch


def _prepare_kernel_params(params):
    """Fold/pack PyTorch-layout params into a few lane-dense kernel slabs."""
    bf = jnp.bfloat16
    f32 = jnp.float32
    blocks = params["blocks"]
    stack = lambda key: jnp.stack([bp[key] for bp in blocks], axis=0)

    # patch-embed weight + classifier weight -> one bf16 slab (PD+EMBED, 128)
    pw_pad = jnp.pad(params["proj_w"], ((0, 0), (0, LANE - EMBED)))
    head_w = jnp.pad(params["head_w"], ((0, 0), (0, LANE - NUM_CLASSES)))
    wemb = jnp.concatenate([pw_pad, head_w], axis=0).astype(bf)

    # cls / pos / proj_b folded + final-LN + head bias -> f32 slab (NTOK+3, 128)
    pos, cls, pb = params["pos"], params["cls"], params["proj_b"]
    pos_adj = jnp.concatenate([pos[0:1] + cls, pos[1:] + pb], axis=0)   # (NTOK, D)
    pos_adj = jnp.pad(pos_adj, ((0, 0), (0, LANE - EMBED)))
    norm_w = jnp.pad(params["norm_w"], ((0, 0), (0, LANE - EMBED)))
    norm_b = jnp.pad(params["norm_b"], ((0, 0), (0, LANE - EMBED)))
    head_b = jnp.pad(params["head_b"], ((0, 0), (0, LANE - NUM_CLASSES)))
    pos_slab = jnp.concatenate([pos_adj, norm_w, norm_b, head_b], axis=0).astype(f32)

    # flat qkv weight, attention scale folded into the q columns
    def qkv_scaled(w):                    # (D, 3D), columns ordered (s, head, hd)
        return jnp.concatenate([w[:, :EMBED] * SCALE, w[:, EMBED:]], axis=1)
    wqkv = jnp.stack([qkv_scaled(bp["w_qkv"]) for bp in blocks], axis=0).astype(bf)
    wproj = stack("w_proj").astype(bf)                                  # (DEPTH, D, D)

    # MLP weights packed: [fc1 (64,128) ; fc2 padded (128,128)] -> (DEPTH,192,128)
    wfc2_pad = jnp.pad(stack("w_fc2"), ((0, 0), (0, 0), (0, HIDDEN - EMBED)))
    wmlp = jnp.concatenate([stack("w_fc1"), wfc2_pad], axis=1).astype(bf)

    # per-block small f32 vectors -> one (DEPTH, 7, 128) slab
    def pad_lane(v):
        return jnp.pad(v, ((0, 0), (0, 0), (0, LANE - v.shape[-1])))
    bias_slab = jnp.concatenate(
        [pad_lane(stack("ln1_w")), pad_lane(stack("ln1_b")), pad_lane(stack("b_proj")),
         pad_lane(stack("ln2_w")), pad_lane(stack("ln2_b")), pad_lane(stack("b_fc2")),
         pad_lane(stack("b_fc1"))], axis=1).astype(f32)

    return dict(wemb=wemb, pos=pos_slab, wqkv=wqkv, wproj=wproj,
                wmlp=wmlp, bias=bias_slab)


def vit_forward(x_img, params):
    B = x_img.shape[0]
    nb = _images_per_step(B)
    nsteps = B // nb
    hp = IMG // PATCH

    # NCHW -> (B, NP, C*ps*ps) with per-patch feature order (c, ph, pw): this
    # reproduces Conv2d(kernel=stride=patch) as a matmul against the reshaped
    # conv weight. A zero row is prepended per image for the cls-token slot
    # (cls embedding and proj bias are folded into pos_adj in the kernel).
    patches = x_img.reshape(B, IN_CHANS, hp, PATCH, hp, PATCH)
    patches = patches.transpose(0, 2, 4, 1, 3, 5).reshape(B, NP, PD)
    patches = jnp.pad(patches, ((0, 0), (1, 0), (0, 0))).astype(jnp.bfloat16)

    kp = _prepare_kernel_params(params)
    kernel = make_vit_kernel(nb)

    # advisory cost estimate for XLA scheduling around the fused call
    per_block_flops = (2 * NTOK * EMBED * 3 * EMBED
                       + 4 * HEADS * NTOK * NTOK * HEAD_DIM
                       + 2 * NTOK * EMBED * EMBED
                       + 4 * NTOK * EMBED * HIDDEN)
    flops = B * (2 * NTOK * PD * EMBED + DEPTH * per_block_flops + 2 * EMBED * LANE)
    transc = B * DEPTH * (HEADS * NTOK * NTOK + NTOK * HIDDEN)
    bytes_accessed = (B * NTOK * PD * 2 + B * LANE * 4
                      + 2 * ((PD + EMBED) * LANE
                             + DEPTH * (EMBED * 3 * EMBED + EMBED * EMBED
                                        + (EMBED + HIDDEN) * HIDDEN))
                      + 4 * ((NTOK + 3) * LANE + DEPTH * 7 * LANE))
    cost = pl.CostEstimate(flops=flops, transcendentals=transc,
                           bytes_accessed=bytes_accessed)

    out = pl.pallas_call(
        kernel,
        out_shape=jax.ShapeDtypeStruct((B, 1, LANE), jnp.float32),
        grid=(nsteps,),
        in_specs=[
            pl.BlockSpec((nb, NTOK, PD), lambda i: (i, 0, 0)),        # patches
            _const_spec((PD + EMBED, LANE)),                          # pw + head_w
            _const_spec((NTOK + 3, LANE)),                            # pos_adj/norm/head_b
            _const_spec((DEPTH, EMBED, 3 * EMBED)),                   # qkv weights
            _const_spec((DEPTH, EMBED, EMBED)),                       # proj weights
            _const_spec((DEPTH, EMBED + HIDDEN, HIDDEN)),             # fc1 + fc2
            _const_spec((DEPTH, 7, LANE)),                            # LN/bias slab
        ],
        out_specs=pl.BlockSpec((nb, 1, LANE), lambda i: (i, 0, 0)),
        compiler_params=pltpu.CompilerParams(dimension_semantics=("parallel",)),
        cost_estimate=cost,
    )(patches, kp["wemb"], kp["pos"], kp["wqkv"], kp["wproj"], kp["wmlp"], kp["bias"])
    return out[:, 0, :NUM_CLASSES]


# ---------------- deterministic parameter init ------------------------------
def init_params(key):
    def nrm(k, shape, std=0.02):
        return (std * jax.random.normal(k, shape)).astype(jnp.float32)

    keys = iter(jax.random.split(key, 6 + 6 * DEPTH))
    params = {
        "proj_w": nrm(next(keys), (PD, EMBED)),            # conv weight as matmul
        "proj_b": jnp.zeros((1, EMBED), jnp.float32),
        "cls": nrm(next(keys), (1, EMBED), std=1e-6),
        "pos": nrm(next(keys), (NTOK, EMBED)),
        "norm_w": jnp.ones((1, EMBED), jnp.float32),
        "norm_b": jnp.zeros((1, EMBED), jnp.float32),
        "head_w": nrm(next(keys), (EMBED, NUM_CLASSES)),
        "head_b": jnp.zeros((1, NUM_CLASSES), jnp.float32),
        "blocks": [],
    }
    for _ in range(DEPTH):
        params["blocks"].append({
            "ln1_w": jnp.ones((1, EMBED), jnp.float32),
            "ln1_b": jnp.zeros((1, EMBED), jnp.float32),
            "w_qkv": nrm(next(keys), (EMBED, 3 * EMBED)),  # qkv_bias=False
            "w_proj": nrm(next(keys), (EMBED, EMBED)),
            "b_proj": jnp.zeros((1, EMBED), jnp.float32),
            "ln2_w": jnp.ones((1, EMBED), jnp.float32),
            "ln2_b": jnp.zeros((1, EMBED), jnp.float32),
            "w_fc1": nrm(next(keys), (EMBED, HIDDEN)),
            "b_fc1": jnp.zeros((1, HIDDEN), jnp.float32),
            "w_fc2": nrm(next(keys), (HIDDEN, EMBED)),
            "b_fc2": jnp.zeros((1, EMBED), jnp.float32),
        })
    return params


if __name__ == "__main__":
    root = jax.random.PRNGKey(0)
    k_x, k_p = jax.random.split(root)
    x = jax.random.normal(k_x, (BATCH, IN_CHANS, IMG, IMG), dtype=jnp.float32)
    params = init_params(k_p)

    logits = jax.jit(vit_forward)(x, params)
    logits = jax.block_until_ready(logits)
    assert logits.shape == (BATCH, NUM_CLASSES)
    assert bool(jnp.all(jnp.isfinite(logits)))
    print("KERNEL_OK")
</pallas_src>

<mosaic_0001>
module attributes {stable_mosaic.version = 11 : i64} {
  func.func @vit_kernel(%arg0: i32, %arg1: memref<2x17x48xbf16, #tpu.memory_space<vmem>>, %arg2: memref<112x128xbf16, #tpu.memory_space<vmem>>, %arg3: memref<20x128xf32, #tpu.memory_space<vmem>>, %arg4: memref<2x64x192xbf16, #tpu.memory_space<vmem>>, %arg5: memref<2x64x64xbf16, #tpu.memory_space<vmem>>, %arg6: memref<2x192x128xbf16, #tpu.memory_space<vmem>>, %arg7: memref<2x7x128xf32, #tpu.memory_space<vmem>>, %arg8: memref<2x1x128xf32, #tpu.memory_space<vmem>>) attributes {dimension_semantics = [#tpu.dimension_semantics<parallel>], iteration_bounds = array<i64: 1>, scalar_prefetch = 0 : i64, scratch_operands = 0 : i64, tpu.core_type = #tpu.core_type<tc>, window_params = [{transform_indices = @transform_0, window_bounds = array<i64: 2, 17, 48>}, {pipeline_mode = #tpu.pipeline_mode<synchronous>, transform_indices = @transform_1, window_bounds = array<i64: 112, 128>}, {pipeline_mode = #tpu.pipeline_mode<synchronous>, transform_indices = @transform_2, window_bounds = array<i64: 20, 128>}, {pipeline_mode = #tpu.pipeline_mode<synchronous>, transform_indices = @transform_3, window_bounds = array<i64: 2, 64, 192>}, {pipeline_mode = #tpu.pipeline_mode<synchronous>, transform_indices = @transform_4, window_bounds = array<i64: 2, 64, 64>}, {pipeline_mode = #tpu.pipeline_mode<synchronous>, transform_indices = @transform_5, window_bounds = array<i64: 2, 192, 128>}, {pipeline_mode = #tpu.pipeline_mode<synchronous>, transform_indices = @transform_6, window_bounds = array<i64: 2, 7, 128>}, {transform_indices = @transform_7, window_bounds = array<i64: 2, 1, 128>}]} {
    %c0 = arith.constant 0 : index
    %c0_0 = arith.constant 0 : index
    %0 = vector.load %arg2[%c0, %c0_0] : memref<112x128xbf16, #tpu.memory_space<vmem>>, vector<112x128xbf16>
    %1 = vector.extract_strided_slice %0 {offsets = [0, 0], sizes = [48, 64], strides = [1, 1]} : vector<112x128xbf16> to vector<48x64xbf16>
    %2 = vector.extract_strided_slice %0 {offsets = [48, 0], sizes = [64, 128], strides = [1, 1]} : vector<112x128xbf16> to vector<64x128xbf16>
    %c0_1 = arith.constant 0 : index
    %c0_2 = arith.constant 0 : index
    %3 = vector.load %arg3[%c0_1, %c0_2] : memref<20x128xf32, #tpu.memory_space<vmem>>, vector<20x128xf32>
    %4 = vector.extract_strided_slice %3 {offsets = [0, 0], sizes = [17, 64], strides = [1, 1]} : vector<20x128xf32> to vector<17x64xf32>
    %5 = vector.extract_strided_slice %3 {offsets = [17, 0], sizes = [1, 64], strides = [1, 1]} : vector<20x128xf32> to vector<1x64xf32>
    %6 = vector.extract_strided_slice %3 {offsets = [18, 0], sizes = [1, 64], strides = [1, 1]} : vector<20x128xf32> to vector<1x64xf32>
    %7 = vector.extract_strided_slice %3 {offsets = [19, 0], sizes = [1, 128], strides = [1, 1]} : vector<20x128xf32> to vector<1x128xf32>
    %c0_3 = arith.constant 0 : index
    %c0_4 = arith.constant 0 : index
    %c0_5 = arith.constant 0 : index
    %8 = vector.load %arg1[%c0_3, %c0_4, %c0_5] : memref<2x17x48xbf16, #tpu.memory_space<vmem>>, vector<1x17x48xbf16>
    %9 = vector.shape_cast %8 : vector<1x17x48xbf16> to vector<17x48xbf16>
    %cst = arith.constant dense<0.000000e+00> : vector<17x64xf32>
    %10 = tpu.matmul %9, %1, %cst {dimension_numbers = #tpu.dot_dimension_numbers<[1], [0], [0], [1], [0, 0, 1, 1], [], []>} : vector<17x48xbf16>, vector<48x64xbf16>, vector<17x64xf32> -> vector<17x64xf32>
    %11 = arith.addf %10, %4 : vector<17x64xf32>
    %c0_6 = arith.constant 0 : index
    %c0_7 = arith.constant 0 : index
    %c0_8 = arith.constant 0 : index
    %12 = vector.load %arg7[%c0_6, %c0_7, %c0_8] : memref<2x7x128xf32, #tpu.memory_space<vmem>>, vector<1x7x128xf32>
    %13 = vector.shape_cast %12 : vector<1x7x128xf32> to vector<7x128xf32>
    %14 = vector.extract_strided_slice %13 {offsets = [0, 0], sizes = [1, 64], strides = [1, 1]} : vector<7x128xf32> to vector<1x64xf32>
    %15 = vector.extract_strided_slice %13 {offsets = [1, 0], sizes = [1, 64], strides = [1, 1]} : vector<7x128xf32> to vector<1x64xf32>
    %16 = vector.extract_strided_slice %13 {offsets = [2, 0], sizes = [1, 64], strides = [1, 1]} : vector<7x128xf32> to vector<1x64xf32>
    %17 = vector.extract_strided_slice %13 {offsets = [3, 0], sizes = [1, 64], strides = [1, 1]} : vector<7x128xf32> to vector<1x64xf32>
    %18 = vector.extract_strided_slice %13 {offsets = [4, 0], sizes = [1, 64], strides = [1, 1]} : vector<7x128xf32> to vector<1x64xf32>
    %19 = vector.extract_strided_slice %13 {offsets = [5, 0], sizes = [1, 64], strides = [1, 1]} : vector<7x128xf32> to vector<1x64xf32>
    %20 = vector.extract_strided_slice %13 {offsets = [6, 0], sizes = [1, 128], strides = [1, 1]} : vector<7x128xf32> to vector<1x128xf32>
    %cst_9 = arith.constant dense<0.000000e+00> : vector<17xf32>
    %21 = vector.multi_reduction <add>, %11, %cst_9 [1] : vector<17x64xf32> to vector<17xf32>
    %22 = vector.shape_cast %21 : vector<17xf32> to vector<17x1xf32>
    %cst_10 = arith.constant 6.400000e+01 : f32
    %23 = vector.broadcast %cst_10 : f32 to vector<17x1xf32>
    %24 = arith.divf %22, %23 : vector<17x1xf32>
    %25 = vector.broadcast %24 : vector<17x1xf32> to vector<17x64xf32>
    %26 = arith.subf %11, %25 : vector<17x64xf32>
    %27 = arith.mulf %26, %26 : vector<17x64xf32>
    %cst_11 = arith.constant dense<0.000000e+00> : vector<17xf32>
    %28 = vector.multi_reduction <add>, %27, %cst_11 [1] : vector<17x64xf32> to vector<17xf32>
    %29 = vector.shape_cast %28 : vector<17xf32> to vector<17x1xf32>
    %cst_12 = arith.constant 6.400000e+01 : f32
    %30 = vector.broadcast %cst_12 : f32 to vector<17x1xf32>
    %31 = arith.divf %29, %30 : vector<17x1xf32>
    %cst_13 = arith.constant 9.99999974E-6 : f32
    %32 = vector.broadcast %cst_13 : f32 to vector<17x1xf32>
    %33 = arith.addf %31, %32 : vector<17x1xf32>
    %34 = math.rsqrt %33 : vector<17x1xf32>
    %35 = vector.broadcast %34 : vector<17x1xf32> to vector<17x64xf32>
    %36 = arith.mulf %26, %35 : vector<17x64xf32>
    %37 = vector.broadcast %14 : vector<1x64xf32> to vector<17x64xf32>
    %38 = arith.mulf %36, %37 : vector<17x64xf32>
    %39 = vector.broadcast %15 : vector<1x64xf32> to vector<17x64xf32>
    %40 = arith.addf %38, %39 : vector<17x64xf32>
    %41 = arith.truncf %40 : vector<17x64xf32> to vector<17x64xbf16>
    %c0_14 = arith.constant 0 : index
    %c0_15 = arith.constant 0 : index
    %c0_16 = arith.constant 0 : index
    %42 = vector.load %arg4[%c0_14, %c0_15, %c0_16] : memref<2x64x192xbf16, #tpu.memory_space<vmem>>, vector<1x64x192xbf16>
    %43 = vector.shape_cast %42 : vector<1x64x192xbf16> to vector<64x192xbf16>
    %cst_17 = arith.constant dense<0.000000e+00> : vector<17x192xf32>
    %44 = tpu.matmul %41, %43, %cst_17 {dimension_numbers = #tpu.dot_dimension_numbers<[1], [0], [0], [1], [0, 0, 1, 1], [], []>} : vector<17x64xbf16>, vector<64x192xbf16>, vector<17x192xf32> -> vector<17x192xf32>
    %45 = vector.extract_strided_slice %44 {offsets = [0, 0], sizes = [17, 16], strides = [1, 1]} : vector<17x192xf32> to vector<17x16xf32>
    %46 = arith.truncf %45 : vector<17x16xf32> to vector<17x16xbf16>
    %47 = vector.extract_strided_slice %44 {offsets = [0, 64], sizes = [17, 16], strides = [1, 1]} : vector<17x192xf32> to vector<17x16xf32>
    %48 = arith.truncf %47 : vector<17x16xf32> to vector<17x16xbf16>
    %49 = vector.extract_strided_slice %44 {offsets = [0, 128], sizes = [17, 16], strides = [1, 1]} : vector<17x192xf32> to vector<17x16xf32>
    %50 = arith.truncf %49 : vector<17x16xf32> to vector<17x16xbf16>
    %cst_18 = arith.constant dense<0.000000e+00> : vector<17x17xf32>
    %51 = tpu.matmul %46, %48, %cst_18 {dimension_numbers = #tpu.dot_dimension_numbers<[1], [1], [0], [0], [0, 0, 1, 0], [], []>} : vector<17x16xbf16>, vector<17x16xbf16>, vector<17x17xf32> -> vector<17x17xf32>
    %cst_19 = arith.constant dense<0xFF800000> : vector<17xf32>
    %52 = vector.multi_reduction <maximumf>, %51, %cst_19 [1] : vector<17x17xf32> to vector<17xf32>
    %53 = vector.shape_cast %52 : vector<17xf32> to vector<17x1xf32>
    %54 = vector.broadcast %53 : vector<17x1xf32> to vector<17x17xf32>
    %55 = arith.subf %51, %54 : vector<17x17xf32>
    %56 = math.exp %55 : vector<17x17xf32>
    %cst_20 = arith.constant dense<0.000000e+00> : vector<17xf32>
    %57 = vector.multi_reduction <add>, %56, %cst_20 [1] : vector<17x17xf32> to vector<17xf32>
    %58 = vector.shape_cast %57 : vector<17xf32> to vector<17x1xf32>
    %59 = tpu.reciprocal %58 {approx = true} : vector<17x1xf32> -> vector<17x1xf32>
    %60 = vector.broadcast %59 : vector<17x1xf32> to vector<17x17xf32>
    %61 = arith.mulf %56, %60 : vector<17x17xf32>
    %62 = arith.truncf %61 : vector<17x17xf32> to vector<17x17xbf16>
    %cst_21 = arith.constant dense<0.000000e+00> : vector<17x16xf32>
    %63 = tpu.matmul %62, %50, %cst_21 {dimension_numbers = #tpu.dot_dimension_numbers<[1], [0], [0], [1], [0, 0, 1, 1], [], []>} : vector<17x17xbf16>, vector<17x16xbf16>, vector<17x16xf32> -> vector<17x16xf32>
    %64 = vector.extract_strided_slice %44 {offsets = [0, 16], sizes = [17, 16], strides = [1, 1]} : vector<17x192xf32> to vector<17x16xf32>
    %65 = arith.truncf %64 : vector<17x16xf32> to vector<17x16xbf16>
    %66 = vector.extract_strided_slice %44 {offsets = [0, 80], sizes = [17, 16], strides = [1, 1]} : vector<17x192xf32> to vector<17x16xf32>
    %67 = arith.truncf %66 : vector<17x16xf32> to vector<17x16xbf16>
    %68 = vector.extract_strided_slice %44 {offsets = [0, 144], sizes = [17, 16], strides = [1, 1]} : vector<17x192xf32> to vector<17x16xf32>
    %69 = arith.truncf %68 : vector<17x16xf32> to vector<17x16xbf16>
    %cst_22 = arith.constant dense<0.000000e+00> : vector<17x17xf32>
    %70 = tpu.matmul %65, %67, %cst_22 {dimension_numbers = #tpu.dot_dimension_numbers<[1], [1], [0], [0], [0, 0, 1, 0], [], []>} : vector<17x16xbf16>, vector<17x16xbf16>, vector<17x17xf32> -> vector<17x17xf32>
    %cst_23 = arith.constant dense<0xFF800000> : vector<17xf32>
    %71 = vector.multi_reduction <maximumf>, %70, %cst_23 [1] : vector<17x17xf32> to vector<17xf32>
    %72 = vector.shape_cast %71 : vector<17xf32> to vector<17x1xf32>
    %73 = vector.broadcast %72 : vector<17x1xf32> to vector<17x17xf32>
    %74 = arith.subf %70, %73 : vector<17x17xf32>
    %75 = math.exp %74 : vector<17x17xf32>
    %cst_24 = arith.constant dense<0.000000e+00> : vector<17xf32>
    %76 = vector.multi_reduction <add>, %75, %cst_24 [1] : vector<17x17xf32> to vector<17xf32>
    %77 = vector.shape_cast %76 : vector<17xf32> to vector<17x1xf32>
    %78 = tpu.reciprocal %77 {approx = true} : vector<17x1xf32> -> vector<17x1xf32>
    %79 = vector.broadcast %78 : vector<17x1xf32> to vector<17x17xf32>
    %80 = arith.mulf %75, %79 : vector<17x17xf32>
    %81 = arith.truncf %80 : vector<17x17xf32> to vector<17x17xbf16>
    %cst_25 = arith.constant dense<0.000000e+00> : vector<17x16xf32>
    %82 = tpu.matmul %81, %69, %cst_25 {dimension_numbers = #tpu.dot_dimension_numbers<[1], [0], [0], [1], [0, 0, 1, 1], [], []>} : vector<17x17xbf16>, vector<17x16xbf16>, vector<17x16xf32> -> vector<17x16xf32>
    %83 = vector.extract_strided_slice %44 {offsets = [0, 32], sizes = [17, 16], strides = [1, 1]} : vector<17x192xf32> to vector<17x16xf32>
    %84 = arith.truncf %83 : vector<17x16xf32> to vector<17x16xbf16>
    %85 = vector.extract_strided_slice %44 {offsets = [0, 96], sizes = [17, 16], strides = [1, 1]} : vector<17x192xf32> to vector<17x16xf32>
    %86 = arith.truncf %85 : vector<17x16xf32> to vector<17x16xbf16>
    %87 = vector.extract_strided_slice %44 {offsets = [0, 160], sizes = [17, 16], strides = [1, 1]} : vector<17x192xf32> to vector<17x16xf32>
    %88 = arith.truncf %87 : vector<17x16xf32> to vector<17x16xbf16>
    %cst_26 = arith.constant dense<0.000000e+00> : vector<17x17xf32>
    %89 = tpu.matmul %84, %86, %cst_26 {dimension_numbers = #tpu.dot_dimension_numbers<[1], [1], [0], [0], [0, 0, 1, 0], [], []>} : vector<17x16xbf16>, vector<17x16xbf16>, vector<17x17xf32> -> vector<17x17xf32>
    %cst_27 = arith.constant dense<0xFF800000> : vector<17xf32>
    %90 = vector.multi_reduction <maximumf>, %89, %cst_27 [1] : vector<17x17xf32> to vector<17xf32>
    %91 = vector.shape_cast %90 : vector<17xf32> to vector<17x1xf32>
    %92 = vector.broadcast %91 : vector<17x1xf32> to vector<17x17xf32>
    %93 = arith.subf %89, %92 : vector<17x17xf32>
    %94 = math.exp %93 : vector<17x17xf32>
    %cst_28 = arith.constant dense<0.000000e+00> : vector<17xf32>
    %95 = vector.multi_reduction <add>, %94, %cst_28 [1] : vector<17x17xf32> to vector<17xf32>
    %96 = vector.shape_cast %95 : vector<17xf32> to vector<17x1xf32>
    %97 = tpu.reciprocal %96 {approx = true} : vector<17x1xf32> -> vector<17x1xf32>
    %98 = vector.broadcast %97 : vector<17x1xf32> to vector<17x17xf32>
    %99 = arith.mulf %94, %98 : vector<17x17xf32>
    %100 = arith.truncf %99 : vector<17x17xf32> to vector<17x17xbf16>
    %cst_29 = arith.constant dense<0.000000e+00> : vector<17x16xf32>
    %101 = tpu.matmul %100, %88, %cst_29 {dimension_numbers = #tpu.dot_dimension_numbers<[1], [0], [0], [1], [0, 0, 1, 1], [], []>} : vector<17x17xbf16>, vector<17x16xbf16>, vector<17x16xf32> -> vector<17x16xf32>
    %102 = vector.extract_strided_slice %44 {offsets = [0, 48], sizes = [17, 16], strides = [1, 1]} : vector<17x192xf32> to vector<17x16xf32>
    %103 = arith.truncf %102 : vector<17x16xf32> to vector<17x16xbf16>
    %104 = vector.extract_strided_slice %44 {offsets = [0, 112], sizes = [17, 16], strides = [1, 1]} : vector<17x192xf32> to vector<17x16xf32>
    %105 = arith.truncf %104 : vector<17x16xf32> to vector<17x16xbf16>
    %106 = vector.extract_strided_slice %44 {offsets = [0, 176], sizes = [17, 16], strides = [1, 1]} : vector<17x192xf32> to vector<17x16xf32>
    %107 = arith.truncf %106 : vector<17x16xf32> to vector<17x16xbf16>
    %cst_30 = arith.constant dense<0.000000e+00> : vector<17x17xf32>
    %108 = tpu.matmul %103, %105, %cst_30 {dimension_numbers = #tpu.dot_dimension_numbers<[1], [1], [0], [0], [0, 0, 1, 0], [], []>} : vector<17x16xbf16>, vector<17x16xbf16>, vector<17x17xf32> -> vector<17x17xf32>
    %cst_31 = arith.constant dense<0xFF800000> : vector<17xf32>
    %109 = vector.multi_reduction <maximumf>, %108, %cst_31 [1] : vector<17x17xf32> to vector<17xf32>
    %110 = vector.shape_cast %109 : vector<17xf32> to vector<17x1xf32>
    %111 = vector.broadcast %110 : vector<17x1xf32> to vector<17x17xf32>
    %112 = arith.subf %108, %111 : vector<17x17xf32>
    %113 = math.exp %112 : vector<17x17xf32>
    %cst_32 = arith.constant dense<0.000000e+00> : vector<17xf32>
    %114 = vector.multi_reduction <add>, %113, %cst_32 [1] : vector<17x17xf32> to vector<17xf32>
    %115 = vector.shape_cast %114 : vector<17xf32> to vector<17x1xf32>
    %116 = tpu.reciprocal %115 {approx = true} : vector<17x1xf32> -> vector<17x1xf32>
    %117 = vector.broadcast %116 : vector<17x1xf32> to vector<17x17xf32>
    %118 = arith.mulf %113, %117 : vector<17x17xf32>
    %119 = arith.truncf %118 : vector<17x17xf32> to vector<17x17xbf16>
    %cst_33 = arith.constant dense<0.000000e+00> : vector<17x16xf32>
    %120 = tpu.matmul %119, %107, %cst_33 {dimension_numbers = #tpu.dot_dimension_numbers<[1], [0], [0], [1], [0, 0, 1, 1], [], []>} : vector<17x17xbf16>, vector<17x16xbf16>, vector<17x16xf32> -> vector<17x16xf32>
    %121 = tpu.concatenate %63, %82, %101, %120 in 1 : vector<17x16xf32>, vector<17x16xf32>, vector<17x16xf32>, vector<17x16xf32> -> vector<17x64xf32>
    %122 = arith.truncf %121 : vector<17x64xf32> to vector<17x64xbf16>
    %c0_34 = arith.constant 0 : index
    %c0_35 = arith.constant 0 : index
    %c0_36 = arith.constant 0 : index
    %123 = vector.load %arg5[%c0_34, %c0_35, %c0_36] : memref<2x64x64xbf16, #tpu.memory_space<vmem>>, vector<1x64x64xbf16>
    %124 = vector.shape_cast %123 : vector<1x64x64xbf16> to vector<64x64xbf16>
    %cst_37 = arith.constant dense<0.000000e+00> : vector<17x64xf32>
    %125 = tpu.matmul %122, %124, %cst_37 {dimension_numbers = #tpu.dot_dimension_numbers<[1], [0], [0], [1], [0, 0, 1, 1], [], []>} : vector<17x64xbf16>, vector<64x64xbf16>, vector<17x64xf32> -> vector<17x64xf32>
    %126 = arith.addf %11, %125 : vector<17x64xf32>
    %127 = vector.broadcast %16 : vector<1x64xf32> to vector<17x64xf32>
    %128 = arith.addf %126, %127 : vector<17x64xf32>
    %cst_38 = arith.constant dense<0.000000e+00> : vector<17xf32>
    %129 = vector.multi_reduction <add>, %128, %cst_38 [1] : vector<17x64xf32> to vector<17xf32>
    %130 = vector.shape_cast %129 : vector<17xf32> to vector<17x1xf32>
    %cst_39 = arith.constant 6.400000e+01 : f32
    %131 = vector.broadcast %cst_39 : f32 to vector<17x1xf32>
    %132 = arith.divf %130, %131 : vector<17x1xf32>
    %133 = vector.broadcast %132 : vector<17x1xf32> to vector<17x64xf32>
    %134 = arith.subf %128, %133 : vector<17x64xf32>
    %135 = arith.mulf %134, %134 : vector<17x64xf32>
    %cst_40 = arith.constant dense<0.000000e+00> : vector<17xf32>
    %136 = vector.multi_reduction <add>, %135, %cst_40 [1] : vector<17x64xf32> to vector<17xf32>
    %137 = vector.shape_cast %136 : vector<17xf32> to vector<17x1xf32>
    %cst_41 = arith.constant 6.400000e+01 : f32
    %138 = vector.broadcast %cst_41 : f32 to vector<17x1xf32>
    %139 = arith.divf %137, %138 : vector<17x1xf32>
    %cst_42 = arith.constant 9.99999974E-6 : f32
    %140 = vector.broadcast %cst_42 : f32 to vector<17x1xf32>
    %141 = arith.addf %139, %140 : vector<17x1xf32>
    %142 = math.rsqrt %141 : vector<17x1xf32>
    %143 = vector.broadcast %142 : vector<17x1xf32> to vector<17x64xf32>
    %144 = arith.mulf %134, %143 : vector<17x64xf32>
    %145 = vector.broadcast %17 : vector<1x64xf32> to vector<17x64xf32>
    %146 = arith.mulf %144, %145 : vector<17x64xf32>
    %147 = vector.broadcast %18 : vector<1x64xf32> to vector<17x64xf32>
    %148 = arith.addf %146, %147 : vector<17x64xf32>
    %149 = arith.truncf %148 : vector<17x64xf32> to vector<17x64xbf16>
    %c0_43 = arith.constant 0 : index
    %c0_44 = arith.constant 0 : index
    %c0_45 = arith.constant 0 : index
    %150 = vector.load %arg6[%c0_43, %c0_44, %c0_45] : memref<2x192x128xbf16, #tpu.memory_space<vmem>>, vector<1x192x128xbf16>
    %151 = vector.shape_cast %150 : vector<1x192x128xbf16> to vector<192x128xbf16>
    %152 = vector.extract_strided_slice %151 {offsets = [0, 0], sizes = [64, 128], strides = [1, 1]} : vector<192x128xbf16> to vector<64x128xbf16>
    %153 = vector.extract_strided_slice %151 {offsets = [64, 0], sizes = [128, 64], strides = [1, 1]} : vector<192x128xbf16> to vector<128x64xbf16>
    %cst_46 = arith.constant dense<0.000000e+00> : vector<17x128xf32>
    %154 = tpu.matmul %149, %152, %cst_46 {dimension_numbers = #tpu.dot_dimension_numbers<[1], [0], [0], [1], [0, 0, 1, 1], [], []>} : vector<17x64xbf16>, vector<64x128xbf16>, vector<17x128xf32> -> vector<17x128xf32>
    %155 = vector.broadcast %20 : vector<1x128xf32> to vector<17x128xf32>
    %156 = arith.addf %154, %155 : vector<17x128xf32>
    %cst_47 = arith.constant 5.000000e-01 : f32
    %157 = vector.broadcast %cst_47 : f32 to vector<17x128xf32>
    %158 = arith.mulf %157, %156 : vector<17x128xf32>
    %cst_48 = arith.constant 4.471500e-02 : f32
    %159 = vector.broadcast %cst_48 : f32 to vector<17x128xf32>
    %160 = arith.mulf %159, %156 : vector<17x128xf32>
    %161 = arith.mulf %160, %156 : vector<17x128xf32>
    %162 = arith.mulf %161, %156 : vector<17x128xf32>
    %163 = arith.addf %156, %162 : vector<17x128xf32>
    %cst_49 = arith.constant 0.797884583 : f32
    %164 = vector.broadcast %cst_49 : f32 to vector<17x128xf32>
    %165 = arith.mulf %164, %163 : vector<17x128xf32>
    %166 = math.tanh %165 : vector<17x128xf32>
    %cst_50 = arith.constant 1.000000e+00 : f32
    %167 = vector.broadcast %cst_50 : f32 to vector<17x128xf32>
    %168 = arith.addf %167, %166 : vector<17x128xf32>
    %169 = arith.mulf %158, %168 : vector<17x128xf32>
    %170 = arith.truncf %169 : vector<17x128xf32> to vector<17x128xbf16>
    %cst_51 = arith.constant dense<0.000000e+00> : vector<17x64xf32>
    %171 = tpu.matmul %170, %153, %cst_51 {dimension_numbers = #tpu.dot_dimension_numbers<[1], [0], [0], [1], [0, 0, 1, 1], [], []>} : vector<17x128xbf16>, vector<128x64xbf16>, vector<17x64xf32> -> vector<17x64xf32>
    %172 = arith.addf %128, %171 : vector<17x64xf32>
    %173 = vector.broadcast %19 : vector<1x64xf32> to vector<17x64xf32>
    %174 = arith.addf %172, %173 : vector<17x64xf32>
    %c1 = arith.constant 1 : index
    %c0_52 = arith.constant 0 : index
    %c0_53 = arith.constant 0 : index
    %175 = vector.load %arg7[%c1, %c0_52, %c0_53] : memref<2x7x128xf32, #tpu.memory_space<vmem>>, vector<1x7x128xf32>
    %176 = vector.shape_cast %175 : vector<1x7x128xf32> to vector<7x128xf32>
    %177 = vector.extract_strided_slice %176 {offsets = [0, 0], sizes = [1, 64], strides = [1, 1]} : vector<7x128xf32> to vector<1x64xf32>
    %178 = vector.extract_strided_slice %176 {offsets = [1, 0], sizes = [1, 64], strides = [1, 1]} : vector<7x128xf32> to vector<1x64xf32>
    %179 = vector.extract_strided_slice %176 {offsets = [2, 0], sizes = [1, 64], strides = [1, 1]} : vector<7x128xf32> to vector<1x64xf32>
    %180 = vector.extract_strided_slice %176 {offsets = [3, 0], sizes = [1, 64], strides = [1, 1]} : vector<7x128xf32> to vector<1x64xf32>
    %181 = vector.extract_strided_slice %176 {offsets = [4, 0], sizes = [1, 64], strides = [1, 1]} : vector<7x128xf32> to vector<1x64xf32>
    %182 = vector.extract_strided_slice %176 {offsets = [5, 0], sizes = [1, 64], strides = [1, 1]} : vector<7x128xf32> to vector<1x64xf32>
    %183 = vector.extract_strided_slice %176 {offsets = [6, 0], sizes = [1, 128], strides = [1, 1]} : vector<7x128xf32> to vector<1x128xf32>
    %cst_54 = arith.constant dense<0.000000e+00> : vector<17xf32>
    %184 = vector.multi_reduction <add>, %174, %cst_54 [1] : vector<17x64xf32> to vector<17xf32>
    %185 = vector.shape_cast %184 : vector<17xf32> to vector<17x1xf32>
    %cst_55 = arith.constant 6.400000e+01 : f32
    %186 = vector.broadcast %cst_55 : f32 to vector<17x1xf32>
    %187 = arith.divf %185, %186 : vector<17x1xf32>
    %188 = vector.broadcast %187 : vector<17x1xf32> to vector<17x64xf32>
    %189 = arith.subf %174, %188 : vector<17x64xf32>
    %190 = arith.mulf %189, %189 : vector<17x64xf32>
    %cst_56 = arith.constant dense<0.000000e+00> : vector<17xf32>
    %191 = vector.multi_reduction <add>, %190, %cst_56 [1] : vector<17x64xf32> to vector<17xf32>
    %192 = vector.shape_cast %191 : vector<17xf32> to vector<17x1xf32>
    %cst_57 = arith.constant 6.400000e+01 : f32
    %193 = vector.broadcast %cst_57 : f32 to vector<17x1xf32>
    %194 = arith.divf %192, %193 : vector<17x1xf32>
    %cst_58 = arith.constant 9.99999974E-6 : f32
    %195 = vector.broadcast %cst_58 : f32 to vector<17x1xf32>
    %196 = arith.addf %194, %195 : vector<17x1xf32>
    %197 = math.rsqrt %196 : vector<17x1xf32>
    %198 = vector.broadcast %197 : vector<17x1xf32> to vector<17x64xf32>
    %199 = arith.mulf %189, %198 : vector<17x64xf32>
    %200 = vector.broadcast %177 : vector<1x64xf32> to vector<17x64xf32>
    %201 = arith.mulf %199, %200 : vector<17x64xf32>
    %202 = vector.broadcast %178 : vector<1x64xf32> to vector<17x64xf32>
    %203 = arith.addf %201, %202 : vector<17x64xf32>
    %204 = arith.truncf %203 : vector<17x64xf32> to vector<17x64xbf16>
    %c1_59 = arith.constant 1 : index
    %c0_60 = arith.constant 0 : index
    %c0_61 = arith.constant 0 : index
    %205 = vector.load %arg4[%c1_59, %c0_60, %c0_61] : memref<2x64x192xbf16, #tpu.memory_space<vmem>>, vector<1x64x192xbf16>
    %206 = vector.shape_cast %205 : vector<1x64x192xbf16> to vector<64x192xbf16>
    %cst_62 = arith.constant dense<0.000000e+00> : vector<17x192xf32>
    %207 = tpu.matmul %204, %206, %cst_62 {dimension_numbers = #tpu.dot_dimension_numbers<[1], [0], [0], [1], [0, 0, 1, 1], [], []>} : vector<17x64xbf16>, vector<64x192xbf16>, vector<17x192xf32> -> vector<17x192xf32>
    %208 = vector.extract_strided_slice %207 {offsets = [0, 0], sizes = [17, 16], strides = [1, 1]} : vector<17x192xf32> to vector<17x16xf32>
    %209 = arith.truncf %208 : vector<17x16xf32> to vector<17x16xbf16>
    %210 = vector.extract_strided_slice %207 {offsets = [0, 64], sizes = [17, 16], strides = [1, 1]} : vector<17x192xf32> to vector<17x16xf32>
    %211 = arith.truncf %210 : vector<17x16xf32> to vector<17x16xbf16>
    %212 = vector.extract_strided_slice %207 {offsets = [0, 128], sizes = [17, 16], strides = [1, 1]} : vector<17x192xf32> to vector<17x16xf32>
    %213 = arith.truncf %212 : vector<17x16xf32> to vector<17x16xbf16>
    %cst_63 = arith.constant dense<0.000000e+00> : vector<17x17xf32>
    %214 = tpu.matmul %209, %211, %cst_63 {dimension_numbers = #tpu.dot_dimension_numbers<[1], [1], [0], [0], [0, 0, 1, 0], [], []>} : vector<17x16xbf16>, vector<17x16xbf16>, vector<17x17xf32> -> vector<17x17xf32>
    %cst_64 = arith.constant dense<0xFF800000> : vector<17xf32>
    %215 = vector.multi_reduction <maximumf>, %214, %cst_64 [1] : vector<17x17xf32> to vector<17xf32>
    %216 = vector.shape_cast %215 : vector<17xf32> to vector<17x1xf32>
    %217 = vector.broadcast %216 : vector<17x1xf32> to vector<17x17xf32>
    %218 = arith.subf %214, %217 : vector<17x17xf32>
    %219 = math.exp %218 : vector<17x17xf32>
    %cst_65 = arith.constant dense<0.000000e+00> : vector<17xf32>
    %220 = vector.multi_reduction <add>, %219, %cst_65 [1] : vector<17x17xf32> to vector<17xf32>
    %221 = vector.shape_cast %220 : vector<17xf32> to vector<17x1xf32>
    %222 = tpu.reciprocal %221 {approx = true} : vector<17x1xf32> -> vector<17x1xf32>
    %223 = vector.broadcast %222 : vector<17x1xf32> to vector<17x17xf32>
    %224 = arith.mulf %219, %223 : vector<17x17xf32>
    %225 = arith.truncf %224 : vector<17x17xf32> to vector<17x17xbf16>
    %cst_66 = arith.constant dense<0.000000e+00> : vector<17x16xf32>
    %226 = tpu.matmul %225, %213, %cst_66 {dimension_numbers = #tpu.dot_dimension_numbers<[1], [0], [0], [1], [0, 0, 1, 1], [], []>} : vector<17x17xbf16>, vector<17x16xbf16>, vector<17x16xf32> -> vector<17x16xf32>
    %227 = vector.extract_strided_slice %207 {offsets = [0, 16], sizes = [17, 16], strides = [1, 1]} : vector<17x192xf32> to vector<17x16xf32>
    %228 = arith.truncf %227 : vector<17x16xf32> to vector<17x16xbf16>
    %229 = vector.extract_strided_slice %207 {offsets = [0, 80], sizes = [17, 16], strides = [1, 1]} : vector<17x192xf32> to vector<17x16xf32>
    %230 = arith.truncf %229 : vector<17x16xf32> to vector<17x16xbf16>
    %231 = vector.extract_strided_slice %207 {offsets = [0, 144], sizes = [17, 16], strides = [1, 1]} : vector<17x192xf32> to vector<17x16xf32>
    %232 = arith.truncf %231 : vector<17x16xf32> to vector<17x16xbf16>
    %cst_67 = arith.constant dense<0.000000e+00> : vector<17x17xf32>
    %233 = tpu.matmul %228, %230, %cst_67 {dimension_numbers = #tpu.dot_dimension_numbers<[1], [1], [0], [0], [0, 0, 1, 0], [], []>} : vector<17x16xbf16>, vector<17x16xbf16>, vector<17x17xf32> -> vector<17x17xf32>
    %cst_68 = arith.constant dense<0xFF800000> : vector<17xf32>
    %234 = vector.multi_reduction <maximumf>, %233, %cst_68 [1] : vector<17x17xf32> to vector<17xf32>
    %235 = vector.shape_cast %234 : vector<17xf32> to vector<17x1xf32>
    %236 = vector.broadcast %235 : vector<17x1xf32> to vector<17x17xf32>
    %237 = arith.subf %233, %236 : vector<17x17xf32>
    %238 = math.exp %237 : vector<17x17xf32>
    %cst_69 = arith.constant dense<0.000000e+00> : vector<17xf32>
    %239 = vector.multi_reduction <add>, %238, %cst_69 [1] : vector<17x17xf32> to vector<17xf32>
    %240 = vector.shape_cast %239 : vector<17xf32> to vector<17x1xf32>
    %241 = tpu.reciprocal %240 {approx = true} : vector<17x1xf32> -> vector<17x1xf32>
    %242 = vector.broadcast %241 : vector<17x1xf32> to vector<17x17xf32>
    %243 = arith.mulf %238, %242 : vector<17x17xf32>
    %244 = arith.truncf %243 : vector<17x17xf32> to vector<17x17xbf16>
    %cst_70 = arith.constant dense<0.000000e+00> : vector<17x16xf32>
    %245 = tpu.matmul %244, %232, %cst_70 {dimension_numbers = #tpu.dot_dimension_numbers<[1], [0], [0], [1], [0, 0, 1, 1], [], []>} : vector<17x17xbf16>, vector<17x16xbf16>, vector<17x16xf32> -> vector<17x16xf32>
    %246 = vector.extract_strided_slice %207 {offsets = [0, 32], sizes = [17, 16], strides = [1, 1]} : vector<17x192xf32> to vector<17x16xf32>
    %247 = arith.truncf %246 : vector<17x16xf32> to vector<17x16xbf16>
    %248 = vector.extract_strided_slice %207 {offsets = [0, 96], sizes = [17, 16], strides = [1, 1]} : vector<17x192xf32> to vector<17x16xf32>
    %249 = arith.truncf %248 : vector<17x16xf32> to vector<17x16xbf16>
    %250 = vector.extract_strided_slice %207 {offsets = [0, 160], sizes = [17, 16], strides = [1, 1]} : vector<17x192xf32> to vector<17x16xf32>
    %251 = arith.truncf %250 : vector<17x16xf32> to vector<17x16xbf16>
    %cst_71 = arith.constant dense<0.000000e+00> : vector<17x17xf32>
    %252 = tpu.matmul %247, %249, %cst_71 {dimension_numbers = #tpu.dot_dimension_numbers<[1], [1], [0], [0], [0, 0, 1, 0], [], []>} : vector<17x16xbf16>, vector<17x16xbf16>, vector<17x17xf32> -> vector<17x17xf32>
    %cst_72 = arith.constant dense<0xFF800000> : vector<17xf32>
    %253 = vector.multi_reduction <maximumf>, %252, %cst_72 [1] : vector<17x17xf32> to vector<17xf32>
    %254 = vector.shape_cast %253 : vector<17xf32> to vector<17x1xf32>
    %255 = vector.broadcast %254 : vector<17x1xf32> to vector<17x17xf32>
    %256 = arith.subf %252, %255 : vector<17x17xf32>
    %257 = math.exp %256 : vector<17x17xf32>
    %cst_73 = arith.constant dense<0.000000e+00> : vector<17xf32>
    %258 = vector.multi_reduction <add>, %257, %cst_73 [1] : vector<17x17xf32> to vector<17xf32>
    %259 = vector.shape_cast %258 : vector<17xf32> to vector<17x1xf32>
    %260 = tpu.reciprocal %259 {approx = true} : vector<17x1xf32> -> vector<17x1xf32>
    %261 = vector.broadcast %260 : vector<17x1xf32> to vector<17x17xf32>
    %262 = arith.mulf %257, %261 : vector<17x17xf32>
    %263 = arith.truncf %262 : vector<17x17xf32> to vector<17x17xbf16>
    %cst_74 = arith.constant dense<0.000000e+00> : vector<17x16xf32>
    %264 = tpu.matmul %263, %251, %cst_74 {dimension_numbers = #tpu.dot_dimension_numbers<[1], [0], [0], [1], [0, 0, 1, 1], [], []>} : vector<17x17xbf16>, vector<17x16xbf16>, vector<17x16xf32> -> vector<17x16xf32>
    %265 = vector.extract_strided_slice %207 {offsets = [0, 48], sizes = [17, 16], strides = [1, 1]} : vector<17x192xf32> to vector<17x16xf32>
    %266 = arith.truncf %265 : vector<17x16xf32> to vector<17x16xbf16>
    %267 = vector.extract_strided_slice %207 {offsets = [0, 112], sizes = [17, 16], strides = [1, 1]} : vector<17x192xf32> to vector<17x16xf32>
    %268 = arith.truncf %267 : vector<17x16xf32> to vector<17x16xbf16>
    %269 = vector.extract_strided_slice %207 {offsets = [0, 176], sizes = [17, 16], strides = [1, 1]} : vector<17x192xf32> to vector<17x16xf32>
    %270 = arith.truncf %269 : vector<17x16xf32> to vector<17x16xbf16>
    %cst_75 = arith.constant dense<0.000000e+00> : vector<17x17xf32>
    %271 = tpu.matmul %266, %268, %cst_75 {dimension_numbers = #tpu.dot_dimension_numbers<[1], [1], [0], [0], [0, 0, 1, 0], [], []>} : vector<17x16xbf16>, vector<17x16xbf16>, vector<17x17xf32> -> vector<17x17xf32>
    %cst_76 = arith.constant dense<0xFF800000> : vector<17xf32>
    %272 = vector.multi_reduction <maximumf>, %271, %cst_76 [1] : vector<17x17xf32> to vector<17xf32>
    %273 = vector.shape_cast %272 : vector<17xf32> to vector<17x1xf32>
    %274 = vector.broadcast %273 : vector<17x1xf32> to vector<17x17xf32>
    %275 = arith.subf %271, %274 : vector<17x17xf32>
    %276 = math.exp %275 : vector<17x17xf32>
    %cst_77 = arith.constant dense<0.000000e+00> : vector<17xf32>
    %277 = vector.multi_reduction <add>, %276, %cst_77 [1] : vector<17x17xf32> to vector<17xf32>
    %278 = vector.shape_cast %277 : vector<17xf32> to vector<17x1xf32>
    %279 = tpu.reciprocal %278 {approx = true} : vector<17x1xf32> -> vector<17x1xf32>
    %280 = vector.broadcast %279 : vector<17x1xf32> to vector<17x17xf32>
    %281 = arith.mulf %276, %280 : vector<17x17xf32>
    %282 = arith.truncf %281 : vector<17x17xf32> to vector<17x17xbf16>
    %cst_78 = arith.constant dense<0.000000e+00> : vector<17x16xf32>
    %283 = tpu.matmul %282, %270, %cst_78 {dimension_numbers = #tpu.dot_dimension_numbers<[1], [0], [0], [1], [0, 0, 1, 1], [], []>} : vector<17x17xbf16>, vector<17x16xbf16>, vector<17x16xf32> -> vector<17x16xf32>
    %284 = tpu.concatenate %226, %245, %264, %283 in 1 : vector<17x16xf32>, vector<17x16xf32>, vector<17x16xf32>, vector<17x16xf32> -> vector<17x64xf32>
    %285 = arith.truncf %284 : vector<17x64xf32> to vector<17x64xbf16>
    %c1_79 = arith.constant 1 : index
    %c0_80 = arith.constant 0 : index
    %c0_81 = arith.constant 0 : index
    %286 = vector.load %arg5[%c1_79, %c0_80, %c0_81] : memref<2x64x64xbf16, #tpu.memory_space<vmem>>, vector<1x64x64xbf16>
    %287 = vector.shape_cast %286 : vector<1x64x64xbf16> to vector<64x64xbf16>
    %cst_82 = arith.constant dense<0.000000e+00> : vector<17x64xf32>
    %288 = tpu.matmul %285, %287, %cst_82 {dimension_numbers = #tpu.dot_dimension_numbers<[1], [0], [0], [1], [0, 0, 1, 1], [], []>} : vector<17x64xbf16>, vector<64x64xbf16>, vector<17x64xf32> -> vector<17x64xf32>
    %289 = arith.addf %174, %288 : vector<17x64xf32>
    %290 = vector.broadcast %179 : vector<1x64xf32> to vector<17x64xf32>
    %291 = arith.addf %289, %290 : vector<17x64xf32>
    %cst_83 = arith.constant dense<0.000000e+00> : vector<17xf32>
    %292 = vector.multi_reduction <add>, %291, %cst_83 [1] : vector<17x64xf32> to vector<17xf32>
    %293 = vector.shape_cast %292 : vector<17xf32> to vector<17x1xf32>
    %cst_84 = arith.constant 6.400000e+01 : f32
    %294 = vector.broadcast %cst_84 : f32 to vector<17x1xf32>
    %295 = arith.divf %293, %294 : vector<17x1xf32>
    %296 = vector.broadcast %295 : vector<17x1xf32> to vector<17x64xf32>
    %297 = arith.subf %291, %296 : vector<17x64xf32>
    %298 = arith.mulf %297, %297 : vector<17x64xf32>
    %cst_85 = arith.constant dense<0.000000e+00> : vector<17xf32>
    %299 = vector.multi_reduction <add>, %298, %cst_85 [1] : vector<17x64xf32> to vector<17xf32>
    %300 = vector.shape_cast %299 : vector<17xf32> to vector<17x1xf32>
    %cst_86 = arith.constant 6.400000e+01 : f32
    %301 = vector.broadcast %cst_86 : f32 to vector<17x1xf32>
    %302 = arith.divf %300, %301 : vector<17x1xf32>
    %cst_87 = arith.constant 9.99999974E-6 : f32
    %303 = vector.broadcast %cst_87 : f32 to vector<17x1xf32>
    %304 = arith.addf %302, %303 : vector<17x1xf32>
    %305 = math.rsqrt %304 : vector<17x1xf32>
    %306 = vector.broadcast %305 : vector<17x1xf32> to vector<17x64xf32>
    %307 = arith.mulf %297, %306 : vector<17x64xf32>
    %308 = vector.broadcast %180 : vector<1x64xf32> to vector<17x64xf32>
    %309 = arith.mulf %307, %308 : vector<17x64xf32>
    %310 = vector.broadcast %181 : vector<1x64xf32> to vector<17x64xf32>
    %311 = arith.addf %309, %310 : vector<17x64xf32>
    %312 = arith.truncf %311 : vector<17x64xf32> to vector<17x64xbf16>
    %c1_88 = arith.constant 1 : index
    %c0_89 = arith.constant 0 : index
    %c0_90 = arith.constant 0 : index
    %313 = vector.load %arg6[%c1_88, %c0_89, %c0_90] : memref<2x192x128xbf16, #tpu.memory_space<vmem>>, vector<1x192x128xbf16>
    %314 = vector.shape_cast %313 : vector<1x192x128xbf16> to vector<192x128xbf16>
    %315 = vector.extract_strided_slice %314 {offsets = [0, 0], sizes = [64, 128], strides = [1, 1]} : vector<192x128xbf16> to vector<64x128xbf16>
    %316 = vector.extract_strided_slice %314 {offsets = [64, 0], sizes = [128, 64], strides = [1, 1]} : vector<192x128xbf16> to vector<128x64xbf16>
    %cst_91 = arith.constant dense<0.000000e+00> : vector<17x128xf32>
    %317 = tpu.matmul %312, %315, %cst_91 {dimension_numbers = #tpu.dot_dimension_numbers<[1], [0], [0], [1], [0, 0, 1, 1], [], []>} : vector<17x64xbf16>, vector<64x128xbf16>, vector<17x128xf32> -> vector<17x128xf32>
    %318 = vector.broadcast %183 : vector<1x128xf32> to vector<17x128xf32>
    %319 = arith.addf %317, %318 : vector<17x128xf32>
    %cst_92 = arith.constant 5.000000e-01 : f32
    %320 = vector.broadcast %cst_92 : f32 to vector<17x128xf32>
    %321 = arith.mulf %320, %319 : vector<17x128xf32>
    %cst_93 = arith.constant 4.471500e-02 : f32
    %322 = vector.broadcast %cst_93 : f32 to vector<17x128xf32>
    %323 = arith.mulf %322, %319 : vector<17x128xf32>
    %324 = arith.mulf %323, %319 : vector<17x128xf32>
    %325 = arith.mulf %324, %319 : vector<17x128xf32>
    %326 = arith.addf %319, %325 : vector<17x128xf32>
    %cst_94 = arith.constant 0.797884583 : f32
    %327 = vector.broadcast %cst_94 : f32 to vector<17x128xf32>
    %328 = arith.mulf %327, %326 : vector<17x128xf32>
    %329 = math.tanh %328 : vector<17x128xf32>
    %cst_95 = arith.constant 1.000000e+00 : f32
    %330 = vector.broadcast %cst_95 : f32 to vector<17x128xf32>
    %331 = arith.addf %330, %329 : vector<17x128xf32>
    %332 = arith.mulf %321, %331 : vector<17x128xf32>
    %333 = arith.truncf %332 : vector<17x128xf32> to vector<17x128xbf16>
    %cst_96 = arith.constant dense<0.000000e+00> : vector<17x64xf32>
    %334 = tpu.matmul %333, %316, %cst_96 {dimension_numbers = #tpu.dot_dimension_numbers<[1], [0], [0], [1], [0, 0, 1, 1], [], []>} : vector<17x128xbf16>, vector<128x64xbf16>, vector<17x64xf32> -> vector<17x64xf32>
    %335 = arith.addf %291, %334 : vector<17x64xf32>
    %336 = vector.broadcast %182 : vector<1x64xf32> to vector<17x64xf32>
    %337 = arith.addf %335, %336 : vector<17x64xf32>
    %338 = vector.extract_strided_slice %337 {offsets = [0, 0], sizes = [1, 64], strides = [1, 1]} : vector<17x64xf32> to vector<1x64xf32>
    %cst_97 = arith.constant dense<0.000000e+00> : vector<1xf32>
    %339 = vector.multi_reduction <add>, %338, %cst_97 [1] : vector<1x64xf32> to vector<1xf32>
    %340 = vector.shape_cast %339 : vector<1xf32> to vector<1x1xf32>
    %cst_98 = arith.constant 6.400000e+01 : f32
    %341 = vector.broadcast %cst_98 : f32 to vector<1x1xf32>
    %342 = arith.divf %340, %341 : vector<1x1xf32>
    %343 = vector.broadcast %342 : vector<1x1xf32> to vector<1x64xf32>
    %344 = arith.subf %338, %343 : vector<1x64xf32>
    %345 = arith.mulf %344, %344 : vector<1x64xf32>
    %cst_99 = arith.constant dense<0.000000e+00> : vector<1xf32>
    %346 = vector.multi_reduction <add>, %345, %cst_99 [1] : vector<1x64xf32> to vector<1xf32>
    %347 = vector.shape_cast %346 : vector<1xf32> to vector<1x1xf32>
    %cst_100 = arith.constant 6.400000e+01 : f32
    %348 = vector.broadcast %cst_100 : f32 to vector<1x1xf32>
    %349 = arith.divf %347, %348 : vector<1x1xf32>
    %cst_101 = arith.constant 9.99999974E-6 : f32
    %350 = vector.broadcast %cst_101 : f32 to vector<1x1xf32>
    %351 = arith.addf %349, %350 : vector<1x1xf32>
    %352 = math.rsqrt %351 : vector<1x1xf32>
    %353 = vector.broadcast %352 : vector<1x1xf32> to vector<1x64xf32>
    %354 = arith.mulf %344, %353 : vector<1x64xf32>
    %355 = arith.mulf %354, %5 : vector<1x64xf32>
    %356 = arith.addf %355, %6 : vector<1x64xf32>
    %357 = arith.truncf %356 : vector<1x64xf32> to vector<1x64xbf16>
    %cst_102 = arith.constant dense<0.000000e+00> : vector<1x128xf32>
    %358 = tpu.matmul %357, %2, %cst_102 {dimension_numbers = #tpu.dot_dimension_numbers<[1], [0], [0], [1], [0, 0, 1, 1], [], []>} : vector<1x64xbf16>, vector<64x128xbf16>, vector<1x128xf32> -> vector<1x128xf32>
    %359 = arith.addf %358, %7 : vector<1x128xf32>
    %c0_103 = arith.constant 0 : index
    %c0_104 = arith.constant 0 : index
    %c0_105 = arith.constant 0 : index
    %360 = vector.load %arg8[%c0_103, %c0_104, %c0_105] : memref<2x1x128xf32, #tpu.memory_space<vmem>>, vector<1x1x128xf32>
    %361 = vector.shape_cast %360 : vector<1x1x128xf32> to vector<1x128xf32>
    %362 = vector.shape_cast %359 : vector<1x128xf32> to vector<1x1x128xf32>
    tpu.vector_store %arg8[%c0_103, %c0_104, %c0_105], %362 {strides = array<i32>} : memref<2x1x128xf32, #tpu.memory_space<vmem>>, vector<1x1x128xf32>,
    %c1_106 = arith.constant 1 : index
    %c0_107 = arith.constant 0 : index
    %c0_108 = arith.constant 0 : index
    %363 = vector.load %arg1[%c1_106, %c0_107, %c0_108] : memref<2x17x48xbf16, #tpu.memory_space<vmem>>, vector<1x17x48xbf16>
    %364 = vector.shape_cast %363 : vector<1x17x48xbf16> to vector<17x48xbf16>
    %cst_109 = arith.constant dense<0.000000e+00> : vector<17x64xf32>
    %365 = tpu.matmul %364, %1, %cst_109 {dimension_numbers = #tpu.dot_dimension_numbers<[1], [0], [0], [1], [0, 0, 1, 1], [], []>} : vector<17x48xbf16>, vector<48x64xbf16>, vector<17x64xf32> -> vector<17x64xf32>
    %366 = arith.addf %365, %4 : vector<17x64xf32>
    %c0_110 = arith.constant 0 : index
    %c0_111 = arith.constant 0 : index
    %c0_112 = arith.constant 0 : index
    %367 = vector.load %arg7[%c0_110, %c0_111, %c0_112] : memref<2x7x128xf32, #tpu.memory_space<vmem>>, vector<1x7x128xf32>
    %368 = vector.shape_cast %367 : vector<1x7x128xf32> to vector<7x128xf32>
    %369 = vector.extract_strided_slice %368 {offsets = [0, 0], sizes = [1, 64], strides = [1, 1]} : vector<7x128xf32> to vector<1x64xf32>
    %370 = vector.extract_strided_slice %368 {offsets = [1, 0], sizes = [1, 64], strides = [1, 1]} : vector<7x128xf32> to vector<1x64xf32>
    %371 = vector.extract_strided_slice %368 {offsets = [2, 0], sizes = [1, 64], strides = [1, 1]} : vector<7x128xf32> to vector<1x64xf32>
    %372 = vector.extract_strided_slice %368 {offsets = [3, 0], sizes = [1, 64], strides = [1, 1]} : vector<7x128xf32> to vector<1x64xf32>
    %373 = vector.extract_strided_slice %368 {offsets = [4, 0], sizes = [1, 64], strides = [1, 1]} : vector<7x128xf32> to vector<1x64xf32>
    %374 = vector.extract_strided_slice %368 {offsets = [5, 0], sizes = [1, 64], strides = [1, 1]} : vector<7x128xf32> to vector<1x64xf32>
    %375 = vector.extract_strided_slice %368 {offsets = [6, 0], sizes = [1, 128], strides = [1, 1]} : vector<7x128xf32> to vector<1x128xf32>
    %cst_113 = arith.constant dense<0.000000e+00> : vector<17xf32>
    %376 = vector.multi_reduction <add>, %366, %cst_113 [1] : vector<17x64xf32> to vector<17xf32>
    %377 = vector.shape_cast %376 : vector<17xf32> to vector<17x1xf32>
    %cst_114 = arith.constant 6.400000e+01 : f32
    %378 = vector.broadcast %cst_114 : f32 to vector<17x1xf32>
    %379 = arith.divf %377, %378 : vector<17x1xf32>
    %380 = vector.broadcast %379 : vector<17x1xf32> to vector<17x64xf32>
    %381 = arith.subf %366, %380 : vector<17x64xf32>
    %382 = arith.mulf %381, %381 : vector<17x64xf32>
    %cst_115 = arith.constant dense<0.000000e+00> : vector<17xf32>
    %383 = vector.multi_reduction <add>, %382, %cst_115 [1] : vector<17x64xf32> to vector<17xf32>
    %384 = vector.shape_cast %383 : vector<17xf32> to vector<17x1xf32>
    %cst_116 = arith.constant 6.400000e+01 : f32
    %385 = vector.broadcast %cst_116 : f32 to vector<17x1xf32>
    %386 = arith.divf %384, %385 : vector<17x1xf32>
    %cst_117 = arith.constant 9.99999974E-6 : f32
    %387 = vector.broadcast %cst_117 : f32 to vector<17x1xf32>
    %388 = arith.addf %386, %387 : vector<17x1xf32>
    %389 = math.rsqrt %388 : vector<17x1xf32>
    %390 = vector.broadcast %389 : vector<17x1xf32> to vector<17x64xf32>
    %391 = arith.mulf %381, %390 : vector<17x64xf32>
    %392 = vector.broadcast %369 : vector<1x64xf32> to vector<17x64xf32>
    %393 = arith.mulf %391, %392 : vector<17x64xf32>
    %394 = vector.broadcast %370 : vector<1x64xf32> to vector<17x64xf32>
    %395 = arith.addf %393, %394 : vector<17x64xf32>
    %396 = arith.truncf %395 : vector<17x64xf32> to vector<17x64xbf16>
    %c0_118 = arith.constant 0 : index
    %c0_119 = arith.constant 0 : index
    %c0_120 = arith.constant 0 : index
    %397 = vector.load %arg4[%c0_118, %c0_119, %c0_120] : memref<2x64x192xbf16, #tpu.memory_space<vmem>>, vector<1x64x192xbf16>
    %398 = vector.shape_cast %397 : vector<1x64x192xbf16> to vector<64x192xbf16>
    %cst_121 = arith.constant dense<0.000000e+00> : vector<17x192xf32>
    %399 = tpu.matmul %396, %398, %cst_121 {dimension_numbers = #tpu.dot_dimension_numbers<[1], [0], [0], [1], [0, 0, 1, 1], [], []>} : vector<17x64xbf16>, vector<64x192xbf16>, vector<17x192xf32> -> vector<17x192xf32>
    %400 = vector.extract_strided_slice %399 {offsets = [0, 0], sizes = [17, 16], strides = [1, 1]} : vector<17x192xf32> to vector<17x16xf32>
    %401 = arith.truncf %400 : vector<17x16xf32> to vector<17x16xbf16>
    %402 = vector.extract_strided_slice %399 {offsets = [0, 64], sizes = [17, 16], strides = [1, 1]} : vector<17x192xf32> to vector<17x16xf32>
    %403 = arith.truncf %402 : vector<17x16xf32> to vector<17x16xbf16>
    %404 = vector.extract_strided_slice %399 {offsets = [0, 128], sizes = [17, 16], strides = [1, 1]} : vector<17x192xf32> to vector<17x16xf32>
    %405 = arith.truncf %404 : vector<17x16xf32> to vector<17x16xbf16>
    %cst_122 = arith.constant dense<0.000000e+00> : vector<17x17xf32>
    %406 = tpu.matmul %401, %403, %cst_122 {dimension_numbers = #tpu.dot_dimension_numbers<[1], [1], [0], [0], [0, 0, 1, 0], [], []>} : vector<17x16xbf16>, vector<17x16xbf16>, vector<17x17xf32> -> vector<17x17xf32>
    %cst_123 = arith.constant dense<0xFF800000> : vector<17xf32>
    %407 = vector.multi_reduction <maximumf>, %406, %cst_123 [1] : vector<17x17xf32> to vector<17xf32>
    %408 = vector.shape_cast %407 : vector<17xf32> to vector<17x1xf32>
    %409 = vector.broadcast %408 : vector<17x1xf32> to vector<17x17xf32>
    %410 = arith.subf %406, %409 : vector<17x17xf32>
    %411 = math.exp %410 : vector<17x17xf32>
    %cst_124 = arith.constant dense<0.000000e+00> : vector<17xf32>
    %412 = vector.multi_reduction <add>, %411, %cst_124 [1] : vector<17x17xf32> to vector<17xf32>
    %413 = vector.shape_cast %412 : vector<17xf32> to vector<17x1xf32>
    %414 = tpu.reciprocal %413 {approx = true} : vector<17x1xf32> -> vector<17x1xf32>
    %415 = vector.broadcast %414 : vector<17x1xf32> to vector<17x17xf32>
    %416 = arith.mulf %411, %415 : vector<17x17xf32>
    %417 = arith.truncf %416 : vector<17x17xf32> to vector<17x17xbf16>
    %cst_125 = arith.constant dense<0.000000e+00> : vector<17x16xf32>
    %418 = tpu.matmul %417, %405, %cst_125 {dimension_numbers = #tpu.dot_dimension_numbers<[1], [0], [0], [1], [0, 0, 1, 1], [], []>} : vector<17x17xbf16>, vector<17x16xbf16>, vector<17x16xf32> -> vector<17x16xf32>
    %419 = vector.extract_strided_slice %399 {offsets = [0, 16], sizes = [17, 16], strides = [1, 1]} : vector<17x192xf32> to vector<17x16xf32>
    %420 = arith.truncf %419 : vector<17x16xf32> to vector<17x16xbf16>
    %421 = vector.extract_strided_slice %399 {offsets = [0, 80], sizes = [17, 16], strides = [1, 1]} : vector<17x192xf32> to vector<17x16xf32>
    %422 = arith.truncf %421 : vector<17x16xf32> to vector<17x16xbf16>
    %423 = vector.extract_strided_slice %399 {offsets = [0, 144], sizes = [17, 16], strides = [1, 1]} : vector<17x192xf32> to vector<17x16xf32>
    %424 = arith.truncf %423 : vector<17x16xf32> to vector<17x16xbf16>
    %cst_126 = arith.constant dense<0.000000e+00> : vector<17x17xf32>
    %425 = tpu.matmul %420, %422, %cst_126 {dimension_numbers = #tpu.dot_dimension_numbers<[1], [1], [0], [0], [0, 0, 1, 0], [], []>} : vector<17x16xbf16>, vector<17x16xbf16>, vector<17x17xf32> -> vector<17x17xf32>
    %cst_127 = arith.constant dense<0xFF800000> : vector<17xf32>
    %426 = vector.multi_reduction <maximumf>, %425, %cst_127 [1] : vector<17x17xf32> to vector<17xf32>
    %427 = vector.shape_cast %426 : vector<17xf32> to vector<17x1xf32>
    %428 = vector.broadcast %427 : vector<17x1xf32> to vector<17x17xf32>
    %429 = arith.subf %425, %428 : vector<17x17xf32>
    %430 = math.exp %429 : vector<17x17xf32>
    %cst_128 = arith.constant dense<0.000000e+00> : vector<17xf32>
    %431 = vector.multi_reduction <add>, %430, %cst_128 [1] : vector<17x17xf32> to vector<17xf32>
    %432 = vector.shape_cast %431 : vector<17xf32> to vector<17x1xf32>
    %433 = tpu.reciprocal %432 {approx = true} : vector<17x1xf32> -> vector<17x1xf32>
    %434 = vector.broadcast %433 : vector<17x1xf32> to vector<17x17xf32>
    %435 = arith.mulf %430, %434 : vector<17x17xf32>
    %436 = arith.truncf %435 : vector<17x17xf32> to vector<17x17xbf16>
    %cst_129 = arith.constant dense<0.000000e+00> : vector<17x16xf32>
    %437 = tpu.matmul %436, %424, %cst_129 {dimension_numbers = #tpu.dot_dimension_numbers<[1], [0], [0], [1], [0, 0, 1, 1], [], []>} : vector<17x17xbf16>, vector<17x16xbf16>, vector<17x16xf32> -> vector<17x16xf32>
    %438 = vector.extract_strided_slice %399 {offsets = [0, 32], sizes = [17, 16], strides = [1, 1]} : vector<17x192xf32> to vector<17x16xf32>
    %439 = arith.truncf %438 : vector<17x16xf32> to vector<17x16xbf16>
    %440 = vector.extract_strided_slice %399 {offsets = [0, 96], sizes = [17, 16], strides = [1, 1]} : vector<17x192xf32> to vector<17x16xf32>
    %441 = arith.truncf %440 : vector<17x16xf32> to vector<17x16xbf16>
    %442 = vector.extract_strided_slice %399 {offsets = [0, 160], sizes = [17, 16], strides = [1, 1]} : vector<17x192xf32> to vector<17x16xf32>
    %443 = arith.truncf %442 : vector<17x16xf32> to vector<17x16xbf16>
    %cst_130 = arith.constant dense<0.000000e+00> : vector<17x17xf32>
    %444 = tpu.matmul %439, %441, %cst_130 {dimension_numbers = #tpu.dot_dimension_numbers<[1], [1], [0], [0], [0, 0, 1, 0], [], []>} : vector<17x16xbf16>, vector<17x16xbf16>, vector<17x17xf32> -> vector<17x17xf32>
    %cst_131 = arith.constant dense<0xFF800000> : vector<17xf32>
    %445 = vector.multi_reduction <maximumf>, %444, %cst_131 [1] : vector<17x17xf32> to vector<17xf32>
    %446 = vector.shape_cast %445 : vector<17xf32> to vector<17x1xf32>
    %447 = vector.broadcast %446 : vector<17x1xf32> to vector<17x17xf32>
    %448 = arith.subf %444, %447 : vector<17x17xf32>
    %449 = math.exp %448 : vector<17x17xf32>
    %cst_132 = arith.constant dense<0.000000e+00> : vector<17xf32>
    %450 = vector.multi_reduction <add>, %449, %cst_132 [1] : vector<17x17xf32> to vector<17xf32>
    %451 = vector.shape_cast %450 : vector<17xf32> to vector<17x1xf32>
    %452 = tpu.reciprocal %451 {approx = true} : vector<17x1xf32> -> vector<17x1xf32>
    %453 = vector.broadcast %452 : vector<17x1xf32> to vector<17x17xf32>
    %454 = arith.mulf %449, %453 : vector<17x17xf32>
    %455 = arith.truncf %454 : vector<17x17xf32> to vector<17x17xbf16>
    %cst_133 = arith.constant dense<0.000000e+00> : vector<17x16xf32>
    %456 = tpu.matmul %455, %443, %cst_133 {dimension_numbers = #tpu.dot_dimension_numbers<[1], [0], [0], [1], [0, 0, 1, 1], [], []>} : vector<17x17xbf16>, vector<17x16xbf16>, vector<17x16xf32> -> vector<17x16xf32>
    %457 = vector.extract_strided_slice %399 {offsets = [0, 48], sizes = [17, 16], strides = [1, 1]} : vector<17x192xf32> to vector<17x16xf32>
    %458 = arith.truncf %457 : vector<17x16xf32> to vector<17x16xbf16>
    %459 = vector.extract_strided_slice %399 {offsets = [0, 112], sizes = [17, 16], strides = [1, 1]} : vector<17x192xf32> to vector<17x16xf32>
    %460 = arith.truncf %459 : vector<17x16xf32> to vector<17x16xbf16>
    %461 = vector.extract_strided_slice %399 {offsets = [0, 176], sizes = [17, 16], strides = [1, 1]} : vector<17x192xf32> to vector<17x16xf32>
    %462 = arith.truncf %461 : vector<17x16xf32> to vector<17x16xbf16>
    %cst_134 = arith.constant dense<0.000000e+00> : vector<17x17xf32>
    %463 = tpu.matmul %458, %460, %cst_134 {dimension_numbers = #tpu.dot_dimension_numbers<[1], [1], [0], [0], [0, 0, 1, 0], [], []>} : vector<17x16xbf16>, vector<17x16xbf16>, vector<17x17xf32> -> vector<17x17xf32>
    %cst_135 = arith.constant dense<0xFF800000> : vector<17xf32>
    %464 = vector.multi_reduction <maximumf>, %463, %cst_135 [1] : vector<17x17xf32> to vector<17xf32>
    %465 = vector.shape_cast %464 : vector<17xf32> to vector<17x1xf32>
    %466 = vector.broadcast %465 : vector<17x1xf32> to vector<17x17xf32>
    %467 = arith.subf %463, %466 : vector<17x17xf32>
    %468 = math.exp %467 : vector<17x17xf32>
    %cst_136 = arith.constant dense<0.000000e+00> : vector<17xf32>
    %469 = vector.multi_reduction <add>, %468, %cst_136 [1] : vector<17x17xf32> to vector<17xf32>
    %470 = vector.shape_cast %469 : vector<17xf32> to vector<17x1xf32>
    %471 = tpu.reciprocal %470 {approx = true} : vector<17x1xf32> -> vector<17x1xf32>
    %472 = vector.broadcast %471 : vector<17x1xf32> to vector<17x17xf32>
    %473 = arith.mulf %468, %472 : vector<17x17xf32>
    %474 = arith.truncf %473 : vector<17x17xf32> to vector<17x17xbf16>
    %cst_137 = arith.constant dense<0.000000e+00> : vector<17x16xf32>
    %475 = tpu.matmul %474, %462, %cst_137 {dimension_numbers = #tpu.dot_dimension_numbers<[1], [0], [0], [1], [0, 0, 1, 1], [], []>} : vector<17x17xbf16>, vector<17x16xbf16>, vector<17x16xf32> -> vector<17x16xf32>
    %476 = tpu.concatenate %418, %437, %456, %475 in 1 : vector<17x16xf32>, vector<17x16xf32>, vector<17x16xf32>, vector<17x16xf32> -> vector<17x64xf32>
    %477 = arith.truncf %476 : vector<17x64xf32> to vector<17x64xbf16>
    %c0_138 = arith.constant 0 : index
    %c0_139 = arith.constant 0 : index
    %c0_140 = arith.constant 0 : index
    %478 = vector.load %arg5[%c0_138, %c0_139, %c0_140] : memref<2x64x64xbf16, #tpu.memory_space<vmem>>, vector<1x64x64xbf16>
    %479 = vector.shape_cast %478 : vector<1x64x64xbf16> to vector<64x64xbf16>
    %cst_141 = arith.constant dense<0.000000e+00> : vector<17x64xf32>
    %480 = tpu.matmul %477, %479, %cst_141 {dimension_numbers = #tpu.dot_dimension_numbers<[1], [0], [0], [1], [0, 0, 1, 1], [], []>} : vector<17x64xbf16>, vector<64x64xbf16>, vector<17x64xf32> -> vector<17x64xf32>
    %481 = arith.addf %366, %480 : vector<17x64xf32>
    %482 = vector.broadcast %371 : vector<1x64xf32> to vector<17x64xf32>
    %483 = arith.addf %481, %482 : vector<17x64xf32>
    %cst_142 = arith.constant dense<0.000000e+00> : vector<17xf32>
    %484 = vector.multi_reduction <add>, %483, %cst_142 [1] : vector<17x64xf32> to vector<17xf32>
    %485 = vector.shape_cast %484 : vector<17xf32> to vector<17x1xf32>
    %cst_143 = arith.constant 6.400000e+01 : f32
    %486 = vector.broadcast %cst_143 : f32 to vector<17x1xf32>
    %487 = arith.divf %485, %486 : vector<17x1xf32>
    %488 = vector.broadcast %487 : vector<17x1xf32> to vector<17x64xf32>
    %489 = arith.subf %483, %488 : vector<17x64xf32>
    %490 = arith.mulf %489, %489 : vector<17x64xf32>
    %cst_144 = arith.constant dense<0.000000e+00> : vector<17xf32>
    %491 = vector.multi_reduction <add>, %490, %cst_144 [1] : vector<17x64xf32> to vector<17xf32>
    %492 = vector.shape_cast %491 : vector<17xf32> to vector<17x1xf32>
    %cst_145 = arith.constant 6.400000e+01 : f32
    %493 = vector.broadcast %cst_145 : f32 to vector<17x1xf32>
    %494 = arith.divf %492, %493 : vector<17x1xf32>
    %cst_146 = arith.constant 9.99999974E-6 : f32
    %495 = vector.broadcast %cst_146 : f32 to vector<17x1xf32>
    %496 = arith.addf %494, %495 : vector<17x1xf32>
    %497 = math.rsqrt %496 : vector<17x1xf32>
    %498 = vector.broadcast %497 : vector<17x1xf32> to vector<17x64xf32>
    %499 = arith.mulf %489, %498 : vector<17x64xf32>
    %500 = vector.broadcast %372 : vector<1x64xf32> to vector<17x64xf32>
    %501 = arith.mulf %499, %500 : vector<17x64xf32>
    %502 = vector.broadcast %373 : vector<1x64xf32> to vector<17x64xf32>
    %503 = arith.addf %501, %502 : vector<17x64xf32>
    %504 = arith.truncf %503 : vector<17x64xf32> to vector<17x64xbf16>
    %c0_147 = arith.constant 0 : index
    %c0_148 = arith.constant 0 : index
    %c0_149 = arith.constant 0 : index
    %505 = vector.load %arg6[%c0_147, %c0_148, %c0_149] : memref<2x192x128xbf16, #tpu.memory_space<vmem>>, vector<1x192x128xbf16>
    %506 = vector.shape_cast %505 : vector<1x192x128xbf16> to vector<192x128xbf16>
    %507 = vector.extract_strided_slice %506 {offsets = [0, 0], sizes = [64, 128], strides = [1, 1]} : vector<192x128xbf16> to vector<64x128xbf16>
    %508 = vector.extract_strided_slice %506 {offsets = [64, 0], sizes = [128, 64], strides = [1, 1]} : vector<192x128xbf16> to vector<128x64xbf16>
    %cst_150 = arith.constant dense<0.000000e+00> : vector<17x128xf32>
    %509 = tpu.matmul %504, %507, %cst_150 {dimension_numbers = #tpu.dot_dimension_numbers<[1], [0], [0], [1], [0, 0, 1, 1], [], []>} : vector<17x64xbf16>, vector<64x128xbf16>, vector<17x128xf32> -> vector<17x128xf32>
    %510 = vector.broadcast %375 : vector<1x128xf32> to vector<17x128xf32>
    %511 = arith.addf %509, %510 : vector<17x128xf32>
    %cst_151 = arith.constant 5.000000e-01 : f32
    %512 = vector.broadcast %cst_151 : f32 to vector<17x128xf32>
    %513 = arith.mulf %512, %511 : vector<17x128xf32>
    %cst_152 = arith.constant 4.471500e-02 : f32
    %514 = vector.broadcast %cst_152 : f32 to vector<17x128xf32>
    %515 = arith.mulf %514, %511 : vector<17x128xf32>
    %516 = arith.mulf %515, %511 : vector<17x128xf32>
    %517 = arith.mulf %516, %511 : vector<17x128xf32>
    %518 = arith.addf %511, %517 : vector<17x128xf32>
    %cst_153 = arith.constant 0.797884583 : f32
    %519 = vector.broadcast %cst_153 : f32 to vector<17x128xf32>
    %520 = arith.mulf %519, %518 : vector<17x128xf32>
    %521 = math.tanh %520 : vector<17x128xf32>
    %cst_154 = arith.constant 1.000000e+00 : f32
    %522 = vector.broadcast %cst_154 : f32 to vector<17x128xf32>
    %523 = arith.addf %522, %521 : vector<17x128xf32>
    %524 = arith.mulf %513, %523 : vector<17x128xf32>
    %525 = arith.truncf %524 : vector<17x128xf32> to vector<17x128xbf16>
    %cst_155 = arith.constant dense<0.000000e+00> : vector<17x64xf32>
    %526 = tpu.matmul %525, %508, %cst_155 {dimension_numbers = #tpu.dot_dimension_numbers<[1], [0], [0], [1], [0, 0, 1, 1], [], []>} : vector<17x128xbf16>, vector<128x64xbf16>, vector<17x64xf32> -> vector<17x64xf32>
    %527 = arith.addf %483, %526 : vector<17x64xf32>
    %528 = vector.broadcast %374 : vector<1x64xf32> to vector<17x64xf32>
    %529 = arith.addf %527, %528 : vector<17x64xf32>
    %c1_156 = arith.constant 1 : index
    %c0_157 = arith.constant 0 : index
    %c0_158 = arith.constant 0 : index
    %530 = vector.load %arg7[%c1_156, %c0_157, %c0_158] : memref<2x7x128xf32, #tpu.memory_space<vmem>>, vector<1x7x128xf32>
    %531 = vector.shape_cast %530 : vector<1x7x128xf32> to vector<7x128xf32>
    %532 = vector.extract_strided_slice %531 {offsets = [0, 0], sizes = [1, 64], strides = [1, 1]} : vector<7x128xf32> to vector<1x64xf32>
    %533 = vector.extract_strided_slice %531 {offsets = [1, 0], sizes = [1, 64], strides = [1, 1]} : vector<7x128xf32> to vector<1x64xf32>
    %534 = vector.extract_strided_slice %531 {offsets = [2, 0], sizes = [1, 64], strides = [1, 1]} : vector<7x128xf32> to vector<1x64xf32>
    %535 = vector.extract_strided_slice %531 {offsets = [3, 0], sizes = [1, 64], strides = [1, 1]} : vector<7x128xf32> to vector<1x64xf32>
    %536 = vector.extract_strided_slice %531 {offsets = [4, 0], sizes = [1, 64], strides = [1, 1]} : vector<7x128xf32> to vector<1x64xf32>
    %537 = vector.extract_strided_slice %531 {offsets = [5, 0], sizes = [1, 64], strides = [1, 1]} : vector<7x128xf32> to vector<1x64xf32>
    %538 = vector.extract_strided_slice %531 {offsets = [6, 0], sizes = [1, 128], strides = [1, 1]} : vector<7x128xf32> to vector<1x128xf32>
    %cst_159 = arith.constant dense<0.000000e+00> : vector<17xf32>
    %539 = vector.multi_reduction <add>, %529, %cst_159 [1] : vector<17x64xf32> to vector<17xf32>
    %540 = vector.shape_cast %539 : vector<17xf32> to vector<17x1xf32>
    %cst_160 = arith.constant 6.400000e+01 : f32
    %541 = vector.broadcast %cst_160 : f32 to vector<17x1xf32>
    %542 = arith.divf %540, %541 : vector<17x1xf32>
    %543 = vector.broadcast %542 : vector<17x1xf32> to vector<17x64xf32>
    %544 = arith.subf %529, %543 : vector<17x64xf32>
    %545 = arith.mulf %544, %544 : vector<17x64xf32>
    %cst_161 = arith.constant dense<0.000000e+00> : vector<17xf32>
    %546 = vector.multi_reduction <add>, %545, %cst_161 [1] : vector<17x64xf32> to vector<17xf32>
    %547 = vector.shape_cast %546 : vector<17xf32> to vector<17x1xf32>
    %cst_162 = arith.constant 6.400000e+01 : f32
    %548 = vector.broadcast %cst_162 : f32 to vector<17x1xf32>
    %549 = arith.divf %547, %548 : vector<17x1xf32>
    %cst_163 = arith.constant 9.99999974E-6 : f32
    %550 = vector.broadcast %cst_163 : f32 to vector<17x1xf32>
    %551 = arith.addf %549, %550 : vector<17x1xf32>
    %552 = math.rsqrt %551 : vector<17x1xf32>
    %553 = vector.broadcast %552 : vector<17x1xf32> to vector<17x64xf32>
    %554 = arith.mulf %544, %553 : vector<17x64xf32>
    %555 = vector.broadcast %532 : vector<1x64xf32> to vector<17x64xf32>
    %556 = arith.mulf %554, %555 : vector<17x64xf32>
    %557 = vector.broadcast %533 : vector<1x64xf32> to vector<17x64xf32>
    %558 = arith.addf %556, %557 : vector<17x64xf32>
    %559 = arith.truncf %558 : vector<17x64xf32> to vector<17x64xbf16>
    %c1_164 = arith.constant 1 : index
    %c0_165 = arith.constant 0 : index
    %c0_166 = arith.constant 0 : index
    %560 = vector.load %arg4[%c1_164, %c0_165, %c0_166] : memref<2x64x192xbf16, #tpu.memory_space<vmem>>, vector<1x64x192xbf16>
    %561 = vector.shape_cast %560 : vector<1x64x192xbf16> to vector<64x192xbf16>
    %cst_167 = arith.constant dense<0.000000e+00> : vector<17x192xf32>
    %562 = tpu.matmul %559, %561, %cst_167 {dimension_numbers = #tpu.dot_dimension_numbers<[1], [0], [0], [1], [0, 0, 1, 1], [], []>} : vector<17x64xbf16>, vector<64x192xbf16>, vector<17x192xf32> -> vector<17x192xf32>
    %563 = vector.extract_strided_slice %562 {offsets = [0, 0], sizes = [17, 16], strides = [1, 1]} : vector<17x192xf32> to vector<17x16xf32>
    %564 = arith.truncf %563 : vector<17x16xf32> to vector<17x16xbf16>
    %565 = vector.extract_strided_slice %562 {offsets = [0, 64], sizes = [17, 16], strides = [1, 1]} : vector<17x192xf32> to vector<17x16xf32>
    %566 = arith.truncf %565 : vector<17x16xf32> to vector<17x16xbf16>
    %567 = vector.extract_strided_slice %562 {offsets = [0, 128], sizes = [17, 16], strides = [1, 1]} : vector<17x192xf32> to vector<17x16xf32>
    %568 = arith.truncf %567 : vector<17x16xf32> to vector<17x16xbf16>
    %cst_168 = arith.constant dense<0.000000e+00> : vector<17x17xf32>
    %569 = tpu.matmul %564, %566, %cst_168 {dimension_numbers = #tpu.dot_dimension_numbers<[1], [1], [0], [0], [0, 0, 1, 0], [], []>} : vector<17x16xbf16>, vector<17x16xbf16>, vector<17x17xf32> -> vector<17x17xf32>
    %cst_169 = arith.constant dense<0xFF800000> : vector<17xf32>
    %570 = vector.multi_reduction <maximumf>, %569, %cst_169 [1] : vector<17x17xf32> to vector<17xf32>
    %571 = vector.shape_cast %570 : vector<17xf32> to vector<17x1xf32>
    %572 = vector.broadcast %571 : vector<17x1xf32> to vector<17x17xf32>
    %573 = arith.subf %569, %572 : vector<17x17xf32>
    %574 = math.exp %573 : vector<17x17xf32>
    %cst_170 = arith.constant dense<0.000000e+00> : vector<17xf32>
    %575 = vector.multi_reduction <add>, %574, %cst_170 [1] : vector<17x17xf32> to vector<17xf32>
    %576 = vector.shape_cast %575 : vector<17xf32> to vector<17x1xf32>
    %577 = tpu.reciprocal %576 {approx = true} : vector<17x1xf32> -> vector<17x1xf32>
    %578 = vector.broadcast %577 : vector<17x1xf32> to vector<17x17xf32>
    %579 = arith.mulf %574, %578 : vector<17x17xf32>
    %580 = arith.truncf %579 : vector<17x17xf32> to vector<17x17xbf16>
    %cst_171 = arith.constant dense<0.000000e+00> : vector<17x16xf32>
    %581 = tpu.matmul %580, %568, %cst_171 {dimension_numbers = #tpu.dot_dimension_numbers<[1], [0], [0], [1], [0, 0, 1, 1], [], []>} : vector<17x17xbf16>, vector<17x16xbf16>, vector<17x16xf32> -> vector<17x16xf32>
    %582 = vector.extract_strided_slice %562 {offsets = [0, 16], sizes = [17, 16], strides = [1, 1]} : vector<17x192xf32> to vector<17x16xf32>
    %583 = arith.truncf %582 : vector<17x16xf32> to vector<17x16xbf16>
    %584 = vector.extract_strided_slice %562 {offsets = [0, 80], sizes = [17, 16], strides = [1, 1]} : vector<17x192xf32> to vector<17x16xf32>
    %585 = arith.truncf %584 : vector<17x16xf32> to vector<17x16xbf16>
    %586 = vector.extract_strided_slice %562 {offsets = [0, 144], sizes = [17, 16], strides = [1, 1]} : vector<17x192xf32> to vector<17x16xf32>
    %587 = arith.truncf %586 : vector<17x16xf32> to vector<17x16xbf16>
    %cst_172 = arith.constant dense<0.000000e+00> : vector<17x17xf32>
    %588 = tpu.matmul %583, %585, %cst_172 {dimension_numbers = #tpu.dot_dimension_numbers<[1], [1], [0], [0], [0, 0, 1, 0], [], []>} : vector<17x16xbf16>, vector<17x16xbf16>, vector<17x17xf32> -> vector<17x17xf32>
    %cst_173 = arith.constant dense<0xFF800000> : vector<17xf32>
    %589 = vector.multi_reduction <maximumf>, %588, %cst_173 [1] : vector<17x17xf32> to vector<17xf32>
    %590 = vector.shape_cast %589 : vector<17xf32> to vector<17x1xf32>
    %591 = vector.broadcast %590 : vector<17x1xf32> to vector<17x17xf32>
    %592 = arith.subf %588, %591 : vector<17x17xf32>
    %593 = math.exp %592 : vector<17x17xf32>
    %cst_174 = arith.constant dense<0.000000e+00> : vector<17xf32>
    %594 = vector.multi_reduction <add>, %593, %cst_174 [1] : vector<17x17xf32> to vector<17xf32>
    %595 = vector.shape_cast %594 : vector<17xf32> to vector<17x1xf32>
    %596 = tpu.reciprocal %595 {approx = true} : vector<17x1xf32> -> vector<17x1xf32>
    %597 = vector.broadcast %596 : vector<17x1xf32> to vector<17x17xf32>
    %598 = arith.mulf %593, %597 : vector<17x17xf32>
    %599 = arith.truncf %598 : vector<17x17xf32> to vector<17x17xbf16>
    %cst_175 = arith.constant dense<0.000000e+00> : vector<17x16xf32>
    %600 = tpu.matmul %599, %587, %cst_175 {dimension_numbers = #tpu.dot_dimension_numbers<[1], [0], [0], [1], [0, 0, 1, 1], [], []>} : vector<17x17xbf16>, vector<17x16xbf16>, vector<17x16xf32> -> vector<17x16xf32>
    %601 = vector.extract_strided_slice %562 {offsets = [0, 32], sizes = [17, 16], strides = [1, 1]} : vector<17x192xf32> to vector<17x16xf32>
    %602 = arith.truncf %601 : vector<17x16xf32> to vector<17x16xbf16>
    %603 = vector.extract_strided_slice %562 {offsets = [0, 96], sizes = [17, 16], strides = [1, 1]} : vector<17x192xf32> to vector<17x16xf32>
    %604 = arith.truncf %603 : vector<17x16xf32> to vector<17x16xbf16>
    %605 = vector.extract_strided_slice %562 {offsets = [0, 160], sizes = [17, 16], strides = [1, 1]} : vector<17x192xf32> to vector<17x16xf32>
    %606 = arith.truncf %605 : vector<17x16xf32> to vector<17x16xbf16>
    %cst_176 = arith.constant dense<0.000000e+00> : vector<17x17xf32>
    %607 = tpu.matmul %602, %604, %cst_176 {dimension_numbers = #tpu.dot_dimension_numbers<[1], [1], [0], [0], [0, 0, 1, 0], [], []>} : vector<17x16xbf16>, vector<17x16xbf16>, vector<17x17xf32> -> vector<17x17xf32>
    %cst_177 = arith.constant dense<0xFF800000> : vector<17xf32>
    %608 = vector.multi_reduction <maximumf>, %607, %cst_177 [1] : vector<17x17xf32> to vector<17xf32>
    %609 = vector.shape_cast %608 : vector<17xf32> to vector<17x1xf32>
    %610 = vector.broadcast %609 : vector<17x1xf32> to vector<17x17xf32>
    %611 = arith.subf %607, %610 : vector<17x17xf32>
    %612 = math.exp %611 : vector<17x17xf32>
    %cst_178 = arith.constant dense<0.000000e+00> : vector<17xf32>
    %613 = vector.multi_reduction <add>, %612, %cst_178 [1] : vector<17x17xf32> to vector<17xf32>
    %614 = vector.shape_cast %613 : vector<17xf32> to vector<17x1xf32>
    %615 = tpu.reciprocal %614 {approx = true} : vector<17x1xf32> -> vector<17x1xf32>
    %616 = vector.broadcast %615 : vector<17x1xf32> to vector<17x17xf32>
    %617 = arith.mulf %612, %616 : vector<17x17xf32>
    %618 = arith.truncf %617 : vector<17x17xf32> to vector<17x17xbf16>
    %cst_179 = arith.constant dense<0.000000e+00> : vector<17x16xf32>
    %619 = tpu.matmul %618, %606, %cst_179 {dimension_numbers = #tpu.dot_dimension_numbers<[1], [0], [0], [1], [0, 0, 1, 1], [], []>} : vector<17x17xbf16>, vector<17x16xbf16>, vector<17x16xf32> -> vector<17x16xf32>
    %620 = vector.extract_strided_slice %562 {offsets = [0, 48], sizes = [17, 16], strides = [1, 1]} : vector<17x192xf32> to vector<17x16xf32>
    %621 = arith.truncf %620 : vector<17x16xf32> to vector<17x16xbf16>
    %622 = vector.extract_strided_slice %562 {offsets = [0, 112], sizes = [17, 16], strides = [1, 1]} : vector<17x192xf32> to vector<17x16xf32>
    %623 = arith.truncf %622 : vector<17x16xf32> to vector<17x16xbf16>
    %624 = vector.extract_strided_slice %562 {offsets = [0, 176], sizes = [17, 16], strides = [1, 1]} : vector<17x192xf32> to vector<17x16xf32>
    %625 = arith.truncf %624 : vector<17x16xf32> to vector<17x16xbf16>
    %cst_180 = arith.constant dense<0.000000e+00> : vector<17x17xf32>
    %626 = tpu.matmul %621, %623, %cst_180 {dimension_numbers = #tpu.dot_dimension_numbers<[1], [1], [0], [0], [0, 0, 1, 0], [], []>} : vector<17x16xbf16>, vector<17x16xbf16>, vector<17x17xf32> -> vector<17x17xf32>
    %cst_181 = arith.constant dense<0xFF800000> : vector<17xf32>
    %627 = vector.multi_reduction <maximumf>, %626, %cst_181 [1] : vector<17x17xf32> to vector<17xf32>
    %628 = vector.shape_cast %627 : vector<17xf32> to vector<17x1xf32>
    %629 = vector.broadcast %628 : vector<17x1xf32> to vector<17x17xf32>
    %630 = arith.subf %626, %629 : vector<17x17xf32>
    %631 = math.exp %630 : vector<17x17xf32>
    %cst_182 = arith.constant dense<0.000000e+00> : vector<17xf32>
    %632 = vector.multi_reduction <add>, %631, %cst_182 [1] : vector<17x17xf32> to vector<17xf32>
    %633 = vector.shape_cast %632 : vector<17xf32> to vector<17x1xf32>
    %634 = tpu.reciprocal %633 {approx = true} : vector<17x1xf32> -> vector<17x1xf32>
    %635 = vector.broadcast %634 : vector<17x1xf32> to vector<17x17xf32>
    %636 = arith.mulf %631, %635 : vector<17x17xf32>
    %637 = arith.truncf %636 : vector<17x17xf32> to vector<17x17xbf16>
    %cst_183 = arith.constant dense<0.000000e+00> : vector<17x16xf32>
    %638 = tpu.matmul %637, %625, %cst_183 {dimension_numbers = #tpu.dot_dimension_numbers<[1], [0], [0], [1], [0, 0, 1, 1], [], []>} : vector<17x17xbf16>, vector<17x16xbf16>, vector<17x16xf32> -> vector<17x16xf32>
    %639 = tpu.concatenate %581, %600, %619, %638 in 1 : vector<17x16xf32>, vector<17x16xf32>, vector<17x16xf32>, vector<17x16xf32> -> vector<17x64xf32>
    %640 = arith.truncf %639 : vector<17x64xf32> to vector<17x64xbf16>
    %c1_184 = arith.constant 1 : index
    %c0_185 = arith.constant 0 : index
    %c0_186 = arith.constant 0 : index
    %641 = vector.load %arg5[%c1_184, %c0_185, %c0_186] : memref<2x64x64xbf16, #tpu.memory_space<vmem>>, vector<1x64x64xbf16>
    %642 = vector.shape_cast %641 : vector<1x64x64xbf16> to vector<64x64xbf16>
    %cst_187 = arith.constant dense<0.000000e+00> : vector<17x64xf32>
    %643 = tpu.matmul %640, %642, %cst_187 {dimension_numbers = #tpu.dot_dimension_numbers<[1], [0], [0], [1], [0, 0, 1, 1], [], []>} : vector<17x64xbf16>, vector<64x64xbf16>, vector<17x64xf32> -> vector<17x64xf32>
    %644 = arith.addf %529, %643 : vector<17x64xf32>
    %645 = vector.broadcast %534 : vector<1x64xf32> to vector<17x64xf32>
    %646 = arith.addf %644, %645 : vector<17x64xf32>
    %cst_188 = arith.constant dense<0.000000e+00> : vector<17xf32>
    %647 = vector.multi_reduction <add>, %646, %cst_188 [1] : vector<17x64xf32> to vector<17xf32>
    %648 = vector.shape_cast %647 : vector<17xf32> to vector<17x1xf32>
    %cst_189 = arith.constant 6.400000e+01 : f32
    %649 = vector.broadcast %cst_189 : f32 to vector<17x1xf32>
    %650 = arith.divf %648, %649 : vector<17x1xf32>
    %651 = vector.broadcast %650 : vector<17x1xf32> to vector<17x64xf32>
    %652 = arith.subf %646, %651 : vector<17x64xf32>
    %653 = arith.mulf %652, %652 : vector<17x64xf32>
    %cst_190 = arith.constant dense<0.000000e+00> : vector<17xf32>
    %654 = vector.multi_reduction <add>, %653, %cst_190 [1] : vector<17x64xf32> to vector<17xf32>
    %655 = vector.shape_cast %654 : vector<17xf32> to vector<17x1xf32>
    %cst_191 = arith.constant 6.400000e+01 : f32
    %656 = vector.broadcast %cst_191 : f32 to vector<17x1xf32>
    %657 = arith.divf %655, %656 : vector<17x1xf32>
    %cst_192 = arith.constant 9.99999974E-6 : f32
    %658 = vector.broadcast %cst_192 : f32 to vector<17x1xf32>
    %659 = arith.addf %657, %658 : vector<17x1xf32>
    %660 = math.rsqrt %659 : vector<17x1xf32>
    %661 = vector.broadcast %660 : vector<17x1xf32> to vector<17x64xf32>
    %662 = arith.mulf %652, %661 : vector<17x64xf32>
    %663 = vector.broadcast %535 : vector<1x64xf32> to vector<17x64xf32>
    %664 = arith.mulf %662, %663 : vector<17x64xf32>
    %665 = vector.broadcast %536 : vector<1x64xf32> to vector<17x64xf32>
    %666 = arith.addf %664, %665 : vector<17x64xf32>
    %667 = arith.truncf %666 : vector<17x64xf32> to vector<17x64xbf16>
    %c1_193 = arith.constant 1 : index
    %c0_194 = arith.constant 0 : index
    %c0_195 = arith.constant 0 : index
    %668 = vector.load %arg6[%c1_193, %c0_194, %c0_195] : memref<2x192x128xbf16, #tpu.memory_space<vmem>>, vector<1x192x128xbf16>
    %669 = vector.shape_cast %668 : vector<1x192x128xbf16> to vector<192x128xbf16>
    %670 = vector.extract_strided_slice %669 {offsets = [0, 0], sizes = [64, 128], strides = [1, 1]} : vector<192x128xbf16> to vector<64x128xbf16>
    %671 = vector.extract_strided_slice %669 {offsets = [64, 0], sizes = [128, 64], strides = [1, 1]} : vector<192x128xbf16> to vector<128x64xbf16>
    %cst_196 = arith.constant dense<0.000000e+00> : vector<17x128xf32>
    %672 = tpu.matmul %667, %670, %cst_196 {dimension_numbers = #tpu.dot_dimension_numbers<[1], [0], [0], [1], [0, 0, 1, 1], [], []>} : vector<17x64xbf16>, vector<64x128xbf16>, vector<17x128xf32> -> vector<17x128xf32>
    %673 = vector.broadcast %538 : vector<1x128xf32> to vector<17x128xf32>
    %674 = arith.addf %672, %673 : vector<17x128xf32>
    %cst_197 = arith.constant 5.000000e-01 : f32
    %675 = vector.broadcast %cst_197 : f32 to vector<17x128xf32>
    %676 = arith.mulf %675, %674 : vector<17x128xf32>
    %cst_198 = arith.constant 4.471500e-02 : f32
    %677 = vector.broadcast %cst_198 : f32 to vector<17x128xf32>
    %678 = arith.mulf %677, %674 : vector<17x128xf32>
    %679 = arith.mulf %678, %674 : vector<17x128xf32>
    %680 = arith.mulf %679, %674 : vector<17x128xf32>
    %681 = arith.addf %674, %680 : vector<17x128xf32>
    %cst_199 = arith.constant 0.797884583 : f32
    %682 = vector.broadcast %cst_199 : f32 to vector<17x128xf32>
    %683 = arith.mulf %682, %681 : vector<17x128xf32>
    %684 = math.tanh %683 : vector<17x128xf32>
    %cst_200 = arith.constant 1.000000e+00 : f32
    %685 = vector.broadcast %cst_200 : f32 to vector<17x128xf32>
    %686 = arith.addf %685, %684 : vector<17x128xf32>
    %687 = arith.mulf %676, %686 : vector<17x128xf32>
    %688 = arith.truncf %687 : vector<17x128xf32> to vector<17x128xbf16>
    %cst_201 = arith.constant dense<0.000000e+00> : vector<17x64xf32>
    %689 = tpu.matmul %688, %671, %cst_201 {dimension_numbers = #tpu.dot_dimension_numbers<[1], [0], [0], [1], [0, 0, 1, 1], [], []>} : vector<17x128xbf16>, vector<128x64xbf16>, vector<17x64xf32> -> vector<17x64xf32>
    %690 = arith.addf %646, %689 : vector<17x64xf32>
    %691 = vector.broadcast %537 : vector<1x64xf32> to vector<17x64xf32>
    %692 = arith.addf %690, %691 : vector<17x64xf32>
    %693 = vector.extract_strided_slice %692 {offsets = [0, 0], sizes = [1, 64], strides = [1, 1]} : vector<17x64xf32> to vector<1x64xf32>
    %cst_202 = arith.constant dense<0.000000e+00> : vector<1xf32>
    %694 = vector.multi_reduction <add>, %693, %cst_202 [1] : vector<1x64xf32> to vector<1xf32>
    %695 = vector.shape_cast %694 : vector<1xf32> to vector<1x1xf32>
    %cst_203 = arith.constant 6.400000e+01 : f32
    %696 = vector.broadcast %cst_203 : f32 to vector<1x1xf32>
    %697 = arith.divf %695, %696 : vector<1x1xf32>
    %698 = vector.broadcast %697 : vector<1x1xf32> to vector<1x64xf32>
    %699 = arith.subf %693, %698 : vector<1x64xf32>
    %700 = arith.mulf %699, %699 : vector<1x64xf32>
    %cst_204 = arith.constant dense<0.000000e+00> : vector<1xf32>
    %701 = vector.multi_reduction <add>, %700, %cst_204 [1] : vector<1x64xf32> to vector<1xf32>
    %702 = vector.shape_cast %701 : vector<1xf32> to vector<1x1xf32>
    %cst_205 = arith.constant 6.400000e+01 : f32
    %703 = vector.broadcast %cst_205 : f32 to vector<1x1xf32>
    %704 = arith.divf %702, %703 : vector<1x1xf32>
    %cst_206 = arith.constant 9.99999974E-6 : f32
    %705 = vector.broadcast %cst_206 : f32 to vector<1x1xf32>
    %706 = arith.addf %704, %705 : vector<1x1xf32>
    %707 = math.rsqrt %706 : vector<1x1xf32>
    %708 = vector.broadcast %707 : vector<1x1xf32> to vector<1x64xf32>
    %709 = arith.mulf %699, %708 : vector<1x64xf32>
    %710 = arith.mulf %709, %5 : vector<1x64xf32>
    %711 = arith.addf %710, %6 : vector<1x64xf32>
    %712 = arith.truncf %711 : vector<1x64xf32> to vector<1x64xbf16>
    %cst_207 = arith.constant dense<0.000000e+00> : vector<1x128xf32>
    %713 = tpu.matmul %712, %2, %cst_207 {dimension_numbers = #tpu.dot_dimension_numbers<[1], [0], [0], [1], [0, 0, 1, 1], [], []>} : vector<1x64xbf16>, vector<64x128xbf16>, vector<1x128xf32> -> vector<1x128xf32>
    %714 = arith.addf %713, %7 : vector<1x128xf32>
    %c1_208 = arith.constant 1 : index
    %c0_209 = arith.constant 0 : index
    %c0_210 = arith.constant 0 : index
    %715 = vector.load %arg8[%c1_208, %c0_209, %c0_210] : memref<2x1x128xf32, #tpu.memory_space<vmem>>, vector<1x1x128xf32>
    %716 = vector.shape_cast %715 : vector<1x1x128xf32> to vector<1x128xf32>
    %717 = vector.shape_cast %714 : vector<1x128xf32> to vector<1x1x128xf32>
    tpu.vector_store %arg8[%c1_208, %c0_209, %c0_210], %717 {strides = array<i32>} : memref<2x1x128xf32, #tpu.memory_space<vmem>>, vector<1x1x128xf32>,
    return
  }
  func.func @transform_0(%arg0: i32) -> (i32, i32, i32) {
    %c0_i32 = arith.constant 0 : i32
    %c0_i32_0 = arith.constant 0 : i32
    %c0_i32_1 = arith.constant 0 : i32
    return %arg0, %c0_i32, %c0_i32_0 : i32, i32, i32
  }
  func.func @transform_1(%arg0: i32) -> (i32, i32) {
    %c0_i32 = arith.constant 0 : i32
    %c0_i32_0 = arith.constant 0 : i32
    %c0_i32_1 = arith.constant 0 : i32
    return %c0_i32, %c0_i32_0 : i32, i32
  }
  func.func @transform_2(%arg0: i32) -> (i32, i32) {
    %c0_i32 = arith.constant 0 : i32
    %c0_i32_0 = arith.constant 0 : i32
    %c0_i32_1 = arith.constant 0 : i32
    return %c0_i32, %c0_i32_0 : i32, i32
  }
  func.func @transform_3(%arg0: i32) -> (i32, i32, i32) {
    %c0_i32 = arith.constant 0 : i32
    %c0_i32_0 = arith.constant 0 : i32
    %c0_i32_1 = arith.constant 0 : i32
    %c0_i32_2 = arith.constant 0 : i32
    return %c0_i32, %c0_i32_0, %c0_i32_1 : i32, i32, i32
  }
  func.func @transform_4(%arg0: i32) -> (i32, i32, i32) {
    %c0_i32 = arith.constant 0 : i32
    %c0_i32_0 = arith.constant 0 : i32
    %c0_i32_1 = arith.constant 0 : i32
    %c0_i32_2 = arith.constant 0 : i32
    return %c0_i32, %c0_i32_0, %c0_i32_1 : i32, i32, i32
  }
  func.func @transform_5(%arg0: i32) -> (i32, i32, i32) {
    %c0_i32 = arith.constant 0 : i32
    %c0_i32_0 = arith.constant 0 : i32
    %c0_i32_1 = arith.constant 0 : i32
    %c0_i32_2 = arith.constant 0 : i32
    return %c0_i32, %c0_i32_0, %c0_i32_1 : i32, i32, i32
  }
  func.func @transform_6(%arg0: i32) -> (i32, i32, i32) {
    %c0_i32 = arith.constant 0 : i32
    %c0_i32_0 = arith.constant 0 : i32
    %c0_i32_1 = arith.constant 0 : i32
    %c0_i32_2 = arith.constant 0 : i32
    return %c0_i32, %c0_i32_0, %c0_i32_1 : i32, i32, i32
  }
  func.func @transform_7(%arg0: i32) -> (i32, i32, i32) {
    %c0_i32 = arith.constant 0 : i32
    %c0_i32_0 = arith.constant 0 : i32
    %c0_i32_1 = arith.constant 0 : i32
    return %arg0, %c0_i32, %c0_i32_0 : i32, i32, i32
  }
}

</mosaic_0001>

<bundles_post_ra>
// kernel: vit_forward.1
= control target key start
LH: loop header
LB: loop body
LE: loop exit
PB: predicated region body
PF: predicated region fallthrough
CT: control target
= control target key end

     0   :  { %s6763_s0 = inlined_call_operand.vmem [shape: bf16[2,17,48], index: 0, kind: input, shape index: {}]   ;;  %s6764_s1 = inlined_call_operand.vmem [shape: bf16[112,128], index: 1, kind: input, shape index: {}]   ;;  %s6765_s2 = inlined_call_operand.vmem [shape: f32[20,128], index: 2, kind: input, shape index: {}]   ;;  %s6766_s3 = inlined_call_operand.vmem [shape: bf16[2,64,192], index: 3, kind: input, shape index: {}]   ;;  %s6767_s4 = inlined_call_operand.vmem [shape: bf16[2,64,64], index: 4, kind: input, shape index: {}]   ;;  %s6768_s5 = inlined_call_operand.vmem [shape: bf16[2,192,128], index: 5, kind: input, shape index: {}]   ;;  %s6769_s6 = inlined_call_operand.vmem [shape: f32[2,7,128], index: 6, kind: input, shape index: {}]   ;;  %s6770_s7 = inlined_call_operand.hbm [shape: f32[2,1,128], index: 7, kind: output, shape index: {}]  }
   0x1   :  { %v4674_v0 = vld [vmem:[%s6764_s1 + $0x10] sm:$0xff]  ;;  %v4673_v1 = vld [vmem:[%s6764_s1 + $0x8] sm:$0xff] }
   0x2   :  { %86 = vmatpush.bf16.msra.mxu0 %v4674_v0 }
   0x3   :  { %12 = vsyncpa [#allocation3], 0  ;;  %v4672_v2 = vld [vmem:[%s6764_s1] sm:$0xff]  ;;  %vm74_vm0 = vcmask 392192   ;;  %v47_v4 = vld [vmem:[%s6763_s0 + $0x8] sm:$0x1] }
   0x4   :  { %v4679_v3 = vld [vmem:[%s6763_s0] sm:$0xff]  ;;  %v53_v5 = vunpack.c.l.b16 %v47_v4  ;;  %vm100_vm1 = vcmask 523264   ;;  %v43_v11 = vld [vmem:[%s6765_s2 + $0x8] sm:$0xff]  ;;  %v44_v15 = vld [vmem:[%s6765_s2 + $0x10] sm:$0xf]  ;;  %vm107_vm2 = vcmask 516096  }
   0x5   :  { %v42_v7 = vld [vmem:[%s6765_s2] sm:$0xff]  ;;  %v5156_v20 = vmov 64.0   ;;  %v4109_v42 = vld [vmem:[%s6766_s3 + $0x30] sm:$0xf]  ;;  %v4687_v43 = vld [vmem:[%s6766_s3 + $0x34] sm:$0xf0] }
   0x6   :  { %87 = vmatpush.bf16.msra.mxu0 %v4673_v1  ;;  %v55_v6 = vpack.c.b16 %v53_v5, %v53_v5  ;;  %4848 = vrcp.f32 %v5156_v20  ;;  %v4686_v44 = vld [vmem:[%s6766_s3 + $0x34] sm:$0xf]  ;;  %v4110_v45 = vor.u32 %v4687_v43, %v4109_v42  ;;  %v4111_v46 = vld [vmem:[%s6766_s3 + $0x38] sm:$0xf0]  ;;  %v4101_v48 = vld [vmem:[%s6766_s3 + $0x20] sm:$0xf] }
   0x7   :  { %v4114_v47 = vor.u32 %v4686_v44, %v4111_v46  ;;  %v4685_v49 = vld [vmem:[%s6766_s3 + $0x24] sm:$0xf0]  ;;  %v4684_v50 = vld [vmem:[%s6766_s3 + $0x24] sm:$0xf]  ;;  %v4103_v52 = vld [vmem:[%s6766_s3 + $0x28] sm:$0xf0] }
   0x8   :  { %243 = vmatpush.bf16.msra.mxu1 %v4110_v45  ;;  %v4102_v51 = vor.u32 %v4685_v49, %v4101_v48  ;;  %v4106_v53 = vor.u32 %v4684_v50, %v4103_v52  ;;  %v4093_v54 = vld [vmem:[%s6766_s3 + $0x10] sm:$0xf]  ;;  %v4683_v55 = vld [vmem:[%s6766_s3 + $0x14] sm:$0xf0]  ;;  %v4682_v56 = vld [vmem:[%s6766_s3 + $0x14] sm:$0xf] }
   0x9   :  { %261 = vmatpush.bf16.msra.mxu2 %v4114_v47  ;;  %v4094_v57 = vor.u32 %v4683_v55, %v4093_v54  ;;  %v4095_v58 = vld [vmem:[%s6766_s3 + $0x18] sm:$0xf0]  ;;  %v4085_v62 = vld [vmem:[%s6766_s3] sm:$0xf]  ;;  %v4681_v63 = vld [vmem:[%s6766_s3 + $0x4] sm:$0xf0] }
   0xa   :  { %88 = vmatpush.bf16.msra.mxu0 %v4672_v2  ;;  %v4098_v59 = vor.u32 %v4682_v56, %v4095_v58  ;;  %v4680_v0 = vld [vmem:[%s6766_s3 + $0x4] sm:$0xf]  ;;  %v4086_v1 = vor.u32 %v4681_v63, %v4085_v62  ;;  %v4087_v2 = vld [vmem:[%s6766_s3 + $0x8] sm:$0xf0]  ;;  %s5157_s28 = smov 64   ;;  %s5158_s29 = smov 112  }
   0xb   :  { %v4090_v4 = vor.u32 %v4680_v0, %v4087_v2  ;;  %s5159_s30 = smov 48   ;;  %vm359_vm13 = vcmask 1040384   ;;  %v5160_v58 = vmov 0   ;;  %s5161_s8 = smov 16   ;;  %vm285_vm14 = vcmask 130048  }
   0xc   :  { %v4849_v21 = vpop.eup %4848  ;;  %244 = vmatpush.bf16.msra.mxu1 %v4102_v51  ;;  %s5162_s9 = smov 32   ;;  %s5163_s10 = smov 96   ;;  %vm316_vm15 = vcmask 138240  }
   0xd   :  { %4081 = vmatmul.msk.bf16.vlgmr.msra.gmra.mxu0 %vm74_vm0, %v4679_v3  ;;  %v112_v22 = vmul.f32 64.0, %v4849_v21  ;;  %vm116_vm3 = vweird.f32 %v4849_v21  ;;  %262 = vmatpush.bf16.msra.mxu2 %v4106_v53  ;;  %s5164_s11 = smov 80   ;;  %s4053_s24 = sshll.u32 %s6770_s7, 4  ;;  %s4054_s24 = int_to_ptr.hbm [resolvable:$true] %s4053_s24 }
   0xf   :  { %v113_v23 = vsub.f32 1.0, %v112_v22 }
  0x10   :  { %245 = vmatpush.bf16.msra.mxu1 %v4094_v57 }
  0x11   :  { %v114_v24 = vmul.f32 %v4849_v21, %v113_v23  ;;  %263 = vmatpush.bf16.msra.mxu2 %v4098_v59  ;;  %v5337_v59 = vsel %vm359_vm13, 65535, %v5160_v58 }
  0x13   :  { %v115_v25 = vadd.f32 %v4849_v21, %v114_v24 }
  0x14   :  { %246 = vmatpush.bf16.msra.mxu1 %v4086_v1 }
  0x15   :  { %v5245_v26 = vsel %vm116_vm3, %v4849_v21, %v115_v25  ;;  %264 = vmatpush.bf16.msra.mxu2 %v4090_v4  ;;  %v5322_v25 = vld [vmem:[%s6769_s6] sm:$0x7f]  ;;  %vm323_vm3 = vcmask 131072  }
  0x1d   :  { %4082 = vmatmul.msk.bf16.gmra.mxu0 %vm74_vm0, %v55_v6 }
  0x8a   :  { %v90_v8 = vpop.f32.mrf.mxu0 }
  0x8b   :  { %v5227_v9 = vadd.f32 %v90_v8, %v42_v7 }
  0x8d   :  { %v101_v10 = vsel %vm100_vm1, %v5227_v9, 0.0 }
  0x8e   :  { %102 = vadd.xlane.f32.xlu0 %v101_v10 }
  0x92   :  { %v92_v12 = vpop.f32.mrf.mxu0 }
  0x93   :  { %v5234_v13 = vadd.f32 %v92_v12, %v43_v11 }
  0x95   :  { %v104_v14 = vsel %vm100_vm1, %v5234_v13, 0.0 }
  0x96   :  { %105 = vadd.xlane.f32.xlu0 %v104_v14 }
  0x9a   :  { %v95_v16 = vpop.f32.mrf.mxu0 }
  0x9b   :  { %v5241_v17 = vadd.f32 %v95_v16, %v44_v15 }
  0x9d   :  { %v108_v18 = vsel %vm107_vm2, %v5241_v17, 0.0 }
  0x9e   :  { %109 = vadd.xlane.f32.xlu1 %v108_v18 }
  0xa2   :  { %v97_v19 = vpop.f32.mrf.mxu0 }
 0x101   :  { %v103_v27 = vpop.xlane.xlu0 %102 }
 0x102   :  { %v118_v28 = vmul.f32 %v5245_v26, %v103_v27 }
 0x104   :  { %v5249_v29 = vsub.f32 %v5227_v9, %v118_v28 }
 0x106   :  { %v124_v30 = vmul.f32 %v5249_v29, %v5249_v29 }
 0x108   :  { %v127_v31 = vsel %vm100_vm1, %v124_v30, 0.0 }
 0x109   :  { %128 = vadd.xlane.f32.xlu1 %v127_v31  ;;  %v106_v32 = vpop.xlane.xlu0 %105  ;;  %v175_v31 = vperm.slane %v5322_v25, 0 }
 0x10a   :  { %v119_v33 = vmul.f32 %v5245_v26, %v106_v32 }
 0x10c   :  { %v5256_v34 = vsub.f32 %v5234_v13, %v119_v33 }
 0x10e   :  { %v125_v35 = vmul.f32 %v5256_v34, %v5256_v34 }
 0x110   :  { %v130_v36 = vsel %vm100_vm1, %v125_v35, 0.0 }
 0x111   :  { %v110_v37 = vpop.xlane.xlu1 %109  ;;  %131 = vadd.xlane.f32.xlu2 %v130_v36 }
 0x112   :  { %v120_v38 = vmul.f32 %v5245_v26, %v110_v37 }
 0x114   :  { %v5263_v39 = vsub.f32 %v5241_v17, %v120_v38 }
 0x116   :  { %v126_v40 = vmul.f32 %v5263_v39, %v5263_v39 }
 0x118   :  { %v133_v41 = vsel %vm107_vm2, %v126_v40, 0.0  ;;  %v179_v40 = vperm.slane %v5322_v25, 1 }
 0x119   :  { %134 = vadd.xlane.f32.xlu2 %v133_v41 }
 0x17c   :  { %v129_v60 = vpop.xlane.xlu1 %128 }
 0x17d   :  { %v136_v61 = vmul.f32 %v129_v60, %v5245_v26 }
 0x17f   :  { %v139_v3 = vadd.f32 1e-05, %v136_v61 }
 0x181   :  { %4850 = vrsqrt.f32 %v139_v3  ;;  %vm148_vm5 = vweird.f32 %v139_v3 }
 0x184   :  { %v132_v5 = vpop.xlane.xlu2 %131 }
 0x185   :  { %v137_v6 = vmul.f32 %v132_v5, %v5245_v26 }
 0x187   :  { %v4851_v7 = vpop.eup %4850  ;;  %v140_v8 = vadd.f32 1e-05, %v137_v6 }
 0x188   :  { %v143_v10 = vmul.f32 %v4851_v7, %v139_v3  ;;  %vm149_vm4 = vweird.f32 %v4851_v7 }
 0x189   :  { %4852 = vrsqrt.f32 %v140_v8  ;;  %vm150_vm6 = vmor %vm148_vm5, %vm149_vm4  ;;  %vm158_vm8 = vweird.f32 %v140_v8  ;;  %vm739_vm4 = vcmask 261120  }
 0x18a   :  { %v144_v11 = vmul.f32 %v4851_v7, %v143_v10 }
 0x18c   :  { %v145_v12 = vmul.f32 0.5, %v144_v11  ;;  %v135_v14 = vpop.xlane.xlu2 %134 }
 0x18d   :  { %v138_v15 = vmul.f32 %v135_v14, %v5245_v26 }
 0x18e   :  { %v146_v16 = vsub.f32 1.5, %v145_v12 }
 0x18f   :  { %v4853_v18 = vpop.eup %4852  ;;  %v141_v19 = vadd.f32 1e-05, %v138_v15 }
 0x190   :  { %v147_v20 = vmul.f32 %v4851_v7, %v146_v16  ;;  %v153_v21 = vmul.f32 %v4853_v18, %v140_v8  ;;  %vm159_vm7 = vweird.f32 %v4853_v18 }
 0x191   :  { %4854 = vrsqrt.f32 %v141_v19  ;;  %vm160_vm9 = vmor %vm158_vm8, %vm159_vm7  ;;  %vm168_vm11 = vweird.f32 %v141_v19 }
 0x192   :  { %v154_v22 = vmul.f32 %v4853_v18, %v153_v21  ;;  %v151_v23 = vsel %vm150_vm6, %v4851_v7, %v147_v20 }
 0x193   :  { %v172_v30 = vmul.f32 %v151_v23, %v5249_v29 }
 0x194   :  { %v155_v24 = vmul.f32 0.5, %v154_v22 }
 0x195   :  { %v176_v38 = vmul.f32 %v175_v31, %v172_v30 }
 0x196   :  { %v156_v27 = vsub.f32 1.5, %v155_v24 }
 0x197   :  { %v4855_v28 = vpop.eup %4854  ;;  %v180_v44 = vadd.f32 %v179_v40, %v176_v38 }
 0x198   :  { %v157_v32 = vmul.f32 %v4853_v18, %v156_v27  ;;  %v163_v33 = vmul.f32 %v4855_v28, %v141_v19  ;;  %vm169_vm10 = vweird.f32 %v4855_v28 }
 0x199   :  { %vm170_vm12 = vmor %vm168_vm11, %vm169_vm10 }
 0x19a   :  { %v161_v35 = vsel %vm160_vm9, %v4853_v18, %v157_v32  ;;  %v164_v36 = vmul.f32 %v4855_v28, %v163_v33 }
 0x19b   :  { %v173_v37 = vmul.f32 %v161_v35, %v5256_v34 }
 0x19c   :  { %v165_v41 = vmul.f32 0.5, %v164_v36 }
 0x19d   :  { %v177_v42 = vmul.f32 %v175_v31, %v173_v37 }
 0x19e   :  { %v166_v43 = vsub.f32 1.5, %v165_v41 }
 0x19f   :  { %v181_v45 = vadd.f32 %v179_v40, %v177_v42 }
 0x1a0   :  { %v167_v29 = vmul.f32 %v4855_v28, %v166_v43 }
 0x1a1   :  { %v183_v46 = vpack.c.bf16 %v181_v45, %v180_v44 }
 0x1a2   :  { %v171_v47 = vsel %vm170_vm12, %v4855_v28, %v167_v29 }
 0x1a3   :  { %4115 = vmatmul.msk.bf16.vlgmr.msra.gmra.mxu1 %vm100_vm1, %v183_v46  ;;  %4117 = vmatmul.msk.bf16.vlgmr.msra.gmra.mxu2 %vm100_vm1, %v183_v46  ;;  %v174_v34 = vmul.f32 %v171_v47, %v5263_v39 }
 0x1a5   :  { %v178_v48 = vmul.f32 %v175_v31, %v174_v34 }
 0x1a7   :  { %v182_v49 = vadd.f32 %v179_v40, %v178_v48 }
 0x1a9   :  { %v184_v50 = vpack.c.bf16 %v182_v49, %v182_v49 }
 0x1b3   :  { %4116 = vmatmul.msk.bf16.gmra.mxu1 %vm100_vm1, %v184_v50  ;;  %4118 = vmatmul.msk.bf16.gmra.mxu2 %vm100_vm1, %v184_v50 }
 0x220   :  { %v248_v51 = vpop.f32.mrf.mxu1 }
 0x226   :  { %v266_v52 = vpop.f32.mrf.mxu2 }
 0x228   :  { %v250_v53 = vpop.f32.mrf.mxu1 }
 0x229   :  { %v275_v54 = vpack.c.bf16 %v250_v53, %v248_v51 }
 0x22b   :  { %281 = vrot.lane.b32.xlu2 %v275_v54, %s5157_s28 }
 0x22e   :  { %v268_v55 = vpop.f32.mrf.mxu2 }
 0x22f   :  { %v5346_v63 = vpack.c.bf16 %v268_v55, %v266_v52 }
 0x230   :  { %v253_v56 = vpop.f32.mrf.mxu1 }
 0x231   :  { %v276_v57 = vpack.c.bf16 %v253_v56, %v253_v56 }
 0x233   :  { %383 = vrot.lane.b32.xlu2 %v275_v54, %s5158_s29  ;;  %389 = vrot.lane.b32.xlu1 %v276_v57, %s5159_s30 }
 0x234   :  { %283 = vrot.lane.b32.xlu0 %v276_v57, %s5157_s28 }
 0x236   :  { %v271_v39 = vpop.f32.mrf.mxu2 }
 0x237   :  { %v5339_v60 = vpack.c.bf16 %v271_v39, %v271_v39 }
 0x238   :  { %v255_v61 = vpop.f32.mrf.mxu1 }
 0x239   :  { %v363_v62 = vand.u32 %v5337_v59, %v5339_v60 }
 0x23b   :  { %371 = vmatpush.bf16.msrb.mxu0 %v363_v62  ;;  %601 = vrot.lane.b32.xlu2 %v276_v57, %s5161_s8 }
 0x23c   :  { %496 = vrot.lane.b32.xlu1 %v276_v57, %s5162_s9  ;;  %387 = vrot.lane.b32.xlu0 %v275_v54, %s5159_s30 }
 0x23e   :  { %v273_v0 = vpop.f32.mrf.mxu2 }
 0x23f   :  { %372 = vmatpush.bf16.msrb.mxu0 %v5346_v63 }
 0x243   :  { %490 = vrot.lane.b32.xlu2 %v275_v54, %s5163_s10 }
 0x244   :  { %494 = vrot.lane.b32.xlu1 %v275_v54, %s5162_s9  ;;  %385 = vrot.lane.b32.xlu0 %v276_v57, %s5158_s29 }
 0x24b   :  { %597 = vrot.lane.b32.xlu2 %v276_v57, %s5164_s11 }
 0x24c   :  { %595 = vrot.lane.b32.xlu1 %v275_v54, %s5164_s11  ;;  %599 = vrot.lane.b32.xlu0 %v275_v54, %s5161_s8 }
 0x254   :  { %492 = vrot.lane.b32.xlu0 %v276_v57, %s5163_s10 }
 0x285   :  { %v282_v1 = vpop.permute.xlu2 %281 }
 0x286   :  { %v293_v11 = vsel %vm285_vm14, %v282_v1, 0 }
 0x28d   :  { %v384_v2 = vpop.permute.xlu2 %383 }
 0x295   :  { %v602_v7 = vpop.permute.xlu2 %601 }
 0x296   :  { %v613_v15 = vsel %vm285_vm14, %v602_v7, 0 }
 0x29d   :  { %v491_v22 = vpop.permute.xlu2 %490 }
 0x2a5   :  { %v390_v3 = vpop.permute.xlu1 %389  ;;  %v598_v24 = vpop.permute.xlu2 %597 }
 0x2a6   :  { %v284_v4 = vpop.permute.xlu0 %283  ;;  %v401_v5 = vsel %vm285_vm14, %v390_v3, 0 }
 0x2a7   :  { %v296_v6 = vsel %vm285_vm14, %v284_v4, 0  ;;  %409 = vmatpush.bf16.xpose.msrb.mxu1 %v401_v5 }
 0x2a8   :  { %304 = vmatpush.bf16.xpose.msra.mxu3 %v296_v6 }
 0x2ae   :  { %v497_v8 = vpop.permute.xlu1 %496  ;;  %v388_v10 = vpop.permute.xlu0 %387 }
 0x2af   :  { %v398_v12 = vsel %vm285_vm14, %v388_v10, 0  ;;  %v508_v14 = vsel %vm285_vm14, %v497_v8, 0 }
 0x2b0   :  { %305 = vmatpush.bf16.xpose.msra.mxu3 %v293_v11  ;;  %410 = vmatpush.bf16.xpose.msrb.mxu1 %v398_v12 }
 0x2b6   :  { %v495_v16 = vpop.permute.xlu1 %494  ;;  %v386_v18 = vpop.permute.xlu0 %385 }
 0x2b7   :  { %4119 = vmatmul.msk.bf16.vlgmr.msra.gmra.mxu3 %vm285_vm14, %v275_v54  ;;  %4123 = vmatmul.msk.bf16.vlgmr.msrb.gmra.mxu1 %vm285_vm14, %v384_v2  ;;  %v505_v19 = vsel %vm285_vm14, %v495_v16, 0 }
 0x2b8   :  { %516 = vmatpush.bf16.xpose.msrb.mxu3 %v508_v14  ;;  %621 = vmatpush.bf16.xpose.msra.mxu1 %v613_v15 }
 0x2be   :  { %v600_v20 = vpop.permute.xlu0 %599  ;;  %v596_v23 = vpop.permute.xlu1 %595 }
 0x2bf   :  { %v610_v21 = vsel %vm285_vm14, %v600_v20, 0 }
 0x2c0   :  { %517 = vmatpush.bf16.xpose.msrb.mxu3 %v505_v19  ;;  %622 = vmatpush.bf16.xpose.msra.mxu1 %v610_v21 }
 0x2c6   :  { %v493_v27 = vpop.permute.xlu0 %492 }
 0x2c7   :  { %4120 = vmatmul.msk.bf16.gmra.mxu3 %vm285_vm14, %v276_v57  ;;  %4124 = vmatmul.msk.bf16.gmra.mxu1 %vm285_vm14, %v386_v18 }
 0x2d7   :  { %4127 = vmatmul.msk.bf16.vlgmr.msrb.gmra.mxu3 %vm285_vm14, %v491_v22  ;;  %4131 = vmatmul.msk.bf16.vlgmr.msra.gmra.mxu1 %vm285_vm14, %v596_v23 }
 0x2e7   :  { %4128 = vmatmul.msk.bf16.gmra.mxu3 %vm285_vm14, %v493_v27  ;;  %4132 = vmatmul.msk.bf16.gmra.mxu1 %vm285_vm14, %v598_v24 }
 0x334   :  { %v412_v28 = vpop.f32.mrf.mxu1 }
 0x335   :  { %v421_v30 = vsel %vm316_vm15, %v412_v28, -inf }
 0x336   :  { %422 = vmax.xlane.f32.xlu1 %v421_v30 }
 0x33a   :  { %v307_v31 = vpop.f32.mrf.mxu3 }
 0x33b   :  { %v317_v32 = vsel %vm316_vm15, %v307_v31, -inf }
 0x33c   :  { %318 = vmax.xlane.f32.xlu2 %v317_v32  ;;  %v414_v33 = vpop.f32.mrf.mxu1 }
 0x33d   :  { %v424_v35 = vsel %vm316_vm15, %v414_v33, -inf }
 0x33e   :  { %425 = vmax.xlane.f32.xlu0 %v424_v35 }
 0x342   :  { %v309_v36 = vpop.f32.mrf.mxu3 }
 0x343   :  { %v320_v37 = vsel %vm316_vm15, %v309_v36, -inf }
 0x344   :  { %321 = vmax.xlane.f32.xlu1 %v320_v37  ;;  %v5376_v38 = vpop.f32.mrf.mxu1 }
 0x345   :  { %v427_v50 = vsel %vm323_vm3, %v5376_v38, -inf }
 0x34a   :  { %v5378_v40 = vpop.f32.mrf.mxu3 }
 0x34b   :  { %v324_v41 = vsel %vm323_vm3, %v5378_v40, -inf }
 0x34c   :  { %325 = vmax.xlane.f32.xlu2 %v324_v41  ;;  %v419_v42 = vpop.f32.mrf.mxu1 }
 0x352   :  { %v314_v43 = vpop.f32.mrf.mxu3  ;;  %458 = vrot.lane.b32.xlu0 %v5346_v63, %s5158_s29 }
 0x354   :  { %v5384_v44 = vpop.f32.mrf.mxu1 }
 0x355   :  { %v633_v52 = vsel %vm316_vm15, %v5384_v44, -inf }
 0x35a   :  { %v5386_v45 = vpop.f32.mrf.mxu3 }
 0x35b   :  { %v528_v53 = vsel %vm316_vm15, %v5386_v45, -inf }
 0x35c   :  { %v5388_v29 = vpop.f32.mrf.mxu1 }
 0x35d   :  { %460 = vrot.lane.b32.xlu1 %v5339_v60, %s5158_s29  ;;  %v636_v51 = vsel %vm316_vm15, %v5388_v29, -inf }
 0x362   :  { %v5392_v46 = vpop.f32.mrf.mxu3 }
 0x363   :  { %v531_v54 = vsel %vm316_vm15, %v5392_v46, -inf }
 0x364   :  { %670 = vrot.lane.b32.xlu2 %v5339_v60, %s5164_s11  ;;  %v5396_v47 = vpop.f32.mrf.mxu1 }
 0x365   :  { %v639_v56 = vsel %vm323_vm3, %v5396_v47, -inf }
 0x36a   :  { %v5398_v34 = vpop.f32.mrf.mxu3 }
 0x36b   :  { %v534_v55 = vsel %vm323_vm3, %v5398_v34, -inf }
 0x36c   :  { %v631_v48 = vpop.f32.mrf.mxu1 }
 0x372   :  { %v526_v49 = vpop.f32.mrf.mxu3 }
 0x37c   :  { %428 = vmax.xlane.f32.xlu0 %v427_v50 }
 0x384   :  { %637 = vmax.xlane.f32.xlu0 %v636_v51 }
 0x387   :  { %634 = vmax.xlane.f32.xlu1 %v633_v52 }
 0x38d   :  { %529 = vmax.xlane.f32.xlu2 %v528_v53 }
 0x38f   :  { %532 = vmax.xlane.f32.xlu1 %v531_v54 }
 0x395   :  { %535 = vmax.xlane.f32.xlu2 %v534_v55 }
 0x397   :  { %640 = vmax.xlane.f32.xlu1 %v639_v56 }
 0x3a9   :  { %v423_v57 = vpop.xlane.xlu1 %422 }
 0x3aa   :  { %v430_v39 = vsub.f32 %v412_v28, %v423_v57 }
 0x3ac   :  { %v433_v58 = vmul.f32 1.442695, %v430_v39 }
 0x3ae   :  { %4856 = vpow2.f32 %v433_v58 }
 0x3af   :  { %v319_v61 = vpop.xlane.xlu2 %318 }
 0x3b0   :  { %v327_v62 = vsub.f32 %v307_v31, %v319_v61 }
 0x3b1   :  { %v426_v0 = vpop.xlane.xlu0 %425 }
 0x3b2   :  { %v330_v1 = vmul.f32 1.442695, %v327_v62  ;;  %v431_v2 = vsub.f32 %v414_v33, %v426_v0 }
 0x3b4   :  { %v5414_v3 = vpop.eup %4856  ;;  %4858 = vpow2.f32 %v330_v1  ;;  %v435_v4 = vmul.f32 1.442695, %v431_v2 }
 0x3b5   :  { %v439_v5 = vsel %vm316_vm15, %v5414_v3, 0.0 }
 0x3b6   :  { %4860 = vpow2.f32 %v435_v4  ;;  %440 = vadd.xlane.f32.xlu0 %v439_v5 }
 0x3b7   :  { %v322_v6 = vpop.xlane.xlu1 %321 }
 0x3b8   :  { %v328_v7 = vsub.f32 %v309_v36, %v322_v6 }
 0x3ba   :  { %v5418_v8 = vpop.eup %4858  ;;  %v332_v10 = vmul.f32 1.442695, %v328_v7 }
 0x3bb   :  { %v336_v14 = vsel %vm316_vm15, %v5418_v8, 0.0 }
 0x3bc   :  { %v5420_v11 = vpop.eup %4860  ;;  %4862 = vpow2.f32 %v332_v10 }
 0x3bd   :  { %v442_v12 = vsel %vm316_vm15, %v5420_v11, 0.0 }
 0x3be   :  { %443 = vadd.xlane.f32.xlu2 %v442_v12  ;;  %337 = vadd.xlane.f32.xlu0 %v336_v14 }
 0x3bf   :  { %v326_v18 = vpop.xlane.xlu2 %325 }
 0x3c0   :  { %v329_v28 = vsub.f32 %v5378_v40, %v326_v18 }
 0x3c2   :  { %v5426_v15 = vpop.eup %4862  ;;  %v334_v31 = vmul.f32 1.442695, %v329_v28 }
 0x3c3   :  { %v339_v16 = vsel %vm316_vm15, %v5426_v15, 0.0 }
 0x3c4   :  { %v459_v22 = vpop.permute.xlu0 %458 }
 0x3c6   :  { %340 = vadd.xlane.f32.xlu2 %v339_v16 }
 0x3c7   :  { %v671_v21 = vpop.permute.xlu2 %670 }
 0x3c8   :  { %v680_v23 = vand.u32 %v671_v21, %v5337_v59 }
 0x3cf   :  { %v461_v19 = vpop.permute.xlu1 %460 }
 0x3d0   :  { %v470_v20 = vand.u32 %v461_v19, %v5337_v59 }
 0x3d2   :  { %478 = vmatpush.bf16.msrb.mxu2 %v470_v20 }
 0x3d6   :  { %479 = vmatpush.bf16.msrb.mxu2 %v459_v22 }
 0x3da   :  { %688 = vmatpush.bf16.msra.mxu2 %v680_v23 }
 0x3ef   :  { %v429_v24 = vpop.xlane.xlu0 %428 }
 0x3f0   :  { %v432_v27 = vsub.f32 %v5376_v38, %v429_v24 }
 0x3f2   :  { %v437_v30 = vmul.f32 1.442695, %v432_v27 }
 0x3f4   :  { %4864 = vpow2.f32 %v437_v30 }
 0x3f5   :  { %4866 = vpow2.f32 %v334_v31 }
 0x3f7   :  { %v638_v32 = vpop.xlane.xlu0 %637 }
 0x3f8   :  { %v643_v33 = vsub.f32 %v5388_v29, %v638_v32 }
 0x3fa   :  { %v5435_v35 = vpop.eup %4864  ;;  %v647_v36 = vmul.f32 1.442695, %v643_v33  ;;  %v635_v37 = vpop.xlane.xlu1 %634 }
 0x3fb   :  { %v642_v41 = vsub.f32 %v5384_v44, %v635_v37  ;;  %v445_v42 = vsel %vm323_vm3, %v5435_v35, 0.0  ;;  %v5440_v40 = vpop.eup %4866 }
 0x3fc   :  { %4868 = vpow2.f32 %v647_v36  ;;  %446 = vadd.xlane.f32.xlu2 %v445_v42  ;;  %v342_v52 = vsel %vm323_vm3, %v5440_v40, 0.0 }
 0x3fd   :  { %v645_v38 = vmul.f32 1.442695, %v642_v41 }
 0x3ff   :  { %4870 = vpow2.f32 %v645_v38 }
 0x400   :  { %v530_v43 = vpop.xlane.xlu2 %529 }
 0x401   :  { %v537_v48 = vsub.f32 %v5386_v45, %v530_v43 }
 0x402   :  { %v5443_v49 = vpop.eup %4868  ;;  %v533_v29 = vpop.xlane.xlu1 %532 }
 0x403   :  { %v540_v50 = vmul.f32 1.442695, %v537_v48  ;;  %v538_v51 = vsub.f32 %v5392_v46, %v533_v29  ;;  %v654_v44 = vsel %vm316_vm15, %v5443_v49, 0.0 }
 0x404   :  { %655 = vadd.xlane.f32.xlu0 %v654_v44  ;;  %343 = vadd.xlane.f32.xlu2 %v342_v52 }
 0x405   :  { %4872 = vpow2.f32 %v540_v50  ;;  %v542_v53 = vmul.f32 1.442695, %v538_v51  ;;  %v5450_v54 = vpop.eup %4870 }
 0x406   :  { %v651_v55 = vsel %vm316_vm15, %v5450_v54, 0.0 }
 0x407   :  { %4874 = vpow2.f32 %v542_v53 }
 0x408   :  { %v536_v39 = vpop.xlane.xlu2 %535 }
 0x409   :  { %v539_v1 = vsub.f32 %v5398_v34, %v536_v39 }
 0x40a   :  { %v641_v6 = vpop.xlane.xlu1 %640 }
 0x40b   :  { %v5452_v45 = vpop.eup %4872  ;;  %v544_v7 = vmul.f32 1.442695, %v539_v1  ;;  %v644_v12 = vsub.f32 %v5396_v47, %v641_v6 }
 0x40c   :  { %652 = vadd.xlane.f32.xlu2 %v651_v55  ;;  %v546_v46 = vsel %vm316_vm15, %v5452_v45, 0.0 }
 0x40d   :  { %547 = vadd.xlane.f32.xlu1 %v546_v46  ;;  %v5458_v56 = vpop.eup %4874  ;;  %v649_v18 = vmul.f32 1.442695, %v644_v12 }
 0x40e   :  { %v549_v57 = vsel %vm316_vm15, %v5458_v56, 0.0 }
 0x414   :  { %550 = vadd.xlane.f32.xlu2 %v549_v57 }
 0x418   :  { %565 = vrot.lane.b32.xlu0 %v5339_v60, %s5163_s10 }
 0x420   :  { %563 = vrot.lane.b32.xlu0 %v5346_v63, %s5163_s10 }
 0x426   :  { %668 = vrot.lane.b32.xlu1 %v5346_v63, %s5164_s11 }
 0x429   :  { %v441_v58 = vpop.xlane.xlu0 %440 }
 0x42a   :  { %4876 = vrcp.f32 %v441_v58 }
 0x430   :  { %v4877_v0 = vpop.eup %4876 }
 0x431   :  { %v444_v61 = vpop.xlane.xlu2 %443  ;;  %v338_v62 = vpop.xlane.xlu0 %337  ;;  %v451_v60 = vmul.f32 %v4877_v0, %v5414_v3 }
 0x432   :  { %4878 = vrcp.f32 %v444_v61 }
 0x433   :  { %4880 = vrcp.f32 %v338_v62 }
 0x438   :  { %v4879_v2 = vpop.eup %4878 }
 0x439   :  { %v341_v4 = vpop.xlane.xlu2 %340  ;;  %v452_v5 = vmul.f32 %v4879_v2, %v5420_v11  ;;  %v4881_v10 = vpop.eup %4880 }
 0x43a   :  { %4882 = vrcp.f32 %v341_v4  ;;  %v348_v34 = vmul.f32 %v4881_v10, %v5418_v8 }
 0x43b   :  { %v454_v63 = vpack.c.bf16 %v452_v5, %v451_v60  ;;  %4884 = vpow2.f32 %v544_v7 }
 0x43c   :  { %4886 = vpow2.f32 %v649_v18 }
 0x43d   :  { %4125 = vmatmul.msk.bf16.vlgmr.msrb.gmra.mxu2 %vm316_vm15, %v454_v63 }
 0x440   :  { %v4883_v14 = vpop.eup %4882 }
 0x441   :  { %v349_v16 = vmul.f32 %v4883_v14, %v5426_v15  ;;  %v4885_v3 = vpop.eup %4884 }
 0x442   :  { %v552_v11 = vsel %vm323_vm3, %v4885_v3, 0.0  ;;  %v4887_v20 = vpop.eup %4886 }
 0x443   :  { %v351_v19 = vpack.c.bf16 %v349_v16, %v348_v34  ;;  %v657_v47 = vsel %vm323_vm3, %v4887_v20, 0.0 }
 0x445   :  { %4121 = vmatmul.msk.bf16.vlgmr.msrb.gmra.mxu0 %vm316_vm15, %v351_v19  ;;  %v4691_v19 = vld [vmem:[%s6767_s4 + $0x18] sm:$0xff] }
 0x446   :  { %790 = vmatpush.bf16.msra.mxu3 %v4691_v19 }
 0x44a   :  { %553 = vadd.xlane.f32.xlu0 %v552_v11  ;;  %v4689_v11 = vld [vmem:[%s6767_s4 + $0x8] sm:$0xff] }
 0x450   :  { %658 = vadd.xlane.f32.xlu1 %v657_v47 }
 0x46f   :  { %v447_v21 = vpop.xlane.xlu2 %446 }
 0x470   :  { %4888 = vrcp.f32 %v447_v21 }
 0x476   :  { %v4889_v22 = vpop.eup %4888 }
 0x477   :  { %v344_v23 = vpop.xlane.xlu2 %343  ;;  %v453_v8 = vmul.f32 %v4889_v22, %v5435_v35  ;;  %v656_v30 = vpop.xlane.xlu0 %655 }
 0x478   :  { %4890 = vrcp.f32 %v344_v23 }
 0x479   :  { %v455_v15 = vpack.c.bf16 %v453_v8, %v453_v8 }
 0x47b   :  { %4126 = vmatmul.msk.bf16.gmra.mxu2 %vm316_vm15, %v455_v15 }
 0x47e   :  { %v4891_v24 = vpop.eup %4890 }
 0x47f   :  { %v653_v27 = vpop.xlane.xlu2 %652  ;;  %v350_v28 = vmul.f32 %v4891_v24, %v5440_v40 }
 0x480   :  { %v548_v32 = vpop.xlane.xlu1 %547 }
 0x481   :  { %v352_v31 = vpack.c.bf16 %v350_v28, %v350_v28 }
 0x483   :  { %4122 = vmatmul.msk.bf16.gmra.mxu0 %vm316_vm15, %v352_v31 }
 0x487   :  { %v551_v33 = vpop.xlane.xlu2 %550 }
 0x488   :  { %4892 = vrcp.f32 %v551_v33 }
 0x489   :  { %4894 = vrcp.f32 %v548_v32 }
 0x48a   :  { %v566_v36 = vpop.permute.xlu0 %565  ;;  %4896 = vrcp.f32 %v653_v27 }
 0x48b   :  { %v575_v37 = vand.u32 %v566_v36, %v5337_v59  ;;  %4898 = vrcp.f32 %v656_v30 }
 0x48d   :  { %583 = vmatpush.bf16.msra.mxu0 %v575_v37 }
 0x48e   :  { %v4893_v35 = vpop.eup %4892 }
 0x48f   :  { %v4895_v41 = vpop.eup %4894  ;;  %v559_v42 = vmul.f32 %v4893_v35, %v5458_v56 }
 0x490   :  { %v558_v38 = vmul.f32 %v4895_v41, %v5452_v45  ;;  %v4897_v43 = vpop.eup %4896 }
 0x491   :  { %v4899_v29 = vpop.eup %4898  ;;  %v663_v50 = vmul.f32 %v4897_v43, %v5450_v54 }
 0x492   :  { %v564_v40 = vpop.permute.xlu0 %563  ;;  %v561_v48 = vpack.c.bf16 %v559_v42, %v558_v38  ;;  %v664_v51 = vmul.f32 %v4899_v29, %v5443_v49 }
 0x493   :  { %584 = vmatpush.bf16.msra.mxu0 %v564_v40 }
 0x494   :  { %v666_v52 = vpack.c.bf16 %v664_v51, %v663_v50  ;;  %v807_v50 = vperm.slane %v5322_v25, 2 }
 0x496   :  { %4129 = vmatmul.msk.bf16.vlgmr.msra.gmra.mxu0 %vm316_vm15, %v561_v48 }
 0x498   :  { %v669_v44 = vpop.permute.xlu1 %668 }
 0x499   :  { %689 = vmatpush.bf16.msra.mxu2 %v669_v44 }
 0x49c   :  { %4133 = vmatmul.msk.bf16.vlgmr.msra.gmra.mxu2 %vm316_vm15, %v666_v52 }
 0x4bd   :  { %v554_v53 = vpop.xlane.xlu0 %553 }
 0x4be   :  { %4900 = vrcp.f32 %v554_v53 }
 0x4c0   :  { %v481_v55 = vpop.f32.mrf.mxu2 }
 0x4c2   :  { %v374_v62 = vpop.f32.mrf.mxu0 }
 0x4c3   :  { %v659_v45 = vpop.xlane.xlu1 %658 }
 0x4c4   :  { %v4901_v46 = vpop.eup %4900  ;;  %4902 = vrcp.f32 %v659_v45 }
 0x4c5   :  { %v560_v56 = vmul.f32 %v4901_v46, %v4885_v3  ;;  %v4690_v3 = vld [vmem:[%s6767_s4 + $0x10] sm:$0xff] }
 0x4c6   :  { %791 = vmatpush.bf16.msra.mxu3 %v4690_v3  ;;  %v4692_v3 = vld [vmem:[%s6768_s5] sm:$0xff] }
 0x4c7   :  { %v562_v57 = vpack.c.bf16 %v560_v56, %v560_v56 }
 0x4c8   :  { %v483_v39 = vpop.f32.mrf.mxu2 }
 0x4c9   :  { %4130 = vmatmul.msk.bf16.gmra.mxu0 %vm316_vm15, %v562_v57  ;;  %v4788_v58 = vpack.i.bf16 %v483_v39, %v481_v55 }
 0x4ca   :  { %v4903_v54 = vpop.eup %4902  ;;  %v376_v0 = vpop.f32.mrf.mxu0  ;;  %792 = vmatpush.bf16.msra.mxu3 %v4689_v11 }
 0x4cb   :  { %v665_v61 = vmul.f32 %v4903_v54, %v4887_v20  ;;  %4789 = vrot.lane.b32.xlu2 %v4788_v58, %s5161_s8  ;;  %v4688_v20 = vld [vmem:[%s6767_s4] sm:$0xff] }
 0x4cd   :  { %v667_v49 = vpack.c.bf16 %v665_v61, %v665_v61 }
 0x4ce   :  { %793 = vmatpush.bf16.msra.mxu3 %v4688_v20 }
 0x4cf   :  { %4134 = vmatmul.msk.bf16.gmra.mxu2 %vm316_vm15, %v667_v49 }
 0x4fe   :  { %v486_v1 = vpop.f32.mrf.mxu2 }
 0x4ff   :  { %707 = vrot.lane.b32.xlu0 %v486_v1, %s5161_s8 }
 0x500   :  { %v379_v2 = vpop.f32.mrf.mxu0 }
 0x506   :  { %v488_v4 = vpop.f32.mrf.mxu2 }
 0x508   :  { %v381_v60 = vpop.f32.mrf.mxu0 }
 0x513   :  { %v586_v5 = vpop.f32.mrf.mxu0 }
 0x51b   :  { %v588_v6 = vpop.f32.mrf.mxu0 }
 0x51c   :  { %v4793_v7 = vpack.i.bf16 %v588_v6, %v586_v5 }
 0x51e   :  { %4794 = vrot.lane.b32.xlu2 %v4793_v7, %s5162_s9 }
 0x51f   :  { %v691_v63 = vpop.f32.mrf.mxu2 }
 0x525   :  { %v4790_v47 = vpop.permute.xlu2 %4789 }
 0x526   :  { %v4792_v22 = vunpack.i.h.bf16 %v4790_v47  ;;  %v4791_v23 = vunpack.i.l.bf16 %v4790_v47 }
 0x527   :  { %v693_v10 = vpop.f32.mrf.mxu2 }
 0x528   :  { %v4798_v12 = vpack.i.bf16 %v693_v10, %v691_v63  ;;  %v737_v27 = vsel %vm285_vm14, %v376_v0, %v4792_v22  ;;  %v736_v28 = vsel %vm285_vm14, %v374_v62, %v4791_v23 }
 0x52a   :  { %4799 = vrot.lane.b32.xlu1 %v4798_v12, %s5159_s30  ;;  %v4695_v12 = vld [vmem:[%s6768_s5 + $0x18] sm:$0xff] }
 0x52b   :  { %946 = vmatpush.bf16.msrb.mxu0 %v4695_v12 }
 0x546   :  { %v591_v14 = vpop.f32.mrf.mxu0 }
 0x547   :  { %719 = vrot.lane.b32.xlu2 %v591_v14, %s5162_s9  ;;  %v4694_v14 = vld [vmem:[%s6768_s5 + $0x10] sm:$0xff] }
 0x548   :  { %947 = vmatpush.bf16.msrb.mxu0 %v4694_v14 }
 0x54e   :  { %v593_v34 = vpop.f32.mrf.mxu0 }
 0x54f   :  { %v4693_v34 = vld [vmem:[%s6768_s5 + $0x8] sm:$0xff] }
 0x550   :  { %948 = vmatpush.bf16.msrb.mxu0 %v4693_v34 }
 0x552   :  { %v696_v16 = vpop.f32.mrf.mxu2 }
 0x553   :  { %731 = vrot.lane.b32.xlu2 %v696_v16, %s5159_s30 }
 0x554   :  { %949 = vmatpush.bf16.msrb.mxu0 %v4692_v3 }
 0x55a   :  { %v698_v18 = vpop.f32.mrf.mxu2 }
 0x571   :  { %v708_v42 = vpop.permute.xlu0 %707 }
 0x572   :  { %v738_v38 = vsel %vm285_vm14, %v379_v2, %v708_v42  ;;  %v877_v42 = vperm.slane %v5322_v25, 3 }
 0x578   :  { %v4795_v21 = vpop.permute.xlu2 %4794 }
 0x579   :  { %v4797_v8 = vunpack.i.h.bf16 %v4795_v21  ;;  %v4796_v15 = vunpack.i.l.bf16 %v4795_v21 }
 0x57b   :  { %v740_v32 = vsel %vm739_vm4, %v736_v28, %v4796_v15  ;;  %v741_v33 = vsel %vm739_vm4, %v737_v27, %v4797_v8 }
 0x59c   :  { %v4800_v24 = vpop.permute.xlu1 %4799 }
 0x59d   :  { %v4802_v30 = vunpack.i.h.bf16 %v4800_v24  ;;  %v4801_v31 = vunpack.i.l.bf16 %v4800_v24 }
 0x59f   :  { %v743_v36 = vsel %vm74_vm0, %v740_v32, %v4801_v31  ;;  %v744_v37 = vsel %vm74_vm0, %v741_v33, %v4802_v30 }
 0x5a0   :  { %v746_v35 = vpack.c.bf16 %v744_v37, %v743_v36 }
 0x5a1   :  { %v720_v41 = vpop.permute.xlu2 %719 }
 0x5a2   :  { %4151 = vmatmul.msk.bf16.vlgmr.msra.gmra.mxu3 %vm100_vm1, %v746_v35  ;;  %v742_v40 = vsel %vm739_vm4, %v738_v38, %v720_v41 }
 0x5ad   :  { %v732_v43 = vpop.permute.xlu2 %731 }
 0x5ae   :  { %v745_v48 = vsel %vm74_vm0, %v742_v40, %v732_v43 }
 0x5af   :  { %v747_v29 = vpack.c.bf16 %v745_v48, %v745_v48 }
 0x5b2   :  { %4152 = vmatmul.msk.bf16.gmra.mxu3 %vm100_vm1, %v747_v29 }
 0x625   :  { %v795_v51 = vpop.f32.mrf.mxu3 }
 0x626   :  { %v804_v44 = vadd.f32 %v795_v51, %v5227_v9 }
 0x628   :  { %v5522_v52 = vadd.f32 %v807_v50, %v804_v44  ;;  %v881_v44 = vperm.slane %v5322_v25, 4 }
 0x62a   :  { %v811_v53 = vsel %vm100_vm1, %v5522_v52, 0.0 }
 0x62b   :  { %812 = vadd.xlane.f32.xlu2 %v811_v53 }
 0x62d   :  { %v797_v55 = vpop.f32.mrf.mxu3 }
 0x62e   :  { %v805_v45 = vadd.f32 %v797_v55, %v5234_v13 }
 0x630   :  { %v5527_v46 = vadd.f32 %v807_v50, %v805_v45 }
 0x632   :  { %v814_v56 = vsel %vm100_vm1, %v5527_v46, 0.0 }
 0x633   :  { %815 = vadd.xlane.f32.xlu0 %v814_v56 }
 0x635   :  { %v800_v57 = vpop.f32.mrf.mxu3 }
 0x636   :  { %v806_v39 = vadd.f32 %v800_v57, %v5241_v17 }
 0x638   :  { %v5532_v54 = vadd.f32 %v807_v50, %v806_v39 }
 0x63a   :  { %v817_v9 = vsel %vm107_vm2, %v5532_v54, 0.0 }
 0x63b   :  { %818 = vadd.xlane.f32.xlu1 %v817_v9 }
 0x63d   :  { %v802_v58 = vpop.f32.mrf.mxu3 }
 0x69e   :  { %v813_v61 = vpop.xlane.xlu2 %812 }
 0x69f   :  { %v820_v49 = vmul.f32 %v813_v61, %v5245_v26 }
 0x6a1   :  { %v823_v13 = vsub.f32 %v5522_v52, %v820_v49 }
 0x6a3   :  { %v826_v62 = vmul.f32 %v823_v13, %v823_v13 }
 0x6a5   :  { %v829_v0 = vsel %vm100_vm1, %v826_v62, 0.0 }
 0x6a6   :  { %830 = vadd.xlane.f32.xlu2 %v829_v0  ;;  %v816_v1 = vpop.xlane.xlu0 %815  ;;  %v4703_v0 = vld [vmem:[%s6768_s5 + $0x58] sm:$0xff] }
 0x6a7   :  { %v821_v2 = vmul.f32 %v816_v1, %v5245_v26  ;;  %1037 = vmatpush.bf16.msrb.mxu1 %v4703_v0  ;;  %v4702_v1 = vld [vmem:[%s6768_s5 + $0x50] sm:$0xff] }
 0x6a9   :  { %v824_v17 = vsub.f32 %v5527_v46, %v821_v2  ;;  %v4701_v2 = vld [vmem:[%s6768_s5 + $0x48] sm:$0xff] }
 0x6ab   :  { %v827_v4 = vmul.f32 %v824_v17, %v824_v17  ;;  %1038 = vmatpush.bf16.msrb.mxu1 %v4702_v1 }
 0x6ad   :  { %v832_v60 = vsel %vm100_vm1, %v827_v4, 0.0  ;;  %v4699_v4 = vld [vmem:[%s6768_s5 + $0x38] sm:$0xff] }
 0x6ae   :  { %833 = vadd.xlane.f32.xlu0 %v832_v60  ;;  %v819_v5 = vpop.xlane.xlu1 %818  ;;  %v4698_v60 = vld [vmem:[%s6768_s5 + $0x30] sm:$0xff] }
 0x6af   :  { %v822_v6 = vmul.f32 %v819_v5, %v5245_v26  ;;  %1039 = vmatpush.bf16.msrb.mxu1 %v4701_v2  ;;  %v4697_v5 = vld [vmem:[%s6768_s5 + $0x28] sm:$0xff] }
 0x6b1   :  { %v5544_v7 = vsub.f32 %v5532_v54, %v822_v6  ;;  %v4696_v6 = vld [vmem:[%s6768_s5 + $0x20] sm:$0xff] }
 0x6b3   :  { %v828_v63 = vmul.f32 %v5544_v7, %v5544_v7 }
 0x6b5   :  { %v835_v10 = vsel %vm107_vm2, %v828_v63, 0.0 }
 0x6b6   :  { %836 = vadd.xlane.f32.xlu2 %v835_v10 }
 0x719   :  { %v831_v16 = vpop.xlane.xlu2 %830 }
 0x71a   :  { %v838_v18 = vmul.f32 %v831_v16, %v5245_v26 }
 0x71c   :  { %v841_v19 = vadd.f32 1e-05, %v838_v18 }
 0x71e   :  { %4904 = vrsqrt.f32 %v841_v19  ;;  %vm850_vm6 = vweird.f32 %v841_v19 }
 0x721   :  { %v834_v11 = vpop.xlane.xlu0 %833 }
 0x722   :  { %v839_v20 = vmul.f32 %v834_v11, %v5245_v26 }
 0x724   :  { %v4905_v47 = vpop.eup %4904  ;;  %v842_v21 = vadd.f32 1e-05, %v839_v20 }
 0x725   :  { %v845_v22 = vmul.f32 %v4905_v47, %v841_v19  ;;  %vm851_vm5 = vweird.f32 %v4905_v47 }
 0x726   :  { %4906 = vrsqrt.f32 %v842_v21  ;;  %vm852_vm7 = vmor %vm850_vm6, %vm851_vm5  ;;  %vm860_vm9 = vweird.f32 %v842_v21 }
 0x727   :  { %v846_v23 = vmul.f32 %v4905_v47, %v845_v22 }
 0x729   :  { %v847_v8 = vmul.f32 0.5, %v846_v23  ;;  %v837_v15 = vpop.xlane.xlu2 %836 }
 0x72a   :  { %v840_v24 = vmul.f32 %v837_v15, %v5245_v26 }
 0x72b   :  { %v848_v27 = vsub.f32 1.5, %v847_v8 }
 0x72c   :  { %v4907_v28 = vpop.eup %4906  ;;  %v843_v30 = vadd.f32 1e-05, %v840_v24 }
 0x72d   :  { %v849_v31 = vmul.f32 %v4905_v47, %v848_v27  ;;  %v855_v32 = vmul.f32 %v4907_v28, %v842_v21  ;;  %vm861_vm8 = vweird.f32 %v4907_v28 }
 0x72e   :  { %4908 = vrsqrt.f32 %v843_v30  ;;  %vm862_vm10 = vmor %vm860_vm9, %vm861_vm8  ;;  %vm870_vm12 = vweird.f32 %v843_v30 }
 0x72f   :  { %v856_v33 = vmul.f32 %v4907_v28, %v855_v32  ;;  %v853_v36 = vsel %vm852_vm7, %v4905_v47, %v849_v31 }
 0x730   :  { %v874_v38 = vmul.f32 %v853_v36, %v823_v13 }
 0x731   :  { %v857_v37 = vmul.f32 0.5, %v856_v33 }
 0x732   :  { %v878_v50 = vmul.f32 %v877_v42, %v874_v38 }
 0x733   :  { %v858_v35 = vsub.f32 1.5, %v857_v37 }
 0x734   :  { %v4909_v41 = vpop.eup %4908  ;;  %v882_v56 = vadd.f32 %v881_v44, %v878_v50 }
 0x735   :  { %v859_v40 = vmul.f32 %v4907_v28, %v858_v35  ;;  %v865_v43 = vmul.f32 %v4909_v41, %v843_v30  ;;  %vm871_vm11 = vweird.f32 %v4909_v41 }
 0x736   :  { %vm872_vm13 = vmor %vm870_vm12, %vm871_vm11 }
 0x737   :  { %v863_v48 = vsel %vm862_vm10, %v4907_v28, %v859_v40  ;;  %v866_v29 = vmul.f32 %v4909_v41, %v865_v43 }
 0x738   :  { %v875_v51 = vmul.f32 %v863_v48, %v824_v17  ;;  %v4700_v17 = vld [vmem:[%s6768_s5 + $0x40] sm:$0xff] }
 0x739   :  { %v867_v53 = vmul.f32 0.5, %v866_v29  ;;  %1040 = vmatpush.bf16.msrb.mxu1 %v4700_v17 }
 0x73a   :  { %v879_v55 = vmul.f32 %v877_v42, %v875_v51  ;;  %v5118_v51 = vld [vmem:[%s6769_s6] sm:$0x7f] }
 0x73b   :  { %v868_v45 = vsub.f32 1.5, %v867_v53 }
 0x73c   :  { %v883_v57 = vadd.f32 %v881_v44, %v879_v55 }
 0x73d   :  { %v869_v39 = vmul.f32 %v4909_v41, %v868_v45  ;;  %1041 = vmatpush.bf16.msrb.mxu1 %v4699_v4 }
 0x73e   :  { %v885_v9 = vpack.c.bf16 %v883_v57, %v882_v56 }
 0x73f   :  { %v873_v58 = vsel %vm872_vm13, %v4909_v41, %v869_v39 }
 0x740   :  { %4169 = vmatmul.msk.bf16.vlgmr.msrb.gmra.mxu0 %vm100_vm1, %v885_v9  ;;  %v876_v61 = vmul.f32 %v873_v58, %v5544_v7  ;;  %v911_v7 = vperm.slane %v5322_v25, 6 }
 0x741   :  { %1042 = vmatpush.bf16.msrb.mxu1 %v4698_v60 }
 0x742   :  { %v880_v49 = vmul.f32 %v877_v42, %v876_v61 }
 0x744   :  { %v884_v13 = vadd.f32 %v881_v44, %v880_v49  ;;  %v1058_v44 = vperm.slane %v5118_v51, 5 }
 0x745   :  { %1043 = vmatpush.bf16.msrb.mxu1 %v4697_v5 }
 0x746   :  { %v886_v62 = vpack.c.bf16 %v884_v13, %v884_v13 }
 0x749   :  { %1044 = vmatpush.bf16.msrb.mxu1 %v4696_v6 }
 0x750   :  { %4170 = vmatmul.msk.bf16.gmra.mxu0 %vm100_vm1, %v886_v62 }
 0x7bd   :  { %v951_v63 = vpop.f32.mrf.mxu0 }
 0x7be   :  { %v952_v10 = vadd.f32 %v951_v63, %v911_v7 }
 0x7c0   :  { %v963_v12 = vmul.f32 0.044715, %v952_v10  ;;  %v960_v36 = vmul.f32 0.5, %v952_v10 }
 0x7c2   :  { %v966_v14 = vmul.f32 %v963_v12, %v952_v10 }
 0x7c4   :  { %v969_v34 = vmul.f32 %v966_v14, %v952_v10 }
 0x7c5   :  { %v953_v16 = vpop.f32.mrf.mxu0 }
 0x7c6   :  { %v972_v18 = vadd.f32 %v969_v34, %v952_v10  ;;  %v954_v19 = vadd.f32 %v953_v16, %v911_v7  ;;  %v4238_v34 = vld [vmem:[%s6766_s3 + $0x70] sm:$0xf]  ;;  %v4711_v16 = vld [vmem:[%s6766_s3 + $0x74] sm:$0xf0] }
 0x7c8   :  { %v964_v3 = vmul.f32 0.044715, %v954_v19  ;;  %v975_v11 = vmul.f32 0.7978846, %v972_v18  ;;  %v961_v37 = vmul.f32 0.5, %v954_v19 }
 0x7c9   :  { %v4710_v18 = vld [vmem:[%s6766_s3 + $0x74] sm:$0xf] }
 0x7ca   :  { %v967_v20 = vmul.f32 %v964_v3, %v954_v19  ;;  %4910 = vtanh.f32 %v975_v11  ;;  %v4240_v3 = vld [vmem:[%s6766_s3 + $0x78] sm:$0xf0] }
 0x7cb   :  { %v4243_v11 = vor.u32 %v4710_v18, %v4240_v3 }
 0x7cc   :  { %v970_v47 = vmul.f32 %v967_v20, %v954_v19  ;;  %v4230_v20 = vld [vmem:[%s6766_s3 + $0x60] sm:$0xf] }
 0x7cd   :  { %v956_v21 = vpop.f32.mrf.mxu0  ;;  %1217 = vmatpush.bf16.msrb.mxu3 %v4243_v11 }
 0x7ce   :  { %v957_v22 = vadd.f32 %v956_v21, %v911_v7  ;;  %v973_v23 = vadd.f32 %v970_v47, %v954_v19  ;;  %v4239_v19 = vor.u32 %v4711_v16, %v4238_v34  ;;  %v4709_v47 = vld [vmem:[%s6766_s3 + $0x64] sm:$0xf0]  ;;  %v4708_v21 = vld [vmem:[%s6766_s3 + $0x64] sm:$0xf] }
 0x7d0   :  { %v976_v8 = vmul.f32 0.7978846, %v973_v23  ;;  %v965_v15 = vmul.f32 0.044715, %v957_v22  ;;  %v4911_v24 = vpop.eup %4910  ;;  %v962_v48 = vmul.f32 0.5, %v957_v22  ;;  %1199 = vmatpush.bf16.msrb.mxu2 %v4239_v19 }
 0x7d1   :  { %v981_v31 = vadd.f32 1.0, %v4911_v24  ;;  %v4232_v23 = vld [vmem:[%s6766_s3 + $0x68] sm:$0xf0]  ;;  %v4706_v24 = vld [vmem:[%s6766_s3 + $0x54] sm:$0xf] }
 0x7d2   :  { %4912 = vtanh.f32 %v976_v8  ;;  %v968_v25 = vmul.f32 %v965_v15, %v957_v22  ;;  %v4235_v8 = vor.u32 %v4708_v21, %v4232_v23  ;;  %v4222_v15 = vld [vmem:[%s6766_s3 + $0x50] sm:$0xf] }
 0x7d3   :  { %v984_v41 = vmul.f32 %v981_v31, %v960_v36  ;;  %v4705_v36 = vld [vmem:[%s6766_s3 + $0x44] sm:$0xf0] }
 0x7d4   :  { %v971_v27 = vmul.f32 %v968_v25, %v957_v22  ;;  %1218 = vmatpush.bf16.msrb.mxu3 %v4235_v8  ;;  %v4707_v25 = vld [vmem:[%s6766_s3 + $0x54] sm:$0xf0] }
 0x7d5   :  { %v958_v28 = vpop.f32.mrf.mxu0 }
 0x7d6   :  { %v974_v30 = vadd.f32 %v971_v27, %v957_v22  ;;  %v4231_v22 = vor.u32 %v4709_v47, %v4230_v20  ;;  %v4223_v27 = vor.u32 %v4707_v25, %v4222_v15  ;;  %v4224_v28 = vld [vmem:[%s6766_s3 + $0x58] sm:$0xf0] }
 0x7d7   :  { %v4227_v31 = vor.u32 %v4706_v24, %v4224_v28 }
 0x7d8   :  { %v4913_v32 = vpop.eup %4912  ;;  %v977_v33 = vmul.f32 0.7978846, %v974_v30  ;;  %1200 = vmatpush.bf16.msrb.mxu2 %v4231_v22 }
 0x7d9   :  { %v982_v35 = vadd.f32 1.0, %v4913_v32  ;;  %1219 = vmatpush.bf16.msrb.mxu3 %v4227_v31 }
 0x7da   :  { %4914 = vtanh.f32 %v977_v33  ;;  %v4214_v33 = vld [vmem:[%s6766_s3 + $0x40] sm:$0xf] }
 0x7db   :  { %v985_v42 = vmul.f32 %v982_v35, %v961_v37  ;;  %v4704_v37 = vld [vmem:[%s6766_s3 + $0x44] sm:$0xf] }
 0x7dc   :  { %1201 = vmatpush.bf16.msrb.mxu2 %v4223_v27 }
 0x7dd   :  { %v987_v38 = vpack.c.bf16 %v985_v42, %v984_v41  ;;  %v4215_v41 = vor.u32 %v4705_v36, %v4214_v33  ;;  %v4216_v42 = vld [vmem:[%s6766_s3 + $0x48] sm:$0xf0] }
 0x7df   :  { %1045 = vmatmul.bf16.vlgmr.msrb.gmra.mxu1 %v987_v38  ;;  %v4219_v38 = vor.u32 %v4704_v37, %v4216_v42 }
 0x7e0   :  { %v4915_v40 = vpop.eup %4914  ;;  %1202 = vmatpush.bf16.msrb.mxu2 %v4215_v41 }
 0x7e1   :  { %v983_v43 = vadd.f32 1.0, %v4915_v40  ;;  %1220 = vmatpush.bf16.msrb.mxu3 %v4219_v38 }
 0x7e3   :  { %v986_v29 = vmul.f32 %v983_v43, %v962_v48 }
 0x7e5   :  { %v988_v50 = vpack.c.bf16 %v986_v29, %v986_v29 }
 0x7ef   :  { %1050 = vmatmul.bf16.gmra.mxu1 %v988_v50 }
 0x85c   :  { %v1046_v53 = vpop.f32.mrf.mxu1 }
 0x85d   :  { %v1055_v55 = vadd.f32 %v1046_v53, %v5522_v52 }
 0x85f   :  { %v5598_v45 = vadd.f32 %v1058_v44, %v1055_v55 }
 0x861   :  { %v1064_v56 = vsel %vm100_vm1, %v5598_v45, 0.0 }
 0x862   :  { %1065 = vadd.xlane.f32.xlu1 %v1064_v56 }
 0x864   :  { %v1048_v57 = vpop.f32.mrf.mxu1 }
 0x865   :  { %v1056_v39 = vadd.f32 %v1048_v57, %v5527_v46 }
 0x867   :  { %v5603_v9 = vadd.f32 %v1058_v44, %v1056_v39 }
 0x869   :  { %v1067_v58 = vsel %vm100_vm1, %v5603_v9, 0.0 }
 0x86a   :  { %1068 = vadd.xlane.f32.xlu0 %v1067_v58 }
 0x86c   :  { %v1051_v61 = vpop.f32.mrf.mxu1 }
 0x86d   :  { %v1057_v49 = vadd.f32 %v1051_v61, %v5532_v54 }
 0x86f   :  { %v5608_v13 = vadd.f32 %v1058_v44, %v1057_v49 }
 0x871   :  { %v1070_v52 = vsel %vm107_vm2, %v5608_v13, 0.0 }
 0x872   :  { %1071 = vadd.xlane.f32.xlu2 %v1070_v52  ;;  %v5687_v52 = vld [vmem:[%s6769_s6 + $0x8] sm:$0x7f] }
 0x874   :  { %v1053_v62 = vpop.f32.mrf.mxu1 }
 0x8d5   :  { %v1066_v0 = vpop.xlane.xlu1 %1065 }
 0x8d6   :  { %v1073_v1 = vmul.f32 %v1066_v0, %v5245_v26 }
 0x8d8   :  { %v5614_v46 = vsub.f32 %v5598_v45, %v1073_v1 }
 0x8da   :  { %v1079_v2 = vmul.f32 %v5614_v46, %v5614_v46 }
 0x8dc   :  { %v1082_v17 = vsel %vm100_vm1, %v1079_v2, 0.0 }
 0x8dd   :  { %v1069_v4 = vpop.xlane.xlu0 %1068  ;;  %1083 = vadd.xlane.f32.xlu1 %v1082_v17  ;;  %v1130_v17 = vperm.slane %v5687_v52, 0 }
 0x8de   :  { %v1074_v54 = vmul.f32 %v1069_v4, %v5245_v26 }
 0x8e0   :  { %v5621_v60 = vsub.f32 %v5603_v9, %v1074_v54 }
 0x8e2   :  { %v1080_v5 = vmul.f32 %v5621_v60, %v5621_v60 }
 0x8e4   :  { %v1085_v6 = vsel %vm100_vm1, %v1080_v5, 0.0 }
 0x8e5   :  { %1086 = vadd.xlane.f32.xlu0 %v1085_v6  ;;  %v1072_v7 = vpop.xlane.xlu2 %1071 }
 0x8e6   :  { %v1075_v63 = vmul.f32 %v1072_v7, %v5245_v26 }
 0x8e8   :  { %v5628_v10 = vsub.f32 %v5608_v13, %v1075_v63 }
 0x8ea   :  { %v1081_v12 = vmul.f32 %v5628_v10, %v5628_v10 }
 0x8ec   :  { %v1088_v14 = vsel %vm107_vm2, %v1081_v12, 0.0 }
 0x8ed   :  { %1089 = vadd.xlane.f32.xlu2 %v1088_v14  ;;  %v1134_v14 = vperm.slane %v5687_v52, 1 }
 0x950   :  { %v1084_v30 = vpop.xlane.xlu1 %1083 }
 0x951   :  { %v1091_v32 = vmul.f32 %v1084_v30, %v5245_v26 }
 0x953   :  { %v1094_v35 = vadd.f32 1e-05, %v1091_v32 }
 0x955   :  { %4916 = vrsqrt.f32 %v1094_v35  ;;  %vm1103_vm6 = vweird.f32 %v1094_v35 }
 0x958   :  { %v1087_v40 = vpop.xlane.xlu0 %1086 }
 0x959   :  { %v1092_v43 = vmul.f32 %v1087_v40, %v5245_v26 }
 0x95b   :  { %v4917_v48 = vpop.eup %4916  ;;  %v1095_v29 = vadd.f32 1e-05, %v1092_v43 }
 0x95c   :  { %v1098_v50 = vmul.f32 %v4917_v48, %v1094_v35  ;;  %vm1104_vm5 = vweird.f32 %v4917_v48 }
 0x95d   :  { %4918 = vrsqrt.f32 %v1095_v29  ;;  %vm1105_vm7 = vmor %vm1103_vm6, %vm1104_vm5  ;;  %vm1113_vm9 = vweird.f32 %v1095_v29 }
 0x95e   :  { %v1099_v51 = vmul.f32 %v4917_v48, %v1098_v50 }
 0x960   :  { %v1100_v44 = vmul.f32 0.5, %v1099_v51  ;;  %v1090_v53 = vpop.xlane.xlu2 %1089 }
 0x961   :  { %v1093_v55 = vmul.f32 %v1090_v53, %v5245_v26 }
 0x962   :  { %v1101_v56 = vsub.f32 1.5, %v1100_v44 }
 0x963   :  { %v4919_v57 = vpop.eup %4918  ;;  %v1096_v39 = vadd.f32 1e-05, %v1093_v55 }
 0x964   :  { %v1102_v58 = vmul.f32 %v4917_v48, %v1101_v56  ;;  %v1108_v61 = vmul.f32 %v4919_v57, %v1095_v29  ;;  %vm1114_vm8 = vweird.f32 %v4919_v57 }
 0x965   :  { %4920 = vrsqrt.f32 %v1096_v39  ;;  %vm1115_vm10 = vmor %vm1113_vm9, %vm1114_vm8  ;;  %vm1123_vm12 = vweird.f32 %v1096_v39 }
 0x966   :  { %v1109_v49 = vmul.f32 %v4919_v57, %v1108_v61  ;;  %v1106_v62 = vsel %vm1105_vm7, %v4917_v48, %v1102_v58 }
 0x967   :  { %v1127_v4 = vmul.f32 %v1106_v62, %v5614_v46 }
 0x968   :  { %v1110_v0 = vmul.f32 0.5, %v1109_v49 }
 0x969   :  { %v1131_v63 = vmul.f32 %v1130_v17, %v1127_v4 }
 0x96a   :  { %v1111_v1 = vsub.f32 1.5, %v1110_v0 }
 0x96b   :  { %v4921_v2 = vpop.eup %4920  ;;  %v1135_v19 = vadd.f32 %v1134_v14, %v1131_v63 }
 0x96c   :  { %v1112_v54 = vmul.f32 %v4919_v57, %v1111_v1  ;;  %v1118_v5 = vmul.f32 %v4921_v2, %v1096_v39  ;;  %vm1124_vm11 = vweird.f32 %v4921_v2 }
 0x96d   :  { %vm1125_vm13 = vmor %vm1123_vm12, %vm1124_vm11 }
 0x96e   :  { %v1116_v6 = vsel %vm1115_vm10, %v4919_v57, %v1112_v54  ;;  %v1119_v7 = vmul.f32 %v4921_v2, %v1118_v5 }
 0x96f   :  { %v1128_v12 = vmul.f32 %v1116_v6, %v5621_v60 }
 0x970   :  { %v1120_v34 = vmul.f32 0.5, %v1119_v7 }
 0x971   :  { %v1132_v16 = vmul.f32 %v1130_v17, %v1128_v12 }
 0x972   :  { %v1121_v18 = vsub.f32 1.5, %v1120_v34 }
 0x973   :  { %v1136_v3 = vadd.f32 %v1134_v14, %v1132_v16 }
 0x974   :  { %v1122_v11 = vmul.f32 %v4921_v2, %v1121_v18 }
 0x975   :  { %v1138_v46 = vpack.c.bf16 %v1136_v3, %v1135_v19 }
 0x976   :  { %v1126_v20 = vsel %vm1125_vm13, %v4921_v2, %v1122_v11 }
 0x977   :  { %4244 = vmatmul.msk.bf16.vlgmr.msrb.gmra.mxu2 %vm100_vm1, %v1138_v46  ;;  %4246 = vmatmul.msk.bf16.vlgmr.msrb.gmra.mxu3 %vm100_vm1, %v1138_v46  ;;  %v1129_v47 = vmul.f32 %v1126_v20, %v5628_v10 }
 0x979   :  { %v1133_v60 = vmul.f32 %v1130_v17, %v1129_v47 }
 0x97b   :  { %v1137_v21 = vadd.f32 %v1134_v14, %v1133_v60 }
 0x97d   :  { %v1139_v22 = vpack.c.bf16 %v1137_v21, %v1137_v21 }
 0x987   :  { %4245 = vmatmul.msk.bf16.gmra.mxu2 %vm100_vm1, %v1139_v22  ;;  %4247 = vmatmul.msk.bf16.gmra.mxu3 %vm100_vm1, %v1139_v22 }
 0x9fa   :  { %v1204_v23 = vpop.f32.mrf.mxu2  ;;  %v1222_v8 = vpop.f32.mrf.mxu3 }
 0xa02   :  { %v1206_v15 = vpop.f32.mrf.mxu2  ;;  %v1224_v25 = vpop.f32.mrf.mxu3 }
 0xa03   :  { %v1231_v24 = vpack.c.bf16 %v1206_v15, %v1204_v23  ;;  %v5710_v32 = vpack.c.bf16 %v1224_v25, %v1222_v8 }
 0xa05   :  { %1337 = vrot.lane.b32.xlu0 %v1231_v24, %s5159_s30 }
 0xa0a   :  { %v1209_v27 = vpop.f32.mrf.mxu2  ;;  %v1227_v28 = vpop.f32.mrf.mxu3 }
 0xa0b   :  { %v5699_v30 = vpack.c.bf16 %v1209_v27, %v1209_v27  ;;  %v5701_v31 = vpack.c.bf16 %v1227_v28, %v1227_v28 }
 0xa0d   :  { %1333 = vrot.lane.b32.xlu0 %v1231_v24, %s5158_s29  ;;  %1239 = vrot.lane.b32.xlu2 %v5699_v30, %s5157_s28  ;;  %v1313_v10 = vand.u32 %v5701_v31, %v5337_v59 }
 0xa0e   :  { %1339 = vrot.lane.b32.xlu1 %v5699_v30, %s5159_s30 }
 0xa0f   :  { %1321 = vmatpush.bf16.msra.mxu1 %v1313_v10 }
 0xa12   :  { %v1211_v33 = vpop.f32.mrf.mxu2  ;;  %v1229_v36 = vpop.f32.mrf.mxu3 }
 0xa13   :  { %1322 = vmatpush.bf16.msra.mxu1 %v5710_v32 }
 0xa15   :  { %1551 = vrot.lane.b32.xlu0 %v5699_v30, %s5161_s8  ;;  %1335 = vrot.lane.b32.xlu2 %v5699_v30, %s5158_s29 }
 0xa16   :  { %1237 = vrot.lane.b32.xlu1 %v1231_v24, %s5157_s28 }
 0xa1d   :  { %1545 = vrot.lane.b32.xlu0 %v1231_v24, %s5164_s11  ;;  %1446 = vrot.lane.b32.xlu2 %v5699_v30, %s5162_s9 }
 0xa1e   :  { %1549 = vrot.lane.b32.xlu1 %v1231_v24, %s5161_s8 }
 0xa25   :  { %1440 = vrot.lane.b32.xlu2 %v1231_v24, %s5163_s10 }
 0xa26   :  { %1444 = vrot.lane.b32.xlu1 %v1231_v24, %s5162_s9 }
 0xa67   :  { %v1240_v37 = vpop.permute.xlu2 %1239 }
 0xa68   :  { %v1251_v35 = vsel %vm285_vm14, %v1240_v37, 0 }
 0xa69   :  { %1259 = vmatpush.bf16.xpose.msra.mxu0 %v1251_v35 }
 0xa6f   :  { %v1336_v42 = vpop.permute.xlu2 %1335 }
 0xa77   :  { %v1338_v41 = vpop.permute.xlu0 %1337  ;;  %v1447_v48 = vpop.permute.xlu2 %1446 }
 0xa78   :  { %v1348_v53 = vsel %vm285_vm14, %v1338_v41, 0  ;;  %v1458_v55 = vsel %vm285_vm14, %v1447_v48, 0 }
 0xa7f   :  { %v1334_v38 = vpop.permute.xlu0 %1333  ;;  %v1441_v61 = vpop.permute.xlu2 %1440 }
 0xa80   :  { %v1340_v40 = vpop.permute.xlu1 %1339 }
 0xa81   :  { %v1351_v43 = vsel %vm285_vm14, %v1340_v40, 0 }
 0xa82   :  { %1359 = vmatpush.bf16.xpose.msra.mxu2 %v1351_v43 }
 0xa87   :  { %v1552_v29 = vpop.permute.xlu0 %1551 }
 0xa88   :  { %v1563_v50 = vsel %vm285_vm14, %v1552_v29, 0  ;;  %v1238_v51 = vpop.permute.xlu1 %1237 }
 0xa89   :  { %v1248_v44 = vsel %vm285_vm14, %v1238_v51, 0 }
 0xa8a   :  { %1260 = vmatpush.bf16.xpose.msra.mxu0 %v1248_v44  ;;  %1360 = vmatpush.bf16.xpose.msra.mxu2 %v1348_v53 }
 0xa8f   :  { %v1546_v49 = vpop.permute.xlu0 %1545 }
 0xa90   :  { %v1550_v56 = vpop.permute.xlu1 %1549 }
 0xa91   :  { %4248 = vmatmul.msk.bf16.vlgmr.msra.gmra.mxu0 %vm285_vm14, %v1231_v24  ;;  %4252 = vmatmul.msk.bf16.vlgmr.msra.gmra.mxu2 %vm285_vm14, %v1334_v38  ;;  %v1560_v57 = vsel %vm285_vm14, %v1550_v56, 0 }
 0xa92   :  { %1466 = vmatpush.bf16.xpose.msrb.mxu0 %v1458_v55  ;;  %1571 = vmatpush.bf16.xpose.msrb.mxu2 %v1563_v50 }
 0xa98   :  { %v1445_v39 = vpop.permute.xlu1 %1444 }
 0xa99   :  { %v1455_v58 = vsel %vm285_vm14, %v1445_v39, 0 }
 0xa9a   :  { %1572 = vmatpush.bf16.xpose.msrb.mxu2 %v1560_v57  ;;  %1467 = vmatpush.bf16.xpose.msrb.mxu0 %v1455_v58 }
 0xaa1   :  { %4249 = vmatmul.msk.bf16.gmra.mxu0 %vm285_vm14, %v5699_v30  ;;  %4253 = vmatmul.msk.bf16.gmra.mxu2 %vm285_vm14, %v1336_v42 }
 0xab1   :  { %4256 = vmatmul.msk.bf16.vlgmr.msrb.gmra.mxu0 %vm285_vm14, %v1441_v61  ;;  %4260 = vmatmul.msk.bf16.vlgmr.msrb.gmra.mxu2 %vm285_vm14, %v1546_v49 }
 0xb0e   :  { %v1262_v62 = vpop.f32.mrf.mxu0 }
 0xb0f   :  { %v1271_v0 = vsel %vm316_vm15, %v1262_v62, -inf }
 0xb10   :  { %1272 = vmax.xlane.f32.xlu2 %v1271_v0 }
 0xb14   :  { %v1362_v1 = vpop.f32.mrf.mxu2 }
 0xb15   :  { %v1371_v2 = vsel %vm316_vm15, %v1362_v1, -inf }
 0xb16   :  { %v1264_v17 = vpop.f32.mrf.mxu0  ;;  %1372 = vmax.xlane.f32.xlu0 %v1371_v2 }
 0xb17   :  { %v1274_v54 = vsel %vm316_vm15, %v1264_v17, -inf }
 0xb1c   :  { %v1364_v4 = vpop.f32.mrf.mxu2 }
 0xb1d   :  { %v1374_v5 = vsel %vm316_vm15, %v1364_v4, -inf }
 0xb1e   :  { %v1267_v6 = vpop.f32.mrf.mxu0  ;;  %1275 = vmax.xlane.f32.xlu0 %v1274_v54  ;;  %1375 = vmax.xlane.f32.xlu1 %v1374_v5 }
 0xb1f   :  { %v1277_v7 = vsel %vm323_vm3, %v1267_v6, -inf }
 0xb20   :  { %1278 = vmax.xlane.f32.xlu2 %v1277_v7 }
 0xb24   :  { %v1367_v63 = vpop.f32.mrf.mxu2 }
 0xb25   :  { %v1377_v12 = vsel %vm323_vm3, %v1367_v63, -inf }
 0xb26   :  { %v1269_v14 = vpop.f32.mrf.mxu0  ;;  %1378 = vmax.xlane.f32.xlu1 %v1377_v12 }
 0xb2c   :  { %v1369_v34 = vpop.f32.mrf.mxu2 }
 0xb2e   :  { %v1469_v16 = vpop.f32.mrf.mxu0 }
 0xb2f   :  { %v1478_v18 = vsel %vm316_vm15, %v1469_v16, -inf }
 0xb30   :  { %1479 = vmax.xlane.f32.xlu2 %v1478_v18 }
 0xb34   :  { %v1574_v19 = vpop.f32.mrf.mxu2 }
 0xb35   :  { %v1583_v3 = vsel %vm316_vm15, %v1574_v19, -inf }
 0xb36   :  { %1584 = vmax.xlane.f32.xlu0 %v1583_v3  ;;  %v5747_v11 = vpop.f32.mrf.mxu0 }
 0xb37   :  { %v1481_v46 = vsel %vm316_vm15, %v5747_v11, -inf }
 0xb3c   :  { %v5755_v20 = vpop.f32.mrf.mxu2 }
 0xb3d   :  { %v1586_v47 = vsel %vm316_vm15, %v5755_v20, -inf }
 0xb3e   :  { %1482 = vmax.xlane.f32.xlu0 %v1481_v46 }
 0xb3f   :  { %1408 = vrot.lane.b32.xlu1 %v5710_v32, %s5158_s29 }
 0xb52   :  { %1410 = vrot.lane.b32.xlu0 %v5701_v31, %s5158_s29 }
 0xb69   :  { %1587 = vmax.xlane.f32.xlu1 %v1586_v47 }
 0xb83   :  { %v1273_v60 = vpop.xlane.xlu2 %1272 }
 0xb84   :  { %v1280_v21 = vsub.f32 %v1262_v62, %v1273_v60 }
 0xb86   :  { %v1283_v22 = vmul.f32 1.442695, %v1280_v21 }
 0xb88   :  { %4922 = vpow2.f32 %v1283_v22 }
 0xb89   :  { %v1373_v23 = vpop.xlane.xlu0 %1372 }
 0xb8a   :  { %v1380_v8 = vsub.f32 %v1362_v1, %v1373_v23 }
 0xb8c   :  { %v1383_v15 = vmul.f32 1.442695, %v1380_v8 }
 0xb8e   :  { %v5759_v25 = vpop.eup %4922  ;;  %4924 = vpow2.f32 %v1383_v15 }
 0xb8f   :  { %v1289_v24 = vsel %vm316_vm15, %v5759_v25, 0.0 }
 0xb90   :  { %1290 = vadd.xlane.f32.xlu1 %v1289_v24 }
 0xb91   :  { %v1276_v27 = vpop.xlane.xlu0 %1275  ;;  %v1376_v28 = vpop.xlane.xlu1 %1375 }
 0xb92   :  { %v1281_v10 = vsub.f32 %v1264_v17, %v1276_v27  ;;  %v1381_v35 = vsub.f32 %v1364_v4, %v1376_v28 }
 0xb93   :  { %v1279_v33 = vpop.xlane.xlu2 %1278 }
 0xb94   :  { %v5763_v36 = vpop.eup %4924  ;;  %v1285_v37 = vmul.f32 1.442695, %v1281_v10  ;;  %v1282_v41 = vsub.f32 %v1267_v6, %v1279_v33  ;;  %v1385_v40 = vmul.f32 1.442695, %v1381_v35 }
 0xb95   :  { %v1389_v38 = vsel %vm316_vm15, %v5763_v36, 0.0 }
 0xb96   :  { %4926 = vpow2.f32 %v1285_v37  ;;  %v1287_v42 = vmul.f32 1.442695, %v1282_v41 }
 0xb98   :  { %4928 = vpow2.f32 %v1287_v42  ;;  %1390 = vadd.xlane.f32.xlu1 %v1389_v38 }
 0xb99   :  { %v1379_v43 = vpop.xlane.xlu1 %1378  ;;  %4930 = vpow2.f32 %v1385_v40 }
 0xb9a   :  { %v1382_v29 = vsub.f32 %v1367_v63, %v1379_v43 }
 0xb9c   :  { %v4927_v48 = vpop.eup %4926  ;;  %v1387_v53 = vmul.f32 1.442695, %v1382_v29 }
 0xb9d   :  { %v1292_v50 = vsel %vm316_vm15, %v4927_v48, 0.0 }
 0xb9e   :  { %v5768_v51 = vpop.eup %4928  ;;  %1293 = vadd.xlane.f32.xlu2 %v1292_v50  ;;  %4932 = vpow2.f32 %v1387_v53 }
 0xb9f   :  { %v1295_v44 = vsel %vm323_vm3, %v5768_v51, 0.0  ;;  %v5772_v55 = vpop.eup %4930 }
 0xba0   :  { %1296 = vadd.xlane.f32.xlu0 %v1295_v44  ;;  %v1392_v39 = vsel %vm316_vm15, %v5772_v55, 0.0 }
 0xba3   :  { %v1480_v56 = vpop.xlane.xlu2 %1479 }
 0xba4   :  { %v1487_v57 = vsub.f32 %v1469_v16, %v1480_v56  ;;  %v5776_v49 = vpop.eup %4932 }
 0xba5   :  { %v1395_v0 = vsel %vm323_vm3, %v5776_v49, 0.0 }
 0xba6   :  { %1393 = vadd.xlane.f32.xlu2 %v1392_v39  ;;  %v1490_v58 = vmul.f32 1.442695, %v1487_v57 }
 0xba8   :  { %4934 = vpow2.f32 %v1490_v58 }
 0xba9   :  { %v1585_v61 = vpop.xlane.xlu0 %1584 }
 0xbaa   :  { %v1592_v62 = vsub.f32 %v1574_v19, %v1585_v61 }
 0xbac   :  { %v1595_v1 = vmul.f32 1.442695, %v1592_v62 }
 0xbae   :  { %1396 = vadd.xlane.f32.xlu2 %v1395_v0  ;;  %v5782_v2 = vpop.eup %4934  ;;  %4936 = vpow2.f32 %v1595_v1 }
 0xbaf   :  { %v1496_v17 = vsel %vm316_vm15, %v5782_v2, 0.0 }
 0xbb1   :  { %1620 = vrot.lane.b32.xlu1 %v5701_v31, %s5164_s11  ;;  %v1483_v54 = vpop.xlane.xlu0 %1482  ;;  %v1409_v12 = vpop.permute.xlu1 %1408 }
 0xbb2   :  { %v1488_v63 = vsub.f32 %v5747_v11, %v1483_v54 }
 0xbb4   :  { %1618 = vrot.lane.b32.xlu0 %v5710_v32, %s5164_s11  ;;  %v5788_v4 = vpop.eup %4936  ;;  %v1492_v14 = vmul.f32 1.442695, %v1488_v63 }
 0xbb5   :  { %v1601_v5 = vsel %vm316_vm15, %v5788_v4, 0.0 }
 0xbb6   :  { %1497 = vadd.xlane.f32.xlu2 %v1496_v17  ;;  %4938 = vpow2.f32 %v1492_v14 }
 0xbbc   :  { %v5796_v34 = vpop.eup %4938 }
 0xbbd   :  { %v1499_v16 = vsel %vm316_vm15, %v5796_v34, 0.0 }
 0xbbe   :  { %1602 = vadd.xlane.f32.xlu2 %v1601_v5 }
 0xbc4   :  { %v1411_v6 = vpop.permute.xlu0 %1410 }
 0xbc5   :  { %v1420_v7 = vand.u32 %v1411_v6, %v5337_v59 }
 0xbc7   :  { %1428 = vmatpush.bf16.msra.mxu3 %v1420_v7 }
 0xbcb   :  { %1429 = vmatpush.bf16.msra.mxu3 %v1409_v12 }
 0xbd6   :  { %1515 = vrot.lane.b32.xlu2 %v5701_v31, %s5163_s10 }
 0xbdb   :  { %1500 = vadd.xlane.f32.xlu1 %v1499_v16 }
 0xbdc   :  { %v1588_v18 = vpop.xlane.xlu1 %1587 }
 0xbdd   :  { %v1593_v19 = vsub.f32 %v5755_v20, %v1588_v18 }
 0xbdf   :  { %v1597_v3 = vmul.f32 1.442695, %v1593_v19 }
 0xbe1   :  { %4940 = vpow2.f32 %v1597_v3 }
 0xbe7   :  { %v4941_v46 = vpop.eup %4940 }
 0xbe8   :  { %v1604_v11 = vsel %vm316_vm15, %v4941_v46, 0.0 }
 0xbff   :  { %1605 = vadd.xlane.f32.xlu2 %v1604_v11 }
 0xc03   :  { %v1291_v47 = vpop.xlane.xlu1 %1290 }
 0xc04   :  { %4942 = vrcp.f32 %v1291_v47 }
 0xc0a   :  { %v4943_v21 = vpop.eup %4942 }
 0xc0b   :  { %v1391_v31 = vpop.xlane.xlu1 %1390  ;;  %v1301_v23 = vmul.f32 %v4943_v21, %v5759_v25 }
 0xc11   :  { %v1294_v60 = vpop.xlane.xlu2 %1293 }
 0xc12   :  { %4944 = vrcp.f32 %v1294_v60 }
 0xc13   :  { %4946 = vrcp.f32 %v1391_v31  ;;  %v1297_v24 = vpop.xlane.xlu0 %1296 }
 0xc17   :  { %1513 = vrot.lane.b32.xlu2 %v5710_v32, %s5163_s10 }
 0xc18   :  { %v4945_v22 = vpop.eup %4944 }
 0xc19   :  { %v1302_v20 = vmul.f32 %v4945_v22, %v4927_v48  ;;  %v1394_v8 = vpop.xlane.xlu2 %1393  ;;  %v4947_v27 = vpop.eup %4946  ;;  %v4715_v22 = vld [vmem:[%s6767_s4 + $0x38] sm:$0xff] }
 0xc1a   :  { %4948 = vrcp.f32 %v1394_v8  ;;  %v1401_v10 = vmul.f32 %v4947_v27, %v5763_v36  ;;  %1740 = vmatpush.bf16.msra.mxu0 %v4715_v22  ;;  %v4712_v8 = vld [vmem:[%s6767_s4 + $0x20] sm:$0xff] }
 0xc1b   :  { %v1304_v15 = vpack.c.bf16 %v1302_v20, %v1301_v23  ;;  %4950 = vrcp.f32 %v1297_v24  ;;  %v4714_v23 = vld [vmem:[%s6767_s4 + $0x30] sm:$0xff]  ;;  %v4713_v20 = vld [vmem:[%s6767_s4 + $0x28] sm:$0xff] }
 0xc1d   :  { %4250 = vmatmul.msk.bf16.vlgmr.msra.gmra.mxu1 %vm316_vm15, %v1304_v15 }
 0xc1e   :  { %1741 = vmatpush.bf16.msra.mxu0 %v4714_v23 }
 0xc1f   :  { %1442 = vrot.lane.b32.xlu2 %v5699_v30, %s5163_s10 }
 0xc20   :  { %v4949_v28 = vpop.eup %4948 }
 0xc21   :  { %v1402_v32 = vmul.f32 %v4949_v28, %v5772_v55  ;;  %v1397_v33 = vpop.xlane.xlu2 %1396  ;;  %v4951_v35 = vpop.eup %4950 }
 0xc22   :  { %4952 = vrcp.f32 %v1397_v33  ;;  %v1303_v42 = vmul.f32 %v4951_v35, %v5768_v51  ;;  %1742 = vmatpush.bf16.msra.mxu0 %v4713_v20 }
 0xc23   :  { %v1404_v37 = vpack.c.bf16 %v1402_v32, %v1401_v10  ;;  %v1621_v25 = vpop.permute.xlu1 %1620 }
 0xc24   :  { %v1630_v41 = vand.u32 %v1621_v25, %v5337_v59  ;;  %v1305_v43 = vpack.c.bf16 %v1303_v42, %v1303_v42 }
 0xc25   :  { %4254 = vmatmul.msk.bf16.vlgmr.msra.gmra.mxu3 %vm316_vm15, %v1404_v37 }
 0xc26   :  { %1638 = vmatpush.bf16.msrb.mxu3 %v1630_v41  ;;  %v1619_v38 = vpop.permute.xlu0 %1618  ;;  %1743 = vmatpush.bf16.msra.mxu0 %v4712_v8 }
 0xc28   :  { %v4953_v48 = vpop.eup %4952 }
 0xc29   :  { %v1498_v40 = vpop.xlane.xlu2 %1497  ;;  %v1403_v36 = vmul.f32 %v4953_v48, %v5776_v49 }
 0xc2a   :  { %1639 = vmatpush.bf16.msrb.mxu3 %v1619_v38 }
 0xc2b   :  { %v1405_v50 = vpack.c.bf16 %v1403_v36, %v1403_v36  ;;  %v5851_v36 = vperm.slane %v5687_v52, 2 }
 0xc2d   :  { %4251 = vmatmul.msk.bf16.gmra.mxu1 %vm316_vm15, %v1305_v43 }
 0xc31   :  { %v1603_v29 = vpop.xlane.xlu2 %1602 }
 0xc35   :  { %4255 = vmatmul.msk.bf16.gmra.mxu3 %vm316_vm15, %v1405_v50 }
 0xc39   :  { %v1516_v44 = vpop.permute.xlu2 %1515 }
 0xc3a   :  { %v1525_v53 = vand.u32 %v1516_v44, %v5337_v59 }
 0xc3c   :  { %1533 = vmatpush.bf16.msrb.mxu1 %v1525_v53 }
 0xc4e   :  { %v1501_v55 = vpop.xlane.xlu1 %1500 }
 0xc4f   :  { %4954 = vrcp.f32 %v1501_v55 }
 0xc50   :  { %4956 = vrcp.f32 %v1498_v40 }
 0xc51   :  { %4958 = vrcp.f32 %v1603_v29 }
 0xc55   :  { %v4955_v56 = vpop.eup %4954 }
 0xc56   :  { %v4957_v57 = vpop.eup %4956  ;;  %v1509_v58 = vmul.f32 %v4955_v56, %v5796_v34 }
 0xc57   :  { %v4959_v39 = vpop.eup %4958  ;;  %v1508_v49 = vmul.f32 %v4957_v57, %v5782_v2 }
 0xc58   :  { %v1613_v62 = vmul.f32 %v4959_v39, %v5788_v4 }
 0xc59   :  { %v1511_v17 = vpack.c.bf16 %v1509_v58, %v1508_v49 }
 0xc72   :  { %v1606_v51 = vpop.xlane.xlu2 %1605 }
 0xc73   :  { %4960 = vrcp.f32 %v1606_v51 }
 0xc79   :  { %v4961_v61 = vpop.eup %4960 }
 0xc7a   :  { %v1614_v0 = vmul.f32 %v4961_v61, %v4941_v46  ;;  %v1514_v1 = vpop.permute.xlu2 %1513 }
 0xc7b   :  { %1534 = vmatpush.bf16.msrb.mxu1 %v1514_v1 }
 0xc7c   :  { %v1616_v54 = vpack.c.bf16 %v1614_v0, %v1613_v62 }
 0xc7e   :  { %4258 = vmatmul.msk.bf16.vlgmr.msrb.gmra.mxu1 %vm316_vm15, %v1511_v17  ;;  %4262 = vmatmul.msk.bf16.vlgmr.msrb.gmra.mxu3 %vm316_vm15, %v1616_v54 }
 0xc82   :  { %v1443_v5 = vpop.permute.xlu2 %1442 }
 0xc83   :  { %4257 = vmatmul.msk.bf16.gmra.mxu0 %vm285_vm14, %v1443_v5 }
 0xc9a   :  { %v1324_v6 = vpop.f32.mrf.mxu1 }
 0xca2   :  { %v1326_v7 = vpop.f32.mrf.mxu1 }
 0xca8   :  { %v1431_v63 = vpop.f32.mrf.mxu3 }
 0xcaa   :  { %v5823_v12 = vpop.f32.mrf.mxu1 }
 0xcb0   :  { %v1433_v2 = vpop.f32.mrf.mxu3 }
 0xcb1   :  { %v4803_v14 = vpack.i.bf16 %v1433_v2, %v1431_v63  ;;  %v4719_v2 = vld [vmem:[%s6768_s5 + $0x78] sm:$0xff] }
 0xcb2   :  { %v1331_v4 = vpop.f32.mrf.mxu1  ;;  %1897 = vmatpush.bf16.msra.mxu1 %v4719_v2 }
 0xcb3   :  { %4804 = vrot.lane.b32.xlu0 %v4803_v14, %s5161_s8  ;;  %v4718_v14 = vld [vmem:[%s6768_s5 + $0x70] sm:$0xff]  ;;  %v4717_v4 = vld [vmem:[%s6768_s5 + $0x68] sm:$0xff] }
 0xcb6   :  { %1898 = vmatpush.bf16.msra.mxu1 %v4718_v14 }
 0xcb8   :  { %v5826_v34 = vpop.f32.mrf.mxu3 }
 0xcba   :  { %1899 = vmatpush.bf16.msra.mxu1 %v4717_v4 }
 0xcc0   :  { %v1438_v16 = vpop.f32.mrf.mxu3 }
 0xcfb   :  { %v1536_v18 = vpop.f32.mrf.mxu1 }
 0xd00   :  { %v1474_v19 = vpop.f32.mrf.mxu0 }
 0xd01   :  { %v1641_v3 = vpop.f32.mrf.mxu3  ;;  %v1484_v46 = vsel %vm323_vm3, %v1474_v19, -inf }
 0xd02   :  { %1485 = vmax.xlane.f32.xlu0 %v1484_v46 }
 0xd03   :  { %v1538_v11 = vpop.f32.mrf.mxu1 }
 0xd04   :  { %v4808_v47 = vpack.i.bf16 %v1538_v11, %v1536_v18 }
 0xd06   :  { %4809 = vrot.lane.b32.xlu1 %v4808_v47, %s5162_s9 }
 0xd08   :  { %v1476_v60 = vpop.f32.mrf.mxu0 }
 0xd09   :  { %v1643_v31 = vpop.f32.mrf.mxu3 }
 0xd0a   :  { %v4813_v21 = vpack.i.bf16 %v1643_v31, %v1641_v3 }
 0xd0c   :  { %4814 = vrot.lane.b32.xlu2 %v4813_v21, %s5159_s30 }
 0xd25   :  { %v4805_v15 = vpop.permute.xlu0 %4804 }
 0xd26   :  { %v4807_v24 = vunpack.i.h.bf16 %v4805_v15  ;;  %v4806_v27 = vunpack.i.l.bf16 %v4805_v15 }
 0xd28   :  { %v1687_v37 = vsel %vm285_vm14, %v1326_v7, %v4807_v24  ;;  %v1686_v25 = vsel %vm285_vm14, %v1324_v6, %v4806_v27 }
 0xd66   :  { %v4815_v28 = vpop.permute.xlu2 %4814 }
 0xd67   :  { %v4817_v35 = vunpack.i.h.bf16 %v4815_v28  ;;  %v4816_v41 = vunpack.i.l.bf16 %v4815_v28 }
 0xd75   :  { %v1486_v39 = vpop.xlane.xlu0 %1485 }
 0xd76   :  { %v1489_v58 = vsub.f32 %v1474_v19, %v1486_v39 }
 0xd78   :  { %v4810_v10 = vpop.permute.xlu1 %4809  ;;  %v1494_v49 = vmul.f32 1.442695, %v1489_v58  ;;  %v4724_v58 = vld [vmem:[%s6768_s5 + $0xa0] sm:$0xff] }
 0xd79   :  { %v4812_v32 = vunpack.i.h.bf16 %v4810_v10  ;;  %v4811_v33 = vunpack.i.l.bf16 %v4810_v10 }
 0xd7a   :  { %4962 = vpow2.f32 %v1494_v49  ;;  %v4723_v49 = vld [vmem:[%s6768_s5 + $0x98] sm:$0xff] }
 0xd7b   :  { %v1689_v42 = vsel %vm739_vm4, %v1686_v25, %v4811_v33  ;;  %v1690_v38 = vsel %vm739_vm4, %v1687_v37, %v4812_v32 }
 0xd7c   :  { %v1692_v40 = vsel %vm74_vm0, %v1689_v42, %v4816_v41  ;;  %v1693_v43 = vsel %vm74_vm0, %v1690_v38, %v4817_v35  ;;  %v5887_v35 = vperm.slane %v5687_v52, 3 }
 0xd7d   :  { %v1695_v48 = vpack.c.bf16 %v1693_v43, %v1692_v40  ;;  %v5890_v40 = vperm.slane %v5687_v52, 4 }
 0xd7f   :  { %4288 = vmatmul.msk.bf16.vlgmr.msra.gmra.mxu0 %vm100_vm1, %v1695_v48 }
 0xd80   :  { %v4963_v5 = vpop.eup %4962 }
 0xd81   :  { %v1502_v7 = vsel %vm323_vm3, %v4963_v5, 0.0 }
 0xdfc   :  { %v1745_v29 = vpop.f32.mrf.mxu0 }
 0xdfd   :  { %v1754_v50 = vadd.f32 %v1745_v29, %v5598_v45 }
 0xdff   :  { %v5855_v44 = vadd.f32 %v5851_v36, %v1754_v50 }
 0xe01   :  { %v1761_v53 = vsel %vm100_vm1, %v5855_v44, 0.0 }
 0xe02   :  { %1762 = vadd.xlane.f32.xlu2 %v1761_v53 }
 0xe04   :  { %v1747_v55 = vpop.f32.mrf.mxu0 }
 0xe05   :  { %v1755_v51 = vadd.f32 %v1747_v55, %v5603_v9 }
 0xe07   :  { %v1759_v56 = vadd.f32 %v5851_v36, %v1755_v51  ;;  %v4727_v51 = vld [vmem:[%s6768_s5 + $0xb8] sm:$0xff] }
 0xe08   :  { %1988 = vmatpush.bf16.msra.mxu2 %v4727_v51 }
 0xe09   :  { %v1764_v57 = vsel %vm100_vm1, %v1759_v56, 0.0 }
 0xe0a   :  { %1765 = vadd.xlane.f32.xlu1 %v1764_v57  ;;  %v4725_v57 = vld [vmem:[%s6768_s5 + $0xa8] sm:$0xff] }
 0xe75   :  { %v1763_v61 = vpop.xlane.xlu2 %1762 }
 0xe76   :  { %v1770_v45 = vmul.f32 %v1763_v61, %v5245_v26 }
 0xe78   :  { %v1773_v62 = vsub.f32 %v5855_v44, %v1770_v45 }
 0xe7a   :  { %v1776_v0 = vmul.f32 %v1773_v62, %v1773_v62 }
 0xe7c   :  { %v1779_v1 = vsel %vm100_vm1, %v1776_v0, 0.0  ;;  %v4722_v0 = vld [vmem:[%s6768_s5 + $0x90] sm:$0xff] }
 0xe7d   :  { %1780 = vadd.xlane.f32.xlu0 %v1779_v1  ;;  %v1766_v17 = vpop.xlane.xlu1 %1765 }
 0xe7e   :  { %v1771_v9 = vmul.f32 %v1766_v17, %v5245_v26  ;;  %v4721_v17 = vld [vmem:[%s6768_s5 + $0x88] sm:$0xff] }
 0xe80   :  { %v1774_v54 = vsub.f32 %v1759_v56, %v1771_v9  ;;  %v4726_v56 = vld [vmem:[%s6768_s5 + $0xb0] sm:$0xff]  ;;  %v4720_v9 = vld [vmem:[%s6768_s5 + $0x80] sm:$0xff] }
 0xe81   :  { %1989 = vmatpush.bf16.msra.mxu2 %v4726_v56 }
 0xe82   :  { %v1777_v6 = vmul.f32 %v1774_v54, %v1774_v54 }
 0xe84   :  { %v1782_v63 = vsel %vm100_vm1, %v1777_v6, 0.0 }
 0xe85   :  { %1503 = vadd.xlane.f32.xlu0 %v1502_v7  ;;  %1783 = vadd.xlane.f32.xlu2 %v1782_v63 }
 0xe86   :  { %1990 = vmatpush.bf16.msra.mxu2 %v4725_v57  ;;  %v4678_v57 = vld [vmem:[%s6764_s1 + $0x30] sm:$0xff] }
 0xe87   :  { %2070 = vmatpush.bf16.msra.mxu3 %v4678_v57 }
 0xe8a   :  { %1991 = vmatpush.bf16.msra.mxu2 %v4724_v58  ;;  %v4677_v58 = vld [vmem:[%s6764_s1 + $0x28] sm:$0xff] }
 0xe8b   :  { %2071 = vmatpush.bf16.msra.mxu3 %v4677_v58 }
 0xe8e   :  { %1992 = vmatpush.bf16.msra.mxu2 %v4723_v49 }
 0xe92   :  { %1993 = vmatpush.bf16.msra.mxu2 %v4722_v0  ;;  %v5120_v0 = vld [vmem:[%s6764_s1 + $0x8] sm:$0xff] }
 0xe96   :  { %1994 = vmatpush.bf16.msra.mxu2 %v4721_v17  ;;  %v5121_v17 = vld [vmem:[%s6764_s1] sm:$0xff] }
 0xe9a   :  { %1995 = vmatpush.bf16.msra.mxu2 %v4720_v9 }
 0xe9d   :  { %1547 = vrot.lane.b32.xlu2 %v5699_v30, %s5164_s11  ;;  %v4716_v30 = vld [vmem:[%s6768_s5 + $0x60] sm:$0xff] }
 0xe9e   :  { %1900 = vmatpush.bf16.msra.mxu1 %v4716_v30 }
 0xef0   :  { %v1781_v16 = vpop.xlane.xlu0 %1780 }
 0xef1   :  { %v1788_v18 = vmul.f32 %v1781_v16, %v5245_v26 }
 0xef3   :  { %v1791_v19 = vadd.f32 1e-05, %v1788_v18 }
 0xef5   :  { %4964 = vrsqrt.f32 %v1791_v19  ;;  %vm1800_vm6 = vweird.f32 %v1791_v19 }
 0xef8   :  { %v1504_v3 = vpop.xlane.xlu0 %1503  ;;  %v1784_v46 = vpop.xlane.xlu2 %1783 }
 0xef9   :  { %4966 = vrcp.f32 %v1504_v3  ;;  %v1789_v11 = vmul.f32 %v1784_v46, %v5245_v26 }
 0xefb   :  { %v4965_v47 = vpop.eup %4964  ;;  %v1792_v60 = vadd.f32 1e-05, %v1789_v11 }
 0xefc   :  { %v1795_v31 = vmul.f32 %v4965_v47, %v1791_v19  ;;  %vm1801_vm5 = vweird.f32 %v4965_v47 }
 0xefd   :  { %4968 = vrsqrt.f32 %v1792_v60  ;;  %vm1802_vm7 = vmor %vm1800_vm6, %vm1801_vm5  ;;  %vm1810_vm9 = vweird.f32 %v1792_v60 }
 0xefe   :  { %v1796_v21 = vmul.f32 %v4965_v47, %v1795_v31 }
 0xeff   :  { %v4967_v22 = vpop.eup %4966 }
 0xf00   :  { %v1797_v23 = vmul.f32 0.5, %v1796_v21  ;;  %v1548_v20 = vpop.permute.xlu2 %1547  ;;  %v1510_v8 = vmul.f32 %v4967_v22, %v4963_v5 }
 0xf01   :  { %4261 = vmatmul.msk.bf16.gmra.mxu2 %vm285_vm14, %v1548_v20 }
 0xf02   :  { %v1798_v15 = vsub.f32 1.5, %v1797_v23  ;;  %v1512_v24 = vpack.c.bf16 %v1510_v8, %v1510_v8 }
 0xf03   :  { %v4969_v27 = vpop.eup %4968 }
 0xf04   :  { %v1799_v28 = vmul.f32 %v4965_v47, %v1798_v15  ;;  %v1805_v10 = vmul.f32 %v4969_v27, %v1792_v60  ;;  %4259 = vmatmul.msk.bf16.gmra.mxu1 %vm316_vm15, %v1512_v24  ;;  %vm1811_vm8 = vweird.f32 %v4969_v27 }
 0xf05   :  { %vm1812_vm10 = vmor %vm1810_vm9, %vm1811_vm8 }
 0xf06   :  { %v1806_v32 = vmul.f32 %v4969_v27, %v1805_v10  ;;  %v1803_v33 = vsel %vm1802_vm7, %v4965_v47, %v1799_v28 }
 0xf07   :  { %v1824_v41 = vmul.f32 %v1803_v33, %v1773_v62  ;;  %v2005_v33 = vperm.slane %v5687_v52, 5 }
 0xf08   :  { %v1807_v37 = vmul.f32 0.5, %v1806_v32 }
 0xf09   :  { %v1828_v43 = vmul.f32 %v5887_v35, %v1824_v41 }
 0xf0a   :  { %v1808_v25 = vsub.f32 1.5, %v1807_v37 }
 0xf0b   :  { %v1832_v50 = vadd.f32 %v5890_v40, %v1828_v43 }
 0xf0c   :  { %v1809_v42 = vmul.f32 %v4969_v27, %v1808_v25 }
 0xf0e   :  { %v1813_v38 = vsel %vm1812_vm10, %v4969_v27, %v1809_v42 }
 0xf0f   :  { %v1825_v48 = vmul.f32 %v1813_v38, %v1774_v54  ;;  %v5925_v54 = vperm.slane %v5687_v52, 6 }
 0xf11   :  { %v1829_v29 = vmul.f32 %v5887_v35, %v1825_v48 }
 0xf13   :  { %v1833_v53 = vadd.f32 %v5890_v40, %v1829_v29 }
 0xf15   :  { %v1835_v55 = vpack.c.bf16 %v1833_v53, %v1832_v50 }
 0xf17   :  { %4330 = vmatmul.msk.bf16.vlgmr.msra.gmra.mxu1 %vm100_vm1, %v1835_v55 }
 0xf81   :  { %v5906_v39 = vpop.f32.mrf.mxu1 }
 0xf84   :  { %v1579_v61 = vpop.f32.mrf.mxu2 }
 0xf85   :  { %v1589_v45 = vsel %vm323_vm3, %v1579_v61, -inf }
 0xf86   :  { %1590 = vmax.xlane.f32.xlu0 %v1589_v45  ;;  %v5119_v45 = vld [vmem:[%s6764_s1 + $0x10] sm:$0xff] }
 0xf89   :  { %v1543_v62 = vpop.f32.mrf.mxu1 }
 0xf8c   :  { %v1581_v1 = vpop.f32.mrf.mxu2 }
 0xf94   :  { %v1902_v5 = vpop.f32.mrf.mxu1 }
 0xf95   :  { %v1903_v6 = vadd.f32 %v1902_v5, %v5925_v54 }
 0xf97   :  { %v1914_v7 = vmul.f32 0.044715, %v1903_v6  ;;  %v1911_v21 = vmul.f32 0.5, %v1903_v6 }
 0xf99   :  { %v1917_v63 = vmul.f32 %v1914_v7, %v1903_v6 }
 0xf9b   :  { %v1920_v2 = vmul.f32 %v1917_v63, %v1903_v6 }
 0xf9c   :  { %v1904_v14 = vpop.f32.mrf.mxu1 }
 0xf9d   :  { %v1923_v4 = vadd.f32 %v1920_v2, %v1903_v6  ;;  %v1905_v16 = vadd.f32 %v1904_v14, %v5925_v54  ;;  %v5966_v14 = vld [vmem:[%s6765_s2 + $0x10] sm:$0xf] }
 0xf9f   :  { %v1915_v18 = vmul.f32 0.044715, %v1905_v16  ;;  %v1926_v19 = vmul.f32 0.7978846, %v1923_v4  ;;  %v1912_v22 = vmul.f32 0.5, %v1905_v16  ;;  %v2030_v4 = vrot.slane %v5966_v14, 1 }
 0xfa1   :  { %v1918_v30 = vmul.f32 %v1915_v18, %v1905_v16  ;;  %4970 = vtanh.f32 %v1926_v19  ;;  %v2033_v18 = vrot.slane %v5966_v14, 2 }
 0xfa3   :  { %v1921_v3 = vmul.f32 %v1918_v30, %v1905_v16 }
 0xfa5   :  { %v1924_v46 = vadd.f32 %v1921_v3, %v1905_v16 }
 0xfa7   :  { %v1927_v11 = vmul.f32 0.7978846, %v1924_v46  ;;  %v4971_v47 = vpop.eup %4970 }
 0xfa8   :  { %v1932_v60 = vadd.f32 1.0, %v4971_v47 }
 0xfa9   :  { %4972 = vtanh.f32 %v1927_v11  ;;  %v4728_v11 = vld [vmem:[%s6763_s0 + $0xc] sm:$0xff] }
 0xfaa   :  { %v1935_v20 = vmul.f32 %v1932_v60, %v1911_v21 }
 0xfaf   :  { %v4973_v31 = vpop.eup %4972 }
 0xfb0   :  { %v1933_v23 = vadd.f32 1.0, %v4973_v31  ;;  %v4383_v31 = vld [vmem:[%s6763_s0 + $0x14] sm:$0x1] }
 0xfb2   :  { %v1936_v8 = vmul.f32 %v1933_v23, %v1912_v22 }
 0xfb4   :  { %v1938_v15 = vpack.c.bf16 %v1936_v8, %v1935_v20  ;;  %v2089_v8 = vunpack.c.l.b16 %v4383_v31  ;;  %v4732_v31 = vld [vmem:[%s6766_s3 + $0x14] sm:$0xf0] }
 0xfb6   :  { %1996 = vmatmul.bf16.vlgmr.msra.gmra.mxu2 %v1938_v15 }
 0xff9   :  { %v1591_v24 = vpop.xlane.xlu0 %1590 }
 0xffa   :  { %v1594_v27 = vsub.f32 %v1579_v61, %v1591_v24  ;;  %v4676_v61 = vld [vmem:[%s6764_s1 + $0x20] sm:$0xff]  ;;  %v2091_v24 = vpack.c.b16 %v2089_v8, %v2089_v8  ;;  %v4730_v8 = vld [vmem:[%s6766_s3 + $0x4] sm:$0xf0] }
 0xffb   :  { %2072 = vmatpush.bf16.msra.mxu3 %v4676_v61 }
 0xffc   :  { %v1599_v28 = vmul.f32 1.442695, %v1594_v27  ;;  %v2061_v27 = vrot.slane %v5966_v14, 3 }
 0xffe   :  { %4974 = vpow2.f32 %v1599_v28 }
0x1004   :  { %v4975_v10 = vpop.eup %4974 }
0x1005   :  { %v1607_v32 = vsel %vm323_vm3, %v4975_v10, 0.0 }
0x1006   :  { %1608 = vadd.xlane.f32.xlu1 %v1607_v32 }
0x1039   :  { %v1997_v37 = vpop.f32.mrf.mxu2 }
0x103a   :  { %v2004_v25 = vadd.f32 %v1997_v37, %v5855_v44 }
0x103c   :  { %v2006_v41 = vadd.f32 %v2005_v33, %v2004_v25  ;;  %v5123_v33 = vld [vmem:[%s6765_s2] sm:$0xff] }
0x103e   :  { %v2007_v42 = vsel %vm107_vm2, %v2006_v41, 0.0 }
0x103f   :  { %2008 = vadd.xlane.f32.xlu0 %v2007_v42 }
0x1041   :  { %v1999_v38 = vpop.f32.mrf.mxu2 }
0x1053   :  { %1657 = vrot.lane.b32.xlu0 %v5826_v34, %s5161_s8 }
0x1079   :  { %v1609_v43 = vpop.xlane.xlu1 %1608 }
0x107a   :  { %4976 = vrcp.f32 %v1609_v43 }
0x1080   :  { %v4977_v48 = vpop.eup %4976 }
0x1081   :  { %v1615_v29 = vmul.f32 %v4977_v48, %v4975_v10  ;;  %v5124_v48 = vld [vmem:[%s6765_s2 + $0x8] sm:$0xff] }
0x1083   :  { %v1617_v50 = vpack.c.bf16 %v1615_v29, %v1615_v29 }
0x1085   :  { %4263 = vmatmul.msk.bf16.gmra.mxu3 %vm316_vm15, %v1617_v50 }
0x10b2   :  { %v2009_v53 = vpop.xlane.xlu0 %2008 }
0x10b3   :  { %v2010_v52 = vmul.f32 %v2009_v53, %v5245_v26 }
0x10b5   :  { %v2011_v55 = vsub.f32 %v2006_v41, %v2010_v52 }
0x10b7   :  { %v2012_v44 = vmul.f32 %v2011_v55, %v2011_v55 }
0x10b9   :  { %v2013_v51 = vsel %vm107_vm2, %v2012_v44, 0.0 }
0x10ba   :  { %2014 = vadd.xlane.f32.xlu1 %v2013_v51 }
0x10c5   :  { %v1658_v47 = vpop.permute.xlu0 %1657 }
0x10c6   :  { %v1688_v21 = vsel %vm285_vm14, %v5823_v12, %v1658_v47 }
0x10d3   :  { %1669 = vrot.lane.b32.xlu1 %v5906_v39, %s5162_s9  ;;  %v4675_v39 = vld [vmem:[%s6764_s1 + $0x18] sm:$0xff] }
0x10d4   :  { %2073 = vmatpush.bf16.msra.mxu3 %v4675_v39 }
0x10d8   :  { %2103 = vmatpush.bf16.msrb.mxu3 %v5119_v45 }
0x10dc   :  { %2104 = vmatpush.bf16.msrb.mxu3 %v5120_v0 }
0x10e0   :  { %2105 = vmatpush.bf16.msrb.mxu3 %v5121_v17 }
0x1108   :  { %v1646_v56 = vpop.f32.mrf.mxu3 }
0x1109   :  { %1681 = vrot.lane.b32.xlu2 %v1646_v56, %s5159_s30 }
0x1110   :  { %v1648_v34 = vpop.f32.mrf.mxu3 }
0x112d   :  { %v2015_v49 = vpop.xlane.xlu1 %2014 }
0x112e   :  { %v2016_v62 = vmul.f32 %v2015_v49, %v5245_v26 }
0x1130   :  { %v2017_v1 = vadd.f32 1e-05, %v2016_v62 }
0x1132   :  { %4978 = vrsqrt.f32 %v2017_v1  ;;  %vm2024_vm12 = vweird.f32 %v2017_v1 }
0x1138   :  { %v4979_v9 = vpop.eup %4978 }
0x1139   :  { %v2019_v5 = vmul.f32 %v4979_v9, %v2017_v1  ;;  %vm2025_vm11 = vweird.f32 %v4979_v9 }
0x113a   :  { %vm2026_vm13 = vmor %vm2024_vm12, %vm2025_vm11 }
0x113b   :  { %v2020_v6 = vmul.f32 %v4979_v9, %v2019_v5 }
0x113d   :  { %v2021_v7 = vmul.f32 0.5, %v2020_v6 }
0x113f   :  { %v2022_v63 = vsub.f32 1.5, %v2021_v7 }
0x1141   :  { %v2023_v2 = vmul.f32 %v4979_v9, %v2022_v63 }
0x1143   :  { %v2027_v16 = vsel %vm2026_vm13, %v4979_v9, %v2023_v2 }
0x1144   :  { %v2028_v19 = vmul.f32 %v2027_v16, %v2011_v55 }
0x1145   :  { %v1670_v60 = vpop.permute.xlu1 %1669 }
0x1146   :  { %v2032_v30 = vmul.f32 %v2030_v4, %v2028_v19  ;;  %v1691_v22 = vsel %vm739_vm4, %v1688_v21, %v1670_v60  ;;  %v4416_v19 = vld [vmem:[%s6766_s3 + $0x30] sm:$0xf] }
0x1147   :  { %v4400_v60 = vld [vmem:[%s6766_s3 + $0x10] sm:$0xf] }
0x1148   :  { %v2035_v3 = vadd.f32 %v2033_v18, %v2032_v30  ;;  %v4736_v30 = vld [vmem:[%s6766_s3 + $0x34] sm:$0xf0]  ;;  %v4401_v21 = vor.u32 %v4732_v31, %v4400_v60 }
0x114a   :  { %v2036_v46 = vpack.c.bf16 %v2035_v3, %v2035_v3  ;;  %v4417_v3 = vor.u32 %v4736_v30, %v4416_v19 }
0x114c   :  { %4380 = vmatmul.msk.bf16.vlgmr.msra.gmra.mxu3 %vm100_vm1, %v2036_v46  ;;  %2251 = vmatpush.bf16.msrb.mxu0 %v4417_v3  ;;  %v4408_v46 = vld [vmem:[%s6766_s3 + $0x20] sm:$0xf] }
0x115c   :  { %4388 = vmatmul.msk.bf16.vlgmr.msrb.gmra.mxu3 %vm74_vm0, %v4728_v11  ;;  %v4734_v11 = vld [vmem:[%s6766_s3 + $0x24] sm:$0xf0] }
0x115d   :  { %v4409_v47 = vor.u32 %v4734_v11, %v4408_v46 }
0x115f   :  { %2252 = vmatpush.bf16.msrb.mxu0 %v4409_v47 }
0x1163   :  { %v1682_v23 = vpop.permute.xlu2 %1681  ;;  %2253 = vmatpush.bf16.msrb.mxu0 %v4401_v21 }
0x1164   :  { %v1694_v20 = vsel %vm74_vm0, %v1691_v22, %v1682_v23 }
0x1165   :  { %v1696_v15 = vpack.c.bf16 %v1694_v20, %v1694_v20  ;;  %v4392_v20 = vld [vmem:[%s6766_s3] sm:$0xf] }
0x1167   :  { %4289 = vmatmul.msk.bf16.gmra.mxu0 %vm100_vm1, %v1696_v15 }
0x116c   :  { %4389 = vmatmul.msk.bf16.gmra.mxu3 %vm74_vm0, %v2091_v24  ;;  %v4393_v24 = vor.u32 %v4730_v8, %v4392_v20 }
0x116e   :  { %2254 = vmatpush.bf16.msrb.mxu0 %v4393_v24 }
0x11cf   :  { %v2075_v28 = vpop.f32.mrf.mxu3 }
0x11d0   :  { %v2076_v10 = vadd.f32 %v2075_v28, %v2061_v27 }
0x11d2   :  { %2079 = vst [vmem:[#allocation2] sm:$0x1] %v2076_v10 }
0x11d7   :  { %v2077_v12 = vpop.f32.mrf.mxu3 }
0x11df   :  { %v2107_v32 = vpop.f32.mrf.mxu3 }
0x11e0   :  { %v5994_v37 = vadd.f32 %v5123_v33, %v2107_v32 }
0x11e2   :  { %v2117_v25 = vsel %vm100_vm1, %v5994_v37, 0.0 }
0x11e3   :  { %2118 = vadd.xlane.f32.xlu2 %v2117_v25 }
0x11e4   :  { %v1750_v41 = vpop.f32.mrf.mxu0 }
0x11e5   :  { %v1756_v42 = vadd.f32 %v1750_v41, %v5608_v13  ;;  %v4735_v41 = vld [vmem:[%s6766_s3 + $0x34] sm:$0xf] }
0x11e7   :  { %v1760_v38 = vadd.f32 %v5851_v36, %v1756_v42  ;;  %v2109_v43 = vpop.f32.mrf.mxu3  ;;  %v4418_v42 = vld [vmem:[%s6766_s3 + $0x38] sm:$0xf0] }
0x11e8   :  { %v6003_v29 = vadd.f32 %v5124_v48, %v2109_v43 }
0x11e9   :  { %v1767_v50 = vsel %vm107_vm2, %v1760_v38, 0.0 }
0x11ea   :  { %v2120_v53 = vsel %vm100_vm1, %v6003_v29, 0.0 }
0x11eb   :  { %2121 = vadd.xlane.f32.xlu0 %v2120_v53  ;;  %1768 = vadd.xlane.f32.xlu2 %v1767_v50  ;;  %v4733_v53 = vld [vmem:[%s6766_s3 + $0x24] sm:$0xf] }
0x11ec   :  { %v1752_v52 = vpop.f32.mrf.mxu0 }
0x11ed   :  { %v4410_v52 = vld [vmem:[%s6766_s3 + $0x28] sm:$0xf0] }
0x11ef   :  { %v2112_v55 = vpop.f32.mrf.mxu3 }
0x11f0   :  { %v6009_v13 = vadd.f32 %v5966_v14, %v2112_v55 }
0x11f2   :  { %v2123_v36 = vsel %vm107_vm2, %v6009_v13, 0.0 }
0x11f3   :  { %2124 = vadd.xlane.f32.xlu1 %v2123_v36 }
0x11f7   :  { %v2114_v44 = vpop.f32.mrf.mxu3 }
0x11f8   :  { %v4413_v44 = vor.u32 %v4733_v53, %v4410_v52 }
0x1256   :  { %v2119_v51 = vpop.xlane.xlu2 %2118 }
0x1257   :  { %v2126_v56 = vmul.f32 %v2119_v51, %v5245_v26 }
0x1259   :  { %v6015_v34 = vsub.f32 %v5994_v37, %v2126_v56 }
0x125b   :  { %v2132_v57 = vmul.f32 %v6015_v34, %v6015_v34 }
0x125d   :  { %v2135_v58 = vsel %vm100_vm1, %v2132_v57, 0.0 }
0x125e   :  { %2136 = vadd.xlane.f32.xlu2 %v2135_v58  ;;  %v1769_v61 = vpop.xlane.xlu2 %1768  ;;  %v2122_v39 = vpop.xlane.xlu0 %2121 }
0x125f   :  { %v2127_v45 = vmul.f32 %v2122_v39, %v5245_v26  ;;  %v1772_v49 = vmul.f32 %v1769_v61, %v5245_v26 }
0x1261   :  { %v6023_v62 = vsub.f32 %v6003_v29, %v2127_v45  ;;  %v6027_v1 = vsub.f32 %v1760_v38, %v1772_v49  ;;  %v4421_v38 = vor.u32 %v4735_v41, %v4418_v42  ;;  %v4731_v49 = vld [vmem:[%s6766_s3 + $0x14] sm:$0xf] }
0x1263   :  { %v2133_v0 = vmul.f32 %v6023_v62, %v6023_v62  ;;  %v1778_v7 = vmul.f32 %v6027_v1, %v6027_v1  ;;  %2269 = vmatpush.bf16.msrb.mxu1 %v4421_v38 }
0x1265   :  { %v2138_v17 = vsel %vm100_vm1, %v2133_v0, 0.0  ;;  %v1785_v16 = vsel %vm107_vm2, %v1778_v7, 0.0  ;;  %v4402_v0 = vld [vmem:[%s6766_s3 + $0x18] sm:$0xf0]  ;;  %v6095_v7 = vld [vmem:[%s6769_s6] sm:$0x7f] }
0x1266   :  { %v2125_v9 = vpop.xlane.xlu1 %2124  ;;  %2139 = vadd.xlane.f32.xlu0 %v2138_v17  ;;  %v4405_v17 = vor.u32 %v4731_v49, %v4402_v0  ;;  %v2183_v3 = vperm.slane %v6095_v7, 0 }
0x1267   :  { %v2128_v5 = vmul.f32 %v2125_v9, %v5245_v26  ;;  %2270 = vmatpush.bf16.msrb.mxu1 %v4413_v44  ;;  %v4729_v9 = vld [vmem:[%s6766_s3 + $0x4] sm:$0xf] }
0x1269   :  { %v6032_v6 = vsub.f32 %v6009_v13, %v2128_v5  ;;  %v4394_v5 = vld [vmem:[%s6766_s3 + $0x8] sm:$0xf0] }
0x126b   :  { %v2134_v63 = vmul.f32 %v6032_v6, %v6032_v6  ;;  %2271 = vmatpush.bf16.msrb.mxu1 %v4405_v17 }
0x126d   :  { %v2141_v2 = vsel %vm107_vm2, %v2134_v63, 0.0 }
0x126e   :  { %2142 = vadd.xlane.f32.xlu2 %v2141_v2  ;;  %1786 = vadd.xlane.f32.xlu0 %v1785_v16  ;;  %v4397_v16 = vor.u32 %v4729_v9, %v4394_v5 }
0x1270   :  { %2272 = vmatpush.bf16.msrb.mxu1 %v4397_v16 }
0x12d1   :  { %v2137_v22 = vpop.xlane.xlu2 %2136 }
0x12d2   :  { %v2144_v23 = vmul.f32 %v2137_v22, %v5245_v26 }
0x12d4   :  { %v2147_v15 = vadd.f32 1e-05, %v2144_v23  ;;  %v2187_v23 = vperm.slane %v6095_v7, 1 }
0x12d6   :  { %4980 = vrsqrt.f32 %v2147_v15  ;;  %vm2156_vm6 = vweird.f32 %v2147_v15 }
0x12d9   :  { %v2140_v28 = vpop.xlane.xlu0 %2139 }
0x12da   :  { %v2145_v10 = vmul.f32 %v2140_v28, %v5245_v26 }
0x12dc   :  { %v4981_v12 = vpop.eup %4980  ;;  %v2148_v32 = vadd.f32 1e-05, %v2145_v10 }
0x12dd   :  { %v2151_v33 = vmul.f32 %v4981_v12, %v2147_v15  ;;  %vm2157_vm5 = vweird.f32 %v4981_v12 }
0x12de   :  { %4982 = vrsqrt.f32 %v2148_v32  ;;  %vm2158_vm7 = vmor %vm2156_vm6, %vm2157_vm5  ;;  %vm2166_vm9 = vweird.f32 %v2148_v32 }
0x12df   :  { %v2152_v25 = vmul.f32 %v4981_v12, %v2151_v33 }
0x12e1   :  { %v2153_v43 = vmul.f32 0.5, %v2152_v25  ;;  %v2143_v48 = vpop.xlane.xlu2 %2142  ;;  %v1787_v50 = vpop.xlane.xlu0 %1786 }
0x12e2   :  { %v2146_v55 = vmul.f32 %v2143_v48, %v5245_v26  ;;  %v1790_v36 = vmul.f32 %v1787_v50, %v5245_v26 }
0x12e3   :  { %v2154_v51 = vsub.f32 1.5, %v2153_v43 }
0x12e4   :  { %v4983_v56 = vpop.eup %4982  ;;  %v2149_v57 = vadd.f32 1e-05, %v2146_v55  ;;  %v1793_v58 = vadd.f32 1e-05, %v1790_v36 }
0x12e5   :  { %v2155_v61 = vmul.f32 %v4981_v12, %v2154_v51  ;;  %v2161_v39 = vmul.f32 %v4983_v56, %v2148_v32  ;;  %vm2167_vm8 = vweird.f32 %v4983_v56 }
0x12e6   :  { %4984 = vrsqrt.f32 %v2149_v57  ;;  %vm2168_vm10 = vmor %vm2166_vm9, %vm2167_vm8  ;;  %vm2176_vm13 = vweird.f32 %v2149_v57  ;;  %vm1820_vm6 = vweird.f32 %v1793_v58 }
0x12e7   :  { %v2162_v45 = vmul.f32 %v4983_v56, %v2161_v39  ;;  %4986 = vrsqrt.f32 %v1793_v58  ;;  %v2159_v63 = vsel %vm2158_vm7, %v4981_v12, %v2155_v61 }
0x12e8   :  { %v2180_v46 = vmul.f32 %v2159_v63, %v6015_v34 }
0x12e9   :  { %v2163_v2 = vmul.f32 0.5, %v2162_v45 }
0x12ea   :  { %v2184_v20 = vmul.f32 %v2183_v3, %v2180_v46 }
0x12eb   :  { %v2164_v19 = vsub.f32 1.5, %v2163_v2 }
0x12ec   :  { %v4985_v30 = vpop.eup %4984  ;;  %v2188_v34 = vadd.f32 %v2187_v23, %v2184_v20 }
0x12ed   :  { %v4987_v11 = vpop.eup %4986  ;;  %v2165_v47 = vmul.f32 %v4983_v56, %v2164_v19  ;;  %v2171_v60 = vmul.f32 %v4985_v30, %v2149_v57  ;;  %vm2177_vm11 = vweird.f32 %v4985_v30 }
0x12ee   :  { %v1815_v31 = vmul.f32 %v4987_v11, %v1793_v58  ;;  %vm1821_vm12 = vweird.f32 %v4987_v11  ;;  %vm2178_vm5 = vmor %vm2176_vm13, %vm2177_vm11 }
0x12ef   :  { %v2169_v21 = vsel %vm2168_vm10, %v4983_v56, %v2165_v47  ;;  %v2172_v22 = vmul.f32 %v4985_v30, %v2171_v60  ;;  %vm1822_vm7 = vmor %vm1820_vm6, %vm1821_vm12 }
0x12f0   :  { %v2181_v8 = vmul.f32 %v2169_v21, %v6023_v62  ;;  %v1816_v15 = vmul.f32 %v4987_v11, %v1815_v31 }
0x12f1   :  { %v2173_v24 = vmul.f32 0.5, %v2172_v22 }
0x12f2   :  { %v2185_v28 = vmul.f32 %v2183_v3, %v2181_v8  ;;  %v1817_v10 = vmul.f32 0.5, %v1816_v15 }
0x12f3   :  { %v2174_v12 = vsub.f32 1.5, %v2173_v24 }
0x12f4   :  { %v2189_v33 = vadd.f32 %v2187_v23, %v2185_v28  ;;  %v1818_v32 = vsub.f32 1.5, %v1817_v10 }
0x12f5   :  { %v2175_v25 = vmul.f32 %v4985_v30, %v2174_v12 }
0x12f6   :  { %v2191_v41 = vpack.c.bf16 %v2189_v33, %v2188_v34  ;;  %v1819_v42 = vmul.f32 %v4987_v11, %v1818_v32 }
0x12f7   :  { %v2179_v38 = vsel %vm2178_vm5, %v4985_v30, %v2175_v25 }
0x12f8   :  { %v1823_v43 = vsel %vm1822_vm7, %v4987_v11, %v1819_v42  ;;  %4422 = vmatmul.msk.bf16.vlgmr.msrb.gmra.mxu0 %vm100_vm1, %v2191_v41  ;;  %v2182_v48 = vmul.f32 %v2179_v38, %v6032_v6 }
0x12f9   :  { %v1826_v62 = vmul.f32 %v1823_v43, %v6027_v1 }
0x12fa   :  { %v2186_v52 = vmul.f32 %v2183_v3, %v2182_v48 }
0x12fb   :  { %v1830_v50 = vmul.f32 %v5887_v35, %v1826_v62 }
0x12fc   :  { %v2190_v36 = vadd.f32 %v2187_v23, %v2186_v52 }
0x12fd   :  { %v1834_v53 = vadd.f32 %v5890_v40, %v1830_v50 }
0x12fe   :  { %v2192_v44 = vpack.c.bf16 %v2190_v36, %v2190_v36 }
0x12ff   :  { %v1836_v55 = vpack.c.bf16 %v1834_v53, %v1834_v53 }
0x1301   :  { %4331 = vmatmul.msk.bf16.gmra.mxu1 %vm100_vm1, %v1836_v55 }
0x1308   :  { %4423 = vmatmul.msk.bf16.gmra.mxu0 %vm100_vm1, %v2192_v44 }
0x1311   :  { %4424 = vmatmul.msk.bf16.vlgmr.msrb.gmra.mxu1 %vm100_vm1, %v2191_v41 }
0x1321   :  { %4425 = vmatmul.msk.bf16.gmra.mxu1 %vm100_vm1, %v2192_v44 }
0x1375   :  { %v2256_v51 = vpop.f32.mrf.mxu0 }
0x137d   :  { %v2258_v1 = vpop.f32.mrf.mxu0 }
0x137e   :  { %v1907_v56 = vpop.f32.mrf.mxu1  ;;  %v6110_v6 = vpack.c.bf16 %v2258_v1, %v2256_v51 }
0x137f   :  { %v1908_v35 = vadd.f32 %v1907_v56, %v5925_v54 }
0x1380   :  { %2289 = vrot.lane.b32.xlu2 %v6110_v6, %s5157_s28 }
0x1381   :  { %v1916_v40 = vmul.f32 0.044715, %v1908_v35  ;;  %v1913_v5 = vmul.f32 0.5, %v1908_v35 }
0x1383   :  { %v1919_v57 = vmul.f32 %v1916_v40, %v1908_v35 }
0x1385   :  { %v2261_v58 = vpop.f32.mrf.mxu0  ;;  %v1922_v61 = vmul.f32 %v1919_v57, %v1908_v35 }
0x1386   :  { %v1909_v39 = vpop.f32.mrf.mxu1  ;;  %v2284_v45 = vpack.c.bf16 %v2261_v58, %v2261_v58 }
0x1387   :  { %v1925_v49 = vadd.f32 %v1922_v61, %v1908_v35 }
0x1388   :  { %2498 = vrot.lane.b32.xlu2 %v2284_v45, %s5162_s9  ;;  %2391 = vrot.lane.b32.xlu0 %v2284_v45, %s5159_s30 }
0x1389   :  { %2291 = vrot.lane.b32.xlu1 %v2284_v45, %s5157_s28  ;;  %v1928_v0 = vmul.f32 0.7978846, %v1925_v49 }
0x138b   :  { %4988 = vtanh.f32 %v1928_v0 }
0x138d   :  { %v2263_v17 = vpop.f32.mrf.mxu0 }
0x138e   :  { %v2274_v54 = vpop.f32.mrf.mxu1 }
0x1390   :  { %2603 = vrot.lane.b32.xlu2 %v2284_v45, %s5161_s8  ;;  %2385 = vrot.lane.b32.xlu0 %v6110_v6, %s5158_s29 }
0x1391   :  { %v4989_v9 = vpop.eup %4988  ;;  %2389 = vrot.lane.b32.xlu1 %v6110_v6, %s5159_s30 }
0x1392   :  { %v1934_v63 = vadd.f32 1.0, %v4989_v9 }
0x1394   :  { %v1937_v2 = vmul.f32 %v1934_v63, %v1913_v5 }
0x1396   :  { %v2276_v16 = vpop.f32.mrf.mxu1  ;;  %v1939_v19 = vpack.c.bf16 %v1937_v2, %v1937_v2 }
0x1397   :  { %v6136_v11 = vpack.c.bf16 %v2276_v16, %v2274_v54 }
0x1398   :  { %2000 = vmatmul.bf16.gmra.mxu2 %v1939_v19  ;;  %2597 = vrot.lane.b32.xlu2 %v6110_v6, %s5164_s11 }
0x1399   :  { %2387 = vrot.lane.b32.xlu0 %v2284_v45, %s5158_s29  ;;  %2496 = vrot.lane.b32.xlu1 %v6110_v6, %s5162_s9 }
0x139e   :  { %v2279_v30 = vpop.f32.mrf.mxu1 }
0x139f   :  { %v6128_v3 = vpack.c.bf16 %v2279_v30, %v2279_v30 }
0x13a1   :  { %2601 = vrot.lane.b32.xlu0 %v6110_v6, %s5161_s8  ;;  %2492 = vrot.lane.b32.xlu1 %v6110_v6, %s5163_s10  ;;  %v2365_v46 = vand.u32 %v6128_v3, %v5337_v59 }
0x13a3   :  { %2373 = vmatpush.bf16.msra.mxu3 %v2365_v46 }
0x13a6   :  { %v2281_v47 = vpop.f32.mrf.mxu1 }
0x13a7   :  { %2374 = vmatpush.bf16.msra.mxu3 %v6136_v11 }
0x13a9   :  { %2599 = vrot.lane.b32.xlu0 %v2284_v45, %s5164_s11  ;;  %2494 = vrot.lane.b32.xlu1 %v2284_v45, %s5163_s10 }
0x13da   :  { %v2290_v60 = vpop.permute.xlu2 %2289 }
0x13db   :  { %v2300_v28 = vsel %vm285_vm14, %v2290_v60, 0 }
0x13e2   :  { %v2499_v31 = vpop.permute.xlu2 %2498 }
0x13e3   :  { %v2510_v12 = vsel %vm285_vm14, %v2499_v31, 0 }
0x13ea   :  { %v2604_v8 = vpop.permute.xlu2 %2603 }
0x13eb   :  { %v2615_v34 = vsel %vm285_vm14, %v2604_v8, 0 }
0x13f2   :  { %v2598_v62 = vpop.permute.xlu2 %2597 }
0x13fa   :  { %v2392_v21 = vpop.permute.xlu0 %2391 }
0x13fb   :  { %v2292_v22 = vpop.permute.xlu1 %2291  ;;  %v2403_v23 = vsel %vm285_vm14, %v2392_v21, 0 }
0x13fc   :  { %v2303_v20 = vsel %vm285_vm14, %v2292_v22, 0  ;;  %2411 = vmatpush.bf16.xpose.msra.mxu0 %v2403_v23 }
0x13fd   :  { %2311 = vmatpush.bf16.xpose.msrb.mxu2 %v2303_v20 }
0x1402   :  { %v2386_v15 = vpop.permute.xlu0 %2385 }
0x1403   :  { %v2390_v24 = vpop.permute.xlu1 %2389 }
0x1404   :  { %v2400_v10 = vsel %vm285_vm14, %v2390_v24, 0 }
0x1405   :  { %2312 = vmatpush.bf16.xpose.msrb.mxu2 %v2300_v28  ;;  %2412 = vmatpush.bf16.xpose.msra.mxu0 %v2400_v10 }
0x140b   :  { %v2497_v33 = vpop.permute.xlu1 %2496  ;;  %v2388_v32 = vpop.permute.xlu0 %2387 }
0x140c   :  { %v2507_v25 = vsel %vm285_vm14, %v2497_v33, 0  ;;  %4426 = vmatmul.msk.bf16.vlgmr.msrb.gmra.mxu2 %vm285_vm14, %v6110_v6  ;;  %4430 = vmatmul.msk.bf16.vlgmr.msra.gmra.mxu0 %vm285_vm14, %v2386_v15 }
0x140d   :  { %2518 = vmatpush.bf16.xpose.msra.mxu2 %v2510_v12  ;;  %2623 = vmatpush.bf16.xpose.msrb.mxu0 %v2615_v34 }
0x1413   :  { %v2602_v41 = vpop.permute.xlu0 %2601  ;;  %v2493_v48 = vpop.permute.xlu1 %2492 }
0x1414   :  { %v2612_v42 = vsel %vm285_vm14, %v2602_v41, 0 }
0x1415   :  { %2519 = vmatpush.bf16.xpose.msra.mxu2 %v2507_v25  ;;  %2624 = vmatpush.bf16.xpose.msrb.mxu0 %v2612_v42 }
0x141b   :  { %v2001_v38 = vpop.f32.mrf.mxu2  ;;  %v2495_v50 = vpop.permute.xlu1 %2494 }
0x141c   :  { %4427 = vmatmul.msk.bf16.gmra.mxu2 %vm285_vm14, %v2284_v45  ;;  %4431 = vmatmul.msk.bf16.gmra.mxu0 %vm285_vm14, %v2388_v32  ;;  %v2600_v53 = vpop.permute.xlu0 %2599 }
0x1423   :  { %v2002_v43 = vpop.f32.mrf.mxu2 }
0x142c   :  { %4434 = vmatmul.msk.bf16.vlgmr.msra.gmra.mxu2 %vm285_vm14, %v2493_v48  ;;  %4438 = vmatmul.msk.bf16.vlgmr.msrb.gmra.mxu0 %vm285_vm14, %v2598_v62 }
0x143c   :  { %4435 = vmatmul.msk.bf16.gmra.mxu2 %vm285_vm14, %v2495_v50  ;;  %4439 = vmatmul.msk.bf16.gmra.mxu0 %vm285_vm14, %v2600_v53 }
0x1489   :  { %v2414_v52 = vpop.f32.mrf.mxu0 }
0x148a   :  { %v2423_v55 = vsel %vm316_vm15, %v2414_v52, -inf }
0x148b   :  { %2424 = vmax.xlane.f32.xlu0 %v2423_v55 }
0x148f   :  { %v2314_v36 = vpop.f32.mrf.mxu2 }
0x1490   :  { %v2323_v44 = vsel %vm316_vm15, %v2314_v36, -inf }
0x1491   :  { %v2416_v51 = vpop.f32.mrf.mxu0  ;;  %2324 = vmax.xlane.f32.xlu2 %v2323_v44 }
0x1492   :  { %v2426_v56 = vsel %vm316_vm15, %v2416_v51, -inf }
0x1497   :  { %v2316_v1 = vpop.f32.mrf.mxu2 }
0x1498   :  { %v2326_v6 = vsel %vm316_vm15, %v2316_v1, -inf }
0x1499   :  { %v2419_v35 = vpop.f32.mrf.mxu0  ;;  %2427 = vmax.xlane.f32.xlu2 %v2426_v56  ;;  %2327 = vmax.xlane.f32.xlu1 %v2326_v6 }
0x149a   :  { %v2429_v40 = vsel %vm323_vm3, %v2419_v35, -inf }
0x149b   :  { %2430 = vmax.xlane.f32.xlu0 %v2429_v40 }
0x149f   :  { %v6163_v57 = vpop.f32.mrf.mxu2 }
0x14a0   :  { %v2329_v30 = vsel %vm323_vm3, %v6163_v57, -inf }
0x14a1   :  { %v2421_v58 = vpop.f32.mrf.mxu0 }
0x14a7   :  { %v2321_v61 = vpop.f32.mrf.mxu2 }
0x14a9   :  { %v6165_v39 = vpop.f32.mrf.mxu0 }
0x14aa   :  { %v2635_v19 = vsel %vm316_vm15, %v6165_v39, -inf }
0x14af   :  { %2462 = vrot.lane.b32.xlu0 %v6128_v3, %s5158_s29  ;;  %v6169_v45 = vpop.f32.mrf.mxu2 }
0x14b0   :  { %v2530_v49 = vsel %vm316_vm15, %v6169_v45, -inf }
0x14b1   :  { %v6173_v0 = vpop.f32.mrf.mxu0  ;;  %2531 = vmax.xlane.f32.xlu2 %v2530_v49 }
0x14b2   :  { %2460 = vrot.lane.b32.xlu1 %v6136_v11, %s5158_s29  ;;  %v2638_v54 = vsel %vm316_vm15, %v6173_v0, -inf }
0x14b7   :  { %v6177_v17 = vpop.f32.mrf.mxu2 }
0x14b8   :  { %v2533_v46 = vsel %vm316_vm15, %v6177_v17, -inf }
0x14b9   :  { %v6181_v9 = vpop.f32.mrf.mxu0  ;;  %2639 = vmax.xlane.f32.xlu2 %v2638_v54 }
0x14ba   :  { %v2641_v38 = vsel %vm323_vm3, %v6181_v9, -inf }
0x14bf   :  { %v6183_v5 = vpop.f32.mrf.mxu2 }
0x14c0   :  { %v2536_v63 = vsel %vm323_vm3, %v6183_v5, -inf }
0x14c1   :  { %v2633_v2 = vpop.f32.mrf.mxu0  ;;  %2537 = vmax.xlane.f32.xlu2 %v2536_v63 }
0x14c7   :  { %v2528_v16 = vpop.f32.mrf.mxu2 }
0x14d9   :  { %2636 = vmax.xlane.f32.xlu0 %v2635_v19 }
0x14dc   :  { %2330 = vmax.xlane.f32.xlu1 %v2329_v30 }
0x14e4   :  { %2534 = vmax.xlane.f32.xlu1 %v2533_v46 }
0x14fe   :  { %v2425_v47 = vpop.xlane.xlu0 %2424 }
0x14ff   :  { %v2432_v60 = vsub.f32 %v2414_v52, %v2425_v47 }
0x1501   :  { %v2435_v31 = vmul.f32 1.442695, %v2432_v60 }
0x1503   :  { %4990 = vpow2.f32 %v2435_v31 }
0x1504   :  { %v2325_v21 = vpop.xlane.xlu2 %2324 }
0x1505   :  { %v2332_v22 = vsub.f32 %v2314_v36, %v2325_v21 }
0x1507   :  { %v2335_v23 = vmul.f32 1.442695, %v2332_v22 }
0x1509   :  { %v6193_v20 = vpop.eup %4990  ;;  %4992 = vpow2.f32 %v2335_v23 }
0x150a   :  { %v2441_v8 = vsel %vm316_vm15, %v6193_v20, 0.0 }
0x150b   :  { %2442 = vadd.xlane.f32.xlu2 %v2441_v8 }
0x150c   :  { %v2428_v15 = vpop.xlane.xlu2 %2427  ;;  %v2328_v24 = vpop.xlane.xlu1 %2327 }
0x150d   :  { %v2433_v28 = vsub.f32 %v2416_v51, %v2428_v15  ;;  %v2333_v10 = vsub.f32 %v2316_v1, %v2328_v24 }
0x150e   :  { %v2431_v12 = vpop.xlane.xlu0 %2430 }
0x150f   :  { %v6197_v34 = vpop.eup %4992  ;;  %v2437_v33 = vmul.f32 1.442695, %v2433_v28  ;;  %v2337_v32 = vmul.f32 1.442695, %v2333_v10  ;;  %v2434_v25 = vsub.f32 %v2419_v35, %v2431_v12 }
0x1510   :  { %v2341_v41 = vsel %vm316_vm15, %v6197_v34, 0.0 }
0x1511   :  { %4994 = vpow2.f32 %v2437_v33  ;;  %v2439_v42 = vmul.f32 1.442695, %v2434_v25  ;;  %2342 = vadd.xlane.f32.xlu1 %v2341_v41 }
0x1512   :  { %4996 = vpow2.f32 %v2337_v32 }
0x1513   :  { %4998 = vpow2.f32 %v2439_v42  ;;  %2642 = vmax.xlane.f32.xlu2 %v2641_v38 }
0x1517   :  { %v6203_v43 = vpop.eup %4994 }
0x1518   :  { %v6205_v62 = vpop.eup %4996  ;;  %v2444_v48 = vsel %vm316_vm15, %v6203_v43, 0.0 }
0x1519   :  { %v6209_v50 = vpop.eup %4998  ;;  %v2344_v53 = vsel %vm316_vm15, %v6205_v62, 0.0  ;;  %2445 = vadd.xlane.f32.xlu1 %v2444_v48 }
0x151a   :  { %2345 = vadd.xlane.f32.xlu0 %v2344_v53  ;;  %v2447_v52 = vsel %vm323_vm3, %v6209_v50, 0.0 }
0x151b   :  { %2448 = vadd.xlane.f32.xlu2 %v2447_v52 }
0x1521   :  { %v2463_v55 = vpop.permute.xlu0 %2462 }
0x1522   :  { %v2472_v36 = vand.u32 %v2463_v55, %v5337_v59 }
0x1524   :  { %2480 = vmatpush.bf16.msra.mxu1 %v2472_v36  ;;  %v2532_v44 = vpop.xlane.xlu2 %2531  ;;  %v2461_v1 = vpop.permute.xlu1 %2460 }
0x1525   :  { %v2539_v51 = vsub.f32 %v6169_v45, %v2532_v44 }
0x1527   :  { %v2542_v56 = vmul.f32 1.442695, %v2539_v51 }
0x1528   :  { %2481 = vmatpush.bf16.msra.mxu1 %v2461_v1 }
0x1529   :  { %5000 = vpow2.f32 %v2542_v56 }
0x152c   :  { %v2640_v40 = vpop.xlane.xlu2 %2639 }
0x152d   :  { %v2645_v21 = vsub.f32 %v6173_v0, %v2640_v40 }
0x152f   :  { %v6217_v6 = vpop.eup %5000  ;;  %v2649_v15 = vmul.f32 1.442695, %v2645_v21 }
0x1530   :  { %v2548_v35 = vsel %vm316_vm15, %v6217_v6, 0.0 }
0x1531   :  { %2549 = vadd.xlane.f32.xlu0 %v2548_v35 }
0x1532   :  { %2567 = vrot.lane.b32.xlu1 %v6128_v3, %s5163_s10 }
0x1534   :  { %v2538_v45 = vpop.xlane.xlu2 %2537 }
0x1535   :  { %v2541_v2 = vsub.f32 %v6183_v5, %v2538_v45 }
0x1537   :  { %v2546_v19 = vmul.f32 1.442695, %v2541_v2 }
0x1545   :  { %2672 = vrot.lane.b32.xlu0 %v6128_v3, %s5164_s11 }
0x154c   :  { %v2637_v58 = vpop.xlane.xlu0 %2636 }
0x154d   :  { %v2644_v61 = vsub.f32 %v6165_v39, %v2637_v58 }
0x154f   :  { %v2647_v49 = vmul.f32 1.442695, %v2644_v61  ;;  %v2331_v54 = vpop.xlane.xlu1 %2330 }
0x1550   :  { %v2334_v63 = vsub.f32 %v6163_v57, %v2331_v54 }
0x1551   :  { %5002 = vpow2.f32 %v2647_v49 }
0x1552   :  { %v2339_v16 = vmul.f32 1.442695, %v2334_v63 }
0x1554   :  { %5004 = vpow2.f32 %v2339_v16 }
0x1555   :  { %5006 = vpow2.f32 %v2546_v19 }
0x1557   :  { %v6228_v30 = vpop.eup %5002  ;;  %v2535_v47 = vpop.xlane.xlu1 %2534 }
0x1558   :  { %v2653_v3 = vsel %vm316_vm15, %v6228_v30, 0.0  ;;  %v2540_v12 = vsub.f32 %v6177_v17, %v2535_v47 }
0x155a   :  { %v6230_v46 = vpop.eup %5004  ;;  %v2544_v48 = vmul.f32 1.442695, %v2540_v12 }
0x155b   :  { %v2347_v39 = vsel %vm323_vm3, %v6230_v46, 0.0  ;;  %v6236_v57 = vpop.eup %5006 }
0x155c   :  { %2654 = vadd.xlane.f32.xlu1 %v2653_v3  ;;  %2348 = vadd.xlane.f32.xlu2 %v2347_v39  ;;  %v2554_v5 = vsel %vm323_vm3, %v6236_v57, 0.0 }
0x1564   :  { %2555 = vadd.xlane.f32.xlu1 %v2554_v5 }
0x1574   :  { %2565 = vrot.lane.b32.xlu2 %v6136_v11, %s5163_s10 }
0x157e   :  { %v2443_v60 = vpop.xlane.xlu2 %2442 }
0x157f   :  { %5008 = vrcp.f32 %v2443_v60 }
0x1584   :  { %v2343_v31 = vpop.xlane.xlu1 %2342 }
0x1585   :  { %5010 = vrcp.f32 %v2343_v31  ;;  %v5009_v24 = vpop.eup %5008 }
0x1586   :  { %v2643_v22 = vpop.xlane.xlu2 %2642  ;;  %v2453_v32 = vmul.f32 %v5009_v24, %v6193_v20 }
0x158b   :  { %v5011_v28 = vpop.eup %5010 }
0x158c   :  { %v2446_v23 = vpop.xlane.xlu1 %2445  ;;  %v2353_v0 = vmul.f32 %v5011_v28, %v6197_v34 }
0x158d   :  { %v2346_v8 = vpop.xlane.xlu0 %2345  ;;  %5012 = vrcp.f32 %v2446_v23 }
0x158e   :  { %5014 = vrcp.f32 %v2346_v8  ;;  %v2449_v38 = vpop.xlane.xlu2 %2448 }
0x158f   :  { %5016 = vpow2.f32 %v2649_v15 }
0x1590   :  { %5018 = vrcp.f32 %v2449_v38 }
0x1591   :  { %5020 = vpow2.f32 %v2544_v48 }
0x1593   :  { %v5013_v10 = vpop.eup %5012 }
0x1594   :  { %v5015_v33 = vpop.eup %5014  ;;  %v2454_v25 = vmul.f32 %v5013_v10, %v6203_v43 }
0x1595   :  { %v2354_v41 = vmul.f32 %v5015_v33, %v6205_v62  ;;  %v5017_v52 = vpop.eup %5016 }
0x1596   :  { %v2456_v42 = vpack.c.bf16 %v2454_v25, %v2453_v32  ;;  %v2656_v17 = vsel %vm316_vm15, %v5017_v52, 0.0  ;;  %v5019_v20 = vpop.eup %5018 }
0x1597   :  { %v2356_v53 = vpack.c.bf16 %v2354_v41, %v2353_v0  ;;  %v5021_v43 = vpop.eup %5020  ;;  %v2455_v34 = vmul.f32 %v5019_v20, %v6209_v50  ;;  %v2646_v50 = vsub.f32 %v6181_v9, %v2643_v22 }
0x1598   :  { %4432 = vmatmul.msk.bf16.vlgmr.msra.gmra.mxu1 %vm316_vm15, %v2456_v42  ;;  %v2551_v62 = vsel %vm316_vm15, %v5021_v43, 0.0 }
0x1599   :  { %4428 = vmatmul.msk.bf16.vlgmr.msra.gmra.mxu3 %vm316_vm15, %v2356_v53  ;;  %v2457_v44 = vpack.c.bf16 %v2455_v34, %v2455_v34  ;;  %v2651_v61 = vmul.f32 1.442695, %v2646_v50 }
0x159d   :  { %2657 = vadd.xlane.f32.xlu2 %v2656_v17 }
0x15a4   :  { %v2568_v55 = vpop.permute.xlu1 %2567  ;;  %v2550_v51 = vpop.xlane.xlu0 %2549 }
0x15a5   :  { %v2577_v36 = vand.u32 %v2568_v55, %v5337_v59  ;;  %2552 = vadd.xlane.f32.xlu2 %v2551_v62  ;;  %v4740_v62 = vld [vmem:[%s6767_s4 + $0x18] sm:$0xff] }
0x15a6   :  { %2791 = vmatpush.bf16.msrb.mxu2 %v4740_v62 }
0x15a7   :  { %2585 = vmatpush.bf16.msrb.mxu3 %v2577_v36 }
0x15a8   :  { %4433 = vmatmul.msk.bf16.gmra.mxu1 %vm316_vm15, %v2457_v44 }
0x15b7   :  { %v2673_v1 = vpop.permute.xlu0 %2672 }
0x15b8   :  { %v2682_v56 = vand.u32 %v2673_v1, %v5337_v59  ;;  %v4738_v1 = vld [vmem:[%s6767_s4 + $0x8] sm:$0xff] }
0x15ba   :  { %2690 = vmatpush.bf16.msrb.mxu1 %v2682_v56  ;;  %v4737_v56 = vld [vmem:[%s6767_s4] sm:$0xff] }
0x15bd   :  { %2670 = vrot.lane.b32.xlu2 %v6136_v11, %s5164_s11 }
0x15cf   :  { %v2349_v35 = vpop.xlane.xlu2 %2348  ;;  %v2655_v11 = vpop.xlane.xlu1 %2654 }
0x15d0   :  { %5022 = vrcp.f32 %v2349_v35 }
0x15d1   :  { %5024 = vpow2.f32 %v2651_v61 }
0x15d6   :  { %v5023_v40 = vpop.eup %5022 }
0x15d7   :  { %v2566_v58 = vpop.permute.xlu2 %2565  ;;  %v2355_v45 = vmul.f32 %v5023_v40, %v6230_v46  ;;  %v5025_v54 = vpop.eup %5024 }
0x15d8   :  { %2586 = vmatpush.bf16.msrb.mxu3 %v2566_v58  ;;  %v2659_v63 = vsel %vm323_vm3, %v5025_v54, 0.0  ;;  %v2556_v8 = vpop.xlane.xlu1 %2555 }
0x15d9   :  { %v2357_v49 = vpack.c.bf16 %v2355_v45, %v2355_v45 }
0x15db   :  { %4429 = vmatmul.msk.bf16.gmra.mxu3 %vm316_vm15, %v2357_v49 }
0x15e6   :  { %2660 = vadd.xlane.f32.xlu2 %v2659_v63 }
0x1610   :  { %v2658_v2 = vpop.xlane.xlu2 %2657 }
0x1611   :  { %5026 = vrcp.f32 %v2658_v2 }
0x1612   :  { %5028 = vrcp.f32 %v2550_v51  ;;  %v4739_v51 = vld [vmem:[%s6767_s4 + $0x10] sm:$0xff] }
0x1613   :  { %5030 = vrcp.f32 %v2655_v11  ;;  %2792 = vmatpush.bf16.msrb.mxu2 %v4739_v51  ;;  %v4742_v51 = vld [vmem:[%s6768_s5 + $0x8] sm:$0xff] }
0x1615   :  { %v2483_v16 = vpop.f32.mrf.mxu1 }
0x1617   :  { %v5027_v19 = vpop.eup %5026  ;;  %2793 = vmatpush.bf16.msrb.mxu2 %v4738_v1 }
0x1618   :  { %v2553_v9 = vpop.xlane.xlu2 %2552  ;;  %v5029_v3 = vpop.eup %5028  ;;  %v2666_v5 = vmul.f32 %v5027_v19, %v5017_v52 }
0x1619   :  { %5032 = vrcp.f32 %v2553_v9  ;;  %v5031_v46 = vpop.eup %5030  ;;  %v2560_v31 = vmul.f32 %v5029_v3, %v6217_v6 }
0x161a   :  { %v2665_v21 = vmul.f32 %v5031_v46, %v6228_v30  ;;  %5034 = vrcp.f32 %v2556_v8 }
0x161b   :  { %2794 = vmatpush.bf16.msrb.mxu2 %v4737_v56 }
0x161c   :  { %v2668_v15 = vpack.c.bf16 %v2666_v5, %v2665_v21  ;;  %v2376_v30 = vpop.f32.mrf.mxu3 }
0x161d   :  { %v2485_v39 = vpop.f32.mrf.mxu1 }
0x161e   :  { %v4818_v47 = vpack.i.bf16 %v2485_v39, %v2483_v16 }
0x161f   :  { %v5033_v60 = vpop.eup %5032 }
0x1620   :  { %v2561_v22 = vmul.f32 %v5033_v60, %v5021_v43  ;;  %4819 = vrot.lane.b32.xlu0 %v4818_v47, %s5161_s8  ;;  %v2671_v23 = vpop.permute.xlu2 %2670  ;;  %v5035_v10 = vpop.eup %5034 }
0x1621   :  { %2691 = vmatpush.bf16.msrb.mxu1 %v2671_v23  ;;  %v2562_v6 = vmul.f32 %v5035_v10, %v6236_v57  ;;  %v2808_v23 = vperm.slane %v6095_v7, 2 }
0x1622   :  { %v2563_v24 = vpack.c.bf16 %v2561_v22, %v2560_v31 }
0x1623   :  { %v2564_v33 = vpack.c.bf16 %v2562_v6, %v2562_v6 }
0x1624   :  { %4436 = vmatmul.msk.bf16.vlgmr.msrb.gmra.mxu3 %vm316_vm15, %v2563_v24  ;;  %4440 = vmatmul.msk.bf16.vlgmr.msrb.gmra.mxu1 %vm316_vm15, %v2668_v15  ;;  %v2378_v32 = vpop.f32.mrf.mxu3 }
0x1625   :  { %v2488_v28 = vpop.f32.mrf.mxu1 }
0x162d   :  { %v2490_v12 = vpop.f32.mrf.mxu1 }
0x1634   :  { %4437 = vmatmul.msk.bf16.gmra.mxu3 %vm316_vm15, %v2564_v33 }
0x1659   :  { %v2661_v25 = vpop.xlane.xlu2 %2660 }
0x165a   :  { %5036 = vrcp.f32 %v2661_v25 }
0x165e   :  { %v2381_v0 = vpop.f32.mrf.mxu3 }
0x1660   :  { %v5037_v41 = vpop.eup %5036 }
0x1661   :  { %v2667_v42 = vmul.f32 %v5037_v41, %v5025_v54 }
0x1663   :  { %v2669_v38 = vpack.c.bf16 %v2667_v42, %v2667_v42 }
0x1665   :  { %4441 = vmatmul.msk.bf16.gmra.mxu1 %vm316_vm15, %v2669_v38 }
0x1666   :  { %v2383_v48 = vpop.f32.mrf.mxu3 }
0x1692   :  { %v4820_v35 = vpop.permute.xlu0 %4819 }
0x1693   :  { %v4822_v50 = vunpack.i.h.bf16 %v4820_v35  ;;  %v4821_v40 = vunpack.i.l.bf16 %v4820_v35 }
0x1695   :  { %v2739_v54 = vsel %vm285_vm14, %v2378_v32, %v4822_v50  ;;  %v2738_v63 = vsel %vm285_vm14, %v2376_v30, %v4821_v40  ;;  %v4741_v50 = vld [vmem:[%s6768_s5] sm:$0xff] }
0x16a1   :  { %v2693_v53 = vpop.f32.mrf.mxu1 }
0x16a7   :  { %v2588_v52 = vpop.f32.mrf.mxu3 }
0x16a9   :  { %v2695_v17 = vpop.f32.mrf.mxu1 }
0x16aa   :  { %v4828_v20 = vpack.i.bf16 %v2695_v17, %v2693_v53 }
0x16ac   :  { %4829 = vrot.lane.b32.xlu0 %v4828_v20, %s5159_s30 }
0x16af   :  { %v2590_v57 = vpop.f32.mrf.mxu3 }
0x16b0   :  { %v4823_v43 = vpack.i.bf16 %v2590_v57, %v2588_v52 }
0x16b2   :  { %4824 = vrot.lane.b32.xlu1 %v4823_v43, %s5162_s9 }
0x16b4   :  { %2709 = vrot.lane.b32.xlu0 %v2488_v28, %s5161_s8 }
0x16b7   :  { %v2593_v34 = vpop.f32.mrf.mxu3 }
0x16bc   :  { %2721 = vrot.lane.b32.xlu0 %v2593_v34, %s5162_s9 }
0x16bf   :  { %v2595_v55 = vpop.f32.mrf.mxu3 }
0x16e2   :  { %v2698_v36 = vpop.f32.mrf.mxu1 }
0x16e3   :  { %2733 = vrot.lane.b32.xlu1 %v2698_v36, %s5159_s30  ;;  %v4744_v36 = vld [vmem:[%s6768_s5 + $0x18] sm:$0xff] }
0x16e4   :  { %2947 = vmatpush.bf16.msra.mxu3 %v4744_v36  ;;  %v5125_v36 = vld [vmem:[%s6769_s6] sm:$0x7f] }
0x16ea   :  { %v2700_v44 = vpop.f32.mrf.mxu1 }
0x16eb   :  { %v4743_v44 = vld [vmem:[%s6768_s5 + $0x10] sm:$0xff] }
0x16ec   :  { %2948 = vmatpush.bf16.msra.mxu3 %v4743_v44  ;;  %v2912_v44 = vperm.slane %v5125_v36, 6 }
0x16f0   :  { %2949 = vmatpush.bf16.msra.mxu3 %v4742_v51 }
0x16f4   :  { %2950 = vmatpush.bf16.msra.mxu3 %v4741_v50 }
0x171e   :  { %v4830_v58 = vpop.permute.xlu0 %4829 }
0x171f   :  { %v4832_v2 = vunpack.i.h.bf16 %v4830_v58  ;;  %v4831_v11 = vunpack.i.l.bf16 %v4830_v58 }
0x1724   :  { %v4825_v61 = vpop.permute.xlu1 %4824 }
0x1725   :  { %v4827_v45 = vunpack.i.h.bf16 %v4825_v61  ;;  %v4826_v49 = vunpack.i.l.bf16 %v4825_v61 }
0x1726   :  { %v2710_v39 = vpop.permute.xlu0 %2709 }
0x1727   :  { %v2742_v16 = vsel %vm739_vm4, %v2739_v54, %v4827_v45  ;;  %v2741_v9 = vsel %vm739_vm4, %v2738_v63, %v4826_v49  ;;  %v2740_v47 = vsel %vm285_vm14, %v2381_v0, %v2710_v39 }
0x1728   :  { %v2744_v19 = vsel %vm74_vm0, %v2741_v9, %v4831_v11  ;;  %v2745_v3 = vsel %vm74_vm0, %v2742_v16, %v4832_v2 }
0x1729   :  { %v2747_v46 = vpack.c.bf16 %v2745_v3, %v2744_v19 }
0x172b   :  { %4458 = vmatmul.msk.bf16.vlgmr.msrb.gmra.mxu2 %vm100_vm1, %v2747_v46 }
0x172e   :  { %v2722_v5 = vpop.permute.xlu0 %2721 }
0x172f   :  { %v2743_v60 = vsel %vm739_vm4, %v2740_v47, %v2722_v5  ;;  %v2878_v5 = vperm.slane %v6095_v7, 3 }
0x1755   :  { %v2734_v31 = vpop.permute.xlu1 %2733 }
0x1756   :  { %v2746_v21 = vsel %vm74_vm0, %v2743_v60, %v2734_v31 }
0x1757   :  { %v2748_v22 = vpack.c.bf16 %v2746_v21, %v2746_v21  ;;  %v2882_v21 = vperm.slane %v6095_v7, 4 }
0x1759   :  { %4459 = vmatmul.msk.bf16.gmra.mxu2 %vm100_vm1, %v2748_v22 }
0x17ae   :  { %v2796_v8 = vpop.f32.mrf.mxu2 }
0x17af   :  { %v2805_v15 = vadd.f32 %v2796_v8, %v5994_v37 }
0x17b1   :  { %v6300_v24 = vadd.f32 %v2808_v23, %v2805_v15 }
0x17b3   :  { %v2812_v28 = vsel %vm100_vm1, %v6300_v24, 0.0 }
0x17b4   :  { %2813 = vadd.xlane.f32.xlu0 %v2812_v28 }
0x17b6   :  { %v2798_v10 = vpop.f32.mrf.mxu2 }
0x17b7   :  { %v2806_v12 = vadd.f32 %v2798_v10, %v6003_v29 }
0x17b9   :  { %v6305_v6 = vadd.f32 %v2808_v23, %v2806_v12 }
0x17bb   :  { %v2815_v33 = vsel %vm100_vm1, %v6305_v6, 0.0 }
0x17bc   :  { %2816 = vadd.xlane.f32.xlu1 %v2815_v33 }
0x17dc   :  { %v2801_v30 = vpop.f32.mrf.mxu2 }
0x17dd   :  { %v2807_v32 = vadd.f32 %v2801_v30, %v6009_v13 }
0x17df   :  { %v6310_v25 = vadd.f32 %v2808_v23, %v2807_v32 }
0x17e1   :  { %v2818_v37 = vsel %vm107_vm2, %v6310_v25, 0.0 }
0x17e2   :  { %2819 = vadd.xlane.f32.xlu2 %v2818_v37 }
0x17e4   :  { %v2803_v0 = vpop.f32.mrf.mxu2 }
0x1827   :  { %v2814_v41 = vpop.xlane.xlu0 %2813 }
0x1828   :  { %v2821_v42 = vmul.f32 %v2814_v41, %v5245_v26 }
0x182a   :  { %v2824_v29 = vsub.f32 %v6300_v24, %v2821_v42 }
0x182c   :  { %v2827_v38 = vmul.f32 %v2824_v29, %v2824_v29 }
0x182e   :  { %v2830_v48 = vsel %vm100_vm1, %v2827_v38, 0.0 }
0x182f   :  { %v2817_v53 = vpop.xlane.xlu1 %2816  ;;  %2831 = vadd.xlane.f32.xlu2 %v2830_v48 }
0x1830   :  { %v2822_v52 = vmul.f32 %v2817_v53, %v5245_v26 }
0x1832   :  { %v2825_v13 = vsub.f32 %v6305_v6, %v2822_v52 }
0x1834   :  { %v2828_v17 = vmul.f32 %v2825_v13, %v2825_v13 }
0x1836   :  { %v2833_v20 = vsel %vm100_vm1, %v2828_v17, 0.0  ;;  %v4751_v17 = vld [vmem:[%s6768_s5 + $0x50] sm:$0xff] }
0x1837   :  { %2834 = vadd.xlane.f32.xlu2 %v2833_v20  ;;  %v4750_v20 = vld [vmem:[%s6768_s5 + $0x48] sm:$0xff] }
0x1855   :  { %v2820_v57 = vpop.xlane.xlu2 %2819 }
0x1856   :  { %v2823_v43 = vmul.f32 %v2820_v57, %v5245_v26  ;;  %v4749_v57 = vld [vmem:[%s6768_s5 + $0x40] sm:$0xff] }
0x1858   :  { %v6322_v34 = vsub.f32 %v6310_v25, %v2823_v43  ;;  %v4748_v43 = vld [vmem:[%s6768_s5 + $0x38] sm:$0xff] }
0x185a   :  { %v2829_v55 = vmul.f32 %v6322_v34, %v6322_v34 }
0x185c   :  { %v2836_v62 = vsel %vm107_vm2, %v2829_v55, 0.0  ;;  %v4746_v55 = vld [vmem:[%s6768_s5 + $0x28] sm:$0xff] }
0x185d   :  { %2837 = vadd.xlane.f32.xlu2 %v2836_v62  ;;  %v4745_v62 = vld [vmem:[%s6768_s5 + $0x20] sm:$0xff] }
0x18a2   :  { %v2832_v1 = vpop.xlane.xlu2 %2831 }
0x18a3   :  { %v2839_v56 = vmul.f32 %v2832_v1, %v5245_v26 }
0x18a5   :  { %v2842_v35 = vadd.f32 1e-05, %v2839_v56 }
0x18a7   :  { %5038 = vrsqrt.f32 %v2842_v35  ;;  %vm2851_vm9 = vweird.f32 %v2842_v35 }
0x18aa   :  { %v2835_v40 = vpop.xlane.xlu2 %2834 }
0x18ab   :  { %v2840_v58 = vmul.f32 %v2835_v40, %v5245_v26 }
0x18ad   :  { %v5039_v61 = vpop.eup %5038  ;;  %v2843_v45 = vadd.f32 1e-05, %v2840_v58 }
0x18ae   :  { %v2846_v49 = vmul.f32 %v5039_v61, %v2842_v35  ;;  %vm2852_vm8 = vweird.f32 %v5039_v61 }
0x18af   :  { %5040 = vrsqrt.f32 %v2843_v45  ;;  %vm2853_vm10 = vmor %vm2851_vm9, %vm2852_vm8  ;;  %vm2861_vm12 = vweird.f32 %v2843_v45 }
0x18b0   :  { %v2847_v54 = vmul.f32 %v5039_v61, %v2846_v49 }
0x18b2   :  { %v2848_v63 = vmul.f32 0.5, %v2847_v54 }
0x18b4   :  { %v2849_v2 = vsub.f32 1.5, %v2848_v63 }
0x18b5   :  { %v5041_v11 = vpop.eup %5040 }
0x18b6   :  { %v2850_v16 = vmul.f32 %v5039_v61, %v2849_v2  ;;  %v2856_v9 = vmul.f32 %v5041_v11, %v2843_v45  ;;  %vm2862_vm11 = vweird.f32 %v5041_v11 }
0x18b7   :  { %vm2863_vm13 = vmor %vm2861_vm12, %vm2862_vm11 }
0x18b8   :  { %v2857_v19 = vmul.f32 %v5041_v11, %v2856_v9  ;;  %v2854_v3 = vsel %vm2853_vm10, %v5039_v61, %v2850_v16 }
0x18b9   :  { %v2875_v47 = vmul.f32 %v2854_v3, %v2824_v29 }
0x18ba   :  { %v2858_v46 = vmul.f32 0.5, %v2857_v19 }
0x18bb   :  { %v2879_v22 = vmul.f32 %v2878_v5, %v2875_v47 }
0x18bc   :  { %v2859_v39 = vsub.f32 1.5, %v2858_v46 }
0x18bd   :  { %v2883_v15 = vadd.f32 %v2882_v21, %v2879_v22 }
0x18be   :  { %v2860_v60 = vmul.f32 %v5041_v11, %v2859_v39 }
0x18c0   :  { %v2864_v31 = vsel %vm2863_vm13, %v5041_v11, %v2860_v60 }
0x18c1   :  { %v2876_v23 = vmul.f32 %v2864_v31, %v2825_v13  ;;  %v4752_v13 = vld [vmem:[%s6768_s5 + $0x58] sm:$0xff] }
0x18c2   :  { %3038 = vmatpush.bf16.msra.mxu0 %v4752_v13 }
0x18c3   :  { %v2880_v8 = vmul.f32 %v2878_v5, %v2876_v23 }
0x18c5   :  { %v2884_v28 = vadd.f32 %v2882_v21, %v2880_v8 }
0x18c6   :  { %3039 = vmatpush.bf16.msra.mxu0 %v4751_v17 }
0x18c7   :  { %v2886_v10 = vpack.c.bf16 %v2884_v28, %v2883_v15 }
0x18c9   :  { %4476 = vmatmul.msk.bf16.vlgmr.msra.gmra.mxu3 %vm100_vm1, %v2886_v10 }
0x18ca   :  { %3040 = vmatpush.bf16.msra.mxu0 %v4750_v20 }
0x18ce   :  { %3041 = vmatpush.bf16.msra.mxu0 %v4749_v57 }
0x18d0   :  { %v2838_v12 = vpop.xlane.xlu2 %2837 }
0x18d1   :  { %v2841_v33 = vmul.f32 %v2838_v12, %v5245_v26 }
0x18d2   :  { %3042 = vmatpush.bf16.msra.mxu0 %v4748_v43 }
0x18d3   :  { %v2844_v30 = vadd.f32 1e-05, %v2841_v33 }
0x18d5   :  { %5042 = vrsqrt.f32 %v2844_v30  ;;  %vm2871_vm6 = vweird.f32 %v2844_v30 }
0x18db   :  { %v5043_v32 = vpop.eup %5042 }
0x18dc   :  { %v2866_v37 = vmul.f32 %v5043_v32, %v2844_v30  ;;  %vm2872_vm5 = vweird.f32 %v5043_v32 }
0x18dd   :  { %vm2873_vm7 = vmor %vm2871_vm6, %vm2872_vm5 }
0x18de   :  { %v2867_v0 = vmul.f32 %v5043_v32, %v2866_v37 }
0x18e0   :  { %v2868_v41 = vmul.f32 0.5, %v2867_v0  ;;  %v3059_v0 = vperm.slane %v5125_v36, 5 }
0x18e2   :  { %v2869_v42 = vsub.f32 1.5, %v2868_v41 }
0x18e4   :  { %v2870_v7 = vmul.f32 %v5043_v32, %v2869_v42 }
0x18e6   :  { %v2874_v29 = vsel %vm2873_vm7, %v5043_v32, %v2870_v7 }
0x18e7   :  { %v2877_v38 = vmul.f32 %v2874_v29, %v6322_v34  ;;  %v4747_v34 = vld [vmem:[%s6768_s5 + $0x30] sm:$0xff] }
0x18e8   :  { %3043 = vmatpush.bf16.msra.mxu0 %v4747_v34 }
0x18e9   :  { %v2881_v48 = vmul.f32 %v2878_v5, %v2877_v38 }
0x18eb   :  { %v2885_v53 = vadd.f32 %v2882_v21, %v2881_v48 }
0x18ec   :  { %3044 = vmatpush.bf16.msra.mxu0 %v4746_v55 }
0x18ed   :  { %v2887_v52 = vpack.c.bf16 %v2885_v53, %v2885_v53 }
0x18ef   :  { %4477 = vmatmul.msk.bf16.gmra.mxu3 %vm100_vm1, %v2887_v52 }
0x18f0   :  { %3045 = vmatpush.bf16.msra.mxu0 %v4745_v62 }
0x194c   :  { %v2952_v51 = vpop.f32.mrf.mxu3 }
0x194d   :  { %v2953_v1 = vadd.f32 %v2952_v51, %v2912_v44 }
0x194f   :  { %v2964_v56 = vmul.f32 0.044715, %v2953_v1  ;;  %v2961_v3 = vmul.f32 0.5, %v2953_v1 }
0x1951   :  { %v2967_v35 = vmul.f32 %v2964_v56, %v2953_v1 }
0x1953   :  { %v2970_v50 = vmul.f32 %v2967_v35, %v2953_v1 }
0x1954   :  { %v2954_v40 = vpop.f32.mrf.mxu3 }
0x1955   :  { %v2973_v58 = vadd.f32 %v2970_v50, %v2953_v1  ;;  %v2955_v61 = vadd.f32 %v2954_v40, %v2912_v44 }
0x1957   :  { %v2965_v45 = vmul.f32 0.044715, %v2955_v61  ;;  %v2976_v49 = vmul.f32 0.7978846, %v2973_v58  ;;  %v2962_v46 = vmul.f32 0.5, %v2955_v61 }
0x1959   :  { %v2968_v54 = vmul.f32 %v2965_v45, %v2955_v61  ;;  %5044 = vtanh.f32 %v2976_v49  ;;  %v4760_v45 = vld [vmem:[%s6766_s3 + $0x74] sm:$0xf0]  ;;  %v4759_v49 = vld [vmem:[%s6766_s3 + $0x74] sm:$0xf] }
0x195b   :  { %v2971_v63 = vmul.f32 %v2968_v54, %v2955_v61 }
0x195d   :  { %v2974_v2 = vadd.f32 %v2971_v63, %v2955_v61  ;;  %v4545_v61 = vld [vmem:[%s6766_s3 + $0x70] sm:$0xf]  ;;  %v4547_v63 = vld [vmem:[%s6766_s3 + $0x78] sm:$0xf0] }
0x195e   :  { %v4546_v54 = vor.u32 %v4760_v45, %v4545_v61 }
0x195f   :  { %v2977_v11 = vmul.f32 0.7978846, %v2974_v2  ;;  %v5045_v16 = vpop.eup %5044  ;;  %v4550_v2 = vor.u32 %v4759_v49, %v4547_v63 }
0x1960   :  { %v2982_v9 = vadd.f32 1.0, %v5045_v16  ;;  %3198 = vmatpush.bf16.msra.mxu1 %v4546_v54  ;;  %v4758_v16 = vld [vmem:[%s6766_s3 + $0x64] sm:$0xf0] }
0x1961   :  { %5046 = vtanh.f32 %v2977_v11  ;;  %3216 = vmatpush.bf16.msra.mxu2 %v4550_v2  ;;  %v4537_v11 = vld [vmem:[%s6766_s3 + $0x60] sm:$0xf] }
0x1962   :  { %v2985_v5 = vmul.f32 %v2982_v9, %v2961_v3  ;;  %v4757_v9 = vld [vmem:[%s6766_s3 + $0x64] sm:$0xf]  ;;  %v4539_v3 = vld [vmem:[%s6766_s3 + $0x68] sm:$0xf0] }
0x1967   :  { %v5047_v19 = vpop.eup %5046 }
0x1968   :  { %v2983_v39 = vadd.f32 1.0, %v5047_v19  ;;  %v4538_v19 = vor.u32 %v4758_v16, %v4537_v11 }
0x196a   :  { %v2986_v47 = vmul.f32 %v2983_v39, %v2962_v46  ;;  %v4542_v46 = vor.u32 %v4757_v9, %v4539_v3  ;;  %3199 = vmatpush.bf16.msra.mxu1 %v4538_v19  ;;  %v4529_v39 = vld [vmem:[%s6766_s3 + $0x50] sm:$0xf] }
0x196c   :  { %v2988_v60 = vpack.c.bf16 %v2986_v47, %v2985_v5  ;;  %3217 = vmatpush.bf16.msra.mxu2 %v4542_v46  ;;  %v4756_v5 = vld [vmem:[%s6766_s3 + $0x54] sm:$0xf0]  ;;  %v4755_v47 = vld [vmem:[%s6766_s3 + $0x54] sm:$0xf] }
0x196e   :  { %3046 = vmatmul.bf16.vlgmr.msra.gmra.mxu0 %v2988_v60  ;;  %v4530_v60 = vor.u32 %v4756_v5, %v4529_v39 }
0x1970   :  { %3200 = vmatpush.bf16.msra.mxu1 %v4530_v60 }
0x1972   :  { %v2957_v31 = vpop.f32.mrf.mxu3 }
0x1973   :  { %v2958_v21 = vadd.f32 %v2957_v31, %v2912_v44  ;;  %v4531_v31 = vld [vmem:[%s6766_s3 + $0x58] sm:$0xf0] }
0x1975   :  { %v2966_v22 = vmul.f32 0.044715, %v2958_v21  ;;  %v2963_v33 = vmul.f32 0.5, %v2958_v21 }
0x1977   :  { %v2969_v23 = vmul.f32 %v2966_v22, %v2958_v21  ;;  %v4534_v22 = vor.u32 %v4755_v47, %v4531_v31 }
0x1979   :  { %v2972_v8 = vmul.f32 %v2969_v23, %v2958_v21  ;;  %3218 = vmatpush.bf16.msra.mxu2 %v4534_v22 }
0x197a   :  { %v2959_v15 = vpop.f32.mrf.mxu3 }
0x197b   :  { %v2975_v28 = vadd.f32 %v2972_v8, %v2958_v21  ;;  %v4521_v8 = vld [vmem:[%s6766_s3 + $0x40] sm:$0xf]  ;;  %v4754_v15 = vld [vmem:[%s6766_s3 + $0x44] sm:$0xf0] }
0x197d   :  { %v2978_v10 = vmul.f32 0.7978846, %v2975_v28  ;;  %v4753_v28 = vld [vmem:[%s6766_s3 + $0x44] sm:$0xf] }
0x197f   :  { %5048 = vtanh.f32 %v2978_v10 }
0x1985   :  { %v5049_v12 = vpop.eup %5048 }
0x1986   :  { %v2984_v30 = vadd.f32 1.0, %v5049_v12  ;;  %v4522_v12 = vor.u32 %v4754_v15, %v4521_v8 }
0x1988   :  { %v2987_v32 = vmul.f32 %v2984_v30, %v2963_v33  ;;  %v4523_v33 = vld [vmem:[%s6766_s3 + $0x48] sm:$0xf0]  ;;  %3201 = vmatpush.bf16.msra.mxu1 %v4522_v12 }
0x1989   :  { %v4526_v30 = vor.u32 %v4753_v28, %v4523_v33 }
0x198a   :  { %v2989_v37 = vpack.c.bf16 %v2987_v32, %v2987_v32 }
0x198b   :  { %3219 = vmatpush.bf16.msra.mxu2 %v4526_v30 }
0x198c   :  { %3051 = vmatmul.bf16.gmra.mxu0 %v2989_v37 }
0x19eb   :  { %v3047_v41 = vpop.f32.mrf.mxu0 }
0x19ec   :  { %v3056_v42 = vadd.f32 %v3047_v41, %v6300_v24 }
0x19ee   :  { %v6375_v7 = vadd.f32 %v3059_v0, %v3056_v42 }
0x19f0   :  { %v3064_v29 = vsel %vm100_vm1, %v6375_v7, 0.0 }
0x19f1   :  { %3065 = vadd.xlane.f32.xlu2 %v3064_v29 }
0x19f3   :  { %v3049_v38 = vpop.f32.mrf.mxu0 }
0x19f4   :  { %v3057_v48 = vadd.f32 %v3049_v38, %v6305_v6 }
0x19f6   :  { %v6380_v53 = vadd.f32 %v3059_v0, %v3057_v48 }
0x19f8   :  { %v3067_v52 = vsel %vm100_vm1, %v6380_v53, 0.0 }
0x19f9   :  { %3068 = vadd.xlane.f32.xlu0 %v3067_v52 }
0x1a09   :  { %v3052_v13 = vpop.f32.mrf.mxu0 }
0x1a0a   :  { %v3058_v17 = vadd.f32 %v3052_v13, %v6310_v25 }
0x1a0c   :  { %v6385_v20 = vadd.f32 %v3059_v0, %v3058_v17 }
0x1a0e   :  { %v3070_v24 = vsel %vm107_vm2, %v6385_v20, 0.0 }
0x1a0f   :  { %3071 = vadd.xlane.f32.xlu2 %v3070_v24 }
0x1a11   :  { %v3054_v57 = vpop.f32.mrf.mxu0 }
0x1a12   :  { %v6463_v57 = vld [vmem:[%s6769_s6 + $0x8] sm:$0x7f] }
0x1a64   :  { %v3066_v43 = vpop.xlane.xlu2 %3065 }
0x1a65   :  { %v3073_v34 = vmul.f32 %v3066_v43, %v5245_v26 }
0x1a67   :  { %v6391_v6 = vsub.f32 %v6375_v7, %v3073_v34 }
0x1a69   :  { %v3079_v55 = vmul.f32 %v6391_v6, %v6391_v6 }
0x1a6b   :  { %v3082_v62 = vsel %vm100_vm1, %v3079_v55, 0.0 }
0x1a6c   :  { %v3069_v36 = vpop.xlane.xlu0 %3068  ;;  %3083 = vadd.xlane.f32.xlu1 %v3082_v62  ;;  %v3130_v62 = vperm.slane %v6463_v57, 0 }
0x1a6d   :  { %v3074_v25 = vmul.f32 %v3069_v36, %v5245_v26 }
0x1a6f   :  { %v6398_v44 = vsub.f32 %v6380_v53, %v3074_v25 }
0x1a71   :  { %v3080_v51 = vmul.f32 %v6398_v44, %v6398_v44 }
0x1a73   :  { %v3085_v1 = vsel %vm100_vm1, %v3080_v51, 0.0 }
0x1a74   :  { %3086 = vadd.xlane.f32.xlu0 %v3085_v1 }
0x1a82   :  { %v3072_v56 = vpop.xlane.xlu2 %3071 }
0x1a83   :  { %v3075_v35 = vmul.f32 %v3072_v56, %v5245_v26  ;;  %v3134_v56 = vperm.slane %v6463_v57, 1 }
0x1a85   :  { %v6405_v50 = vsub.f32 %v6385_v20, %v3075_v35 }
0x1a87   :  { %v3081_v40 = vmul.f32 %v6405_v50, %v6405_v50 }
0x1a89   :  { %v3088_v58 = vsel %vm107_vm2, %v3081_v40, 0.0 }
0x1a8a   :  { %3089 = vadd.xlane.f32.xlu2 %v3088_v58 }
0x1adf   :  { %v3084_v21 = vpop.xlane.xlu1 %3083 }
0x1ae0   :  { %v3091_v23 = vmul.f32 %v3084_v21, %v5245_v26 }
0x1ae2   :  { %v3094_v10 = vadd.f32 1e-05, %v3091_v23 }
0x1ae4   :  { %5050 = vrsqrt.f32 %v3094_v10  ;;  %vm3103_vm9 = vweird.f32 %v3094_v10 }
0x1ae7   :  { %v3087_v32 = vpop.xlane.xlu0 %3086 }
0x1ae8   :  { %v3092_v37 = vmul.f32 %v3087_v32, %v5245_v26 }
0x1aea   :  { %v5051_v0 = vpop.eup %5050  ;;  %v3095_v41 = vadd.f32 1e-05, %v3092_v37 }
0x1aeb   :  { %v3098_v42 = vmul.f32 %v5051_v0, %v3094_v10  ;;  %vm3104_vm8 = vweird.f32 %v5051_v0 }
0x1aec   :  { %5052 = vrsqrt.f32 %v3095_v41  ;;  %vm3105_vm10 = vmor %vm3103_vm9, %vm3104_vm8  ;;  %vm3113_vm12 = vweird.f32 %v3095_v41 }
0x1aed   :  { %v3099_v29 = vmul.f32 %v5051_v0, %v3098_v42 }
0x1aef   :  { %v3100_v38 = vmul.f32 0.5, %v3099_v29 }
0x1af1   :  { %v3101_v48 = vsub.f32 1.5, %v3100_v38 }
0x1af2   :  { %v5053_v52 = vpop.eup %5052 }
0x1af3   :  { %v3102_v13 = vmul.f32 %v5051_v0, %v3101_v48  ;;  %v3108_v17 = vmul.f32 %v5053_v52, %v3095_v41  ;;  %vm3114_vm11 = vweird.f32 %v5053_v52 }
0x1af4   :  { %vm3115_vm13 = vmor %vm3113_vm12, %vm3114_vm11 }
0x1af5   :  { %v3109_v24 = vmul.f32 %v5053_v52, %v3108_v17  ;;  %v3106_v43 = vsel %vm3105_vm10, %v5051_v0, %v3102_v13 }
0x1af6   :  { %v3127_v36 = vmul.f32 %v3106_v43, %v6391_v6 }
0x1af7   :  { %v3110_v34 = vmul.f32 0.5, %v3109_v24 }
0x1af8   :  { %v3131_v35 = vmul.f32 %v3130_v62, %v3127_v36 }
0x1af9   :  { %v3111_v55 = vsub.f32 1.5, %v3110_v34 }
0x1afa   :  { %v3135_v49 = vadd.f32 %v3134_v56, %v3131_v35 }
0x1afb   :  { %v3112_v25 = vmul.f32 %v5053_v52, %v3111_v55 }
0x1afd   :  { %v3116_v51 = vsel %vm3115_vm13, %v5053_v52, %v3112_v25  ;;  %v3090_v1 = vpop.xlane.xlu2 %3089 }
0x1afe   :  { %v3128_v40 = vmul.f32 %v3116_v51, %v6398_v44  ;;  %v3093_v58 = vmul.f32 %v3090_v1, %v5245_v26 }
0x1b00   :  { %v3132_v61 = vmul.f32 %v3130_v62, %v3128_v40  ;;  %v3096_v45 = vadd.f32 1e-05, %v3093_v58 }
0x1b02   :  { %v3136_v54 = vadd.f32 %v3134_v56, %v3132_v61  ;;  %5054 = vrsqrt.f32 %v3096_v45  ;;  %vm3123_vm6 = vweird.f32 %v3096_v45 }
0x1b04   :  { %v3138_v63 = vpack.c.bf16 %v3136_v54, %v3135_v49 }
0x1b06   :  { %4551 = vmatmul.msk.bf16.vlgmr.msra.gmra.mxu1 %vm100_vm1, %v3138_v63  ;;  %4553 = vmatmul.msk.bf16.vlgmr.msra.gmra.mxu2 %vm100_vm1, %v3138_v63 }
0x1b08   :  { %v5055_v6 = vpop.eup %5054 }
0x1b09   :  { %v3118_v2 = vmul.f32 %v5055_v6, %v3096_v45  ;;  %vm3124_vm5 = vweird.f32 %v5055_v6 }
0x1b0a   :  { %vm3125_vm7 = vmor %vm3123_vm6, %vm3124_vm5 }
0x1b0b   :  { %v3119_v11 = vmul.f32 %v5055_v6, %v3118_v2 }
0x1b0d   :  { %v3120_v16 = vmul.f32 0.5, %v3119_v11 }
0x1b0f   :  { %v3121_v9 = vsub.f32 1.5, %v3120_v16 }
0x1b11   :  { %v3122_v19 = vmul.f32 %v5055_v6, %v3121_v9 }
0x1b13   :  { %v3126_v44 = vsel %vm3125_vm7, %v5055_v6, %v3122_v19 }
0x1b14   :  { %v3129_v3 = vmul.f32 %v3126_v44, %v6405_v50 }
0x1b16   :  { %v3133_v46 = vmul.f32 %v3130_v62, %v3129_v3 }
0x1b18   :  { %v3137_v39 = vadd.f32 %v3134_v56, %v3133_v46 }
0x1b1a   :  { %v3139_v5 = vpack.c.bf16 %v3137_v39, %v3137_v39 }
0x1b1c   :  { %4552 = vmatmul.msk.bf16.gmra.mxu1 %vm100_vm1, %v3139_v5  ;;  %4554 = vmatmul.msk.bf16.gmra.mxu2 %vm100_vm1, %v3139_v5 }
0x1b83   :  { %v3203_v47 = vpop.f32.mrf.mxu1 }
0x1b89   :  { %v3221_v21 = vpop.f32.mrf.mxu2 }
0x1b8b   :  { %v3205_v60 = vpop.f32.mrf.mxu1 }
0x1b8c   :  { %v3230_v31 = vpack.c.bf16 %v3205_v60, %v3203_v47 }
0x1b8e   :  { %3236 = vrot.lane.b32.xlu2 %v3230_v31, %s5157_s28 }
0x1b91   :  { %v3223_v22 = vpop.f32.mrf.mxu2 }
0x1b92   :  { %v6491_v12 = vpack.c.bf16 %v3223_v22, %v3221_v21 }
0x1b99   :  { %v3208_v23 = vpop.f32.mrf.mxu1 }
0x1b9a   :  { %v6476_v8 = vpack.c.bf16 %v3208_v23, %v3208_v23 }
0x1b9c   :  { %3334 = vrot.lane.b32.xlu2 %v6476_v8, %s5158_s29  ;;  %3338 = vrot.lane.b32.xlu0 %v6476_v8, %s5159_s30 }
0x1b9d   :  { %3238 = vrot.lane.b32.xlu1 %v6476_v8, %s5157_s28 }
0x1b9f   :  { %v3226_v50 = vpop.f32.mrf.mxu2 }
0x1ba0   :  { %v6484_v15 = vpack.c.bf16 %v3226_v50, %v3226_v50 }
0x1ba1   :  { %v3210_v28 = vpop.f32.mrf.mxu1 }
0x1ba2   :  { %v3312_v10 = vand.u32 %v6484_v15, %v5337_v59 }
0x1ba4   :  { %3548 = vrot.lane.b32.xlu2 %v3230_v31, %s5161_s8  ;;  %3336 = vrot.lane.b32.xlu0 %v3230_v31, %s5159_s30 }
0x1ba5   :  { %3332 = vrot.lane.b32.xlu1 %v3230_v31, %s5158_s29  ;;  %3320 = vmatpush.bf16.msrb.mxu0 %v3312_v10 }
0x1ba7   :  { %v3228_v33 = vpop.f32.mrf.mxu2 }
0x1ba9   :  { %3321 = vmatpush.bf16.msrb.mxu0 %v6491_v12 }
0x1bac   :  { %3445 = vrot.lane.b32.xlu0 %v6476_v8, %s5162_s9 }
0x1bad   :  { %3550 = vrot.lane.b32.xlu1 %v6476_v8, %s5161_s8 }
0x1bb4   :  { %3443 = vrot.lane.b32.xlu0 %v3230_v31, %s5162_s9 }
0x1bb5   :  { %3439 = vrot.lane.b32.xlu1 %v3230_v31, %s5163_s10 }
0x1bbc   :  { %3544 = vrot.lane.b32.xlu0 %v3230_v31, %s5164_s11 }
0x1be8   :  { %v3237_v41 = vpop.permute.xlu2 %3236 }
0x1be9   :  { %v3247_v48 = vsel %vm285_vm14, %v3237_v41, 0 }
0x1bf6   :  { %v3335_v52 = vpop.permute.xlu2 %3334 }
0x1bfe   :  { %v3549_v34 = vpop.permute.xlu2 %3548 }
0x1bff   :  { %v3559_v36 = vsel %vm285_vm14, %v3549_v34, 0 }
0x1c0e   :  { %v3339_v30 = vpop.permute.xlu0 %3338 }
0x1c0f   :  { %v3350_v32 = vsel %vm285_vm14, %v3339_v30, 0  ;;  %v3239_v37 = vpop.permute.xlu1 %3238 }
0x1c10   :  { %v3250_v0 = vsel %vm285_vm14, %v3239_v37, 0  ;;  %3358 = vmatpush.bf16.xpose.msrb.mxu1 %v3350_v32 }
0x1c11   :  { %3258 = vmatpush.bf16.xpose.msrb.mxu3 %v3250_v0 }
0x1c16   :  { %v3337_v42 = vpop.permute.xlu0 %3336 }
0x1c17   :  { %v3347_v29 = vsel %vm285_vm14, %v3337_v42, 0  ;;  %v3333_v38 = vpop.permute.xlu1 %3332 }
0x1c18   :  { %3359 = vmatpush.bf16.xpose.msrb.mxu1 %v3347_v29 }
0x1c19   :  { %3259 = vmatpush.bf16.xpose.msrb.mxu3 %v3247_v48 }
0x1c1e   :  { %v3446_v13 = vpop.permute.xlu0 %3445 }
0x1c1f   :  { %v3457_v17 = vsel %vm285_vm14, %v3446_v13, 0  ;;  %v3551_v24 = vpop.permute.xlu1 %3550  ;;  %4559 = vmatmul.msk.bf16.vlgmr.msrb.gmra.mxu1 %vm285_vm14, %v3333_v38 }
0x1c20   :  { %v3562_v43 = vsel %vm285_vm14, %v3551_v24, 0  ;;  %4555 = vmatmul.msk.bf16.vlgmr.msrb.gmra.mxu3 %vm285_vm14, %v3230_v31 }
0x1c21   :  { %3465 = vmatpush.bf16.xpose.msra.mxu3 %v3457_v17  ;;  %3570 = vmatpush.bf16.xpose.msra.mxu1 %v3562_v43 }
0x1c26   :  { %v3444_v55 = vpop.permute.xlu0 %3443 }
0x1c27   :  { %v3454_v62 = vsel %vm285_vm14, %v3444_v55, 0  ;;  %v3440_v51 = vpop.permute.xlu1 %3439 }
0x1c29   :  { %3466 = vmatpush.bf16.xpose.msra.mxu3 %v3454_v62  ;;  %3571 = vmatpush.bf16.xpose.msra.mxu1 %v3559_v36 }
0x1c2e   :  { %v3545_v25 = vpop.permute.xlu0 %3544 }
0x1c2f   :  { %4560 = vmatmul.msk.bf16.gmra.mxu1 %vm285_vm14, %v3335_v52 }
0x1c30   :  { %4556 = vmatmul.msk.bf16.gmra.mxu3 %vm285_vm14, %v6476_v8 }
0x1c3f   :  { %4567 = vmatmul.msk.bf16.vlgmr.msra.gmra.mxu1 %vm285_vm14, %v3545_v25 }
0x1c40   :  { %4563 = vmatmul.msk.bf16.vlgmr.msra.gmra.mxu3 %vm285_vm14, %v3440_v51 }
0x1c9c   :  { %v3361_v1 = vpop.f32.mrf.mxu1 }
0x1c9d   :  { %v3370_v56 = vsel %vm316_vm15, %v3361_v1, -inf }
0x1c9e   :  { %3371 = vmax.xlane.f32.xlu2 %v3370_v56 }
0x1ca3   :  { %v3261_v35 = vpop.f32.mrf.mxu3 }
0x1ca4   :  { %v3363_v40 = vpop.f32.mrf.mxu1  ;;  %v3270_v58 = vsel %vm316_vm15, %v3261_v35, -inf }
0x1ca5   :  { %3271 = vmax.xlane.f32.xlu0 %v3270_v58  ;;  %v3373_v61 = vsel %vm316_vm15, %v3363_v40, -inf }
0x1ca6   :  { %3374 = vmax.xlane.f32.xlu1 %v3373_v61 }
0x1cab   :  { %v3263_v45 = vpop.f32.mrf.mxu3 }
0x1cac   :  { %v3273_v49 = vsel %vm316_vm15, %v3263_v45, -inf  ;;  %v3366_v54 = vpop.f32.mrf.mxu1 }
0x1cad   :  { %3274 = vmax.xlane.f32.xlu2 %v3273_v49  ;;  %v3376_v63 = vsel %vm323_vm3, %v3366_v54, -inf }
0x1cae   :  { %3377 = vmax.xlane.f32.xlu1 %v3376_v63 }
0x1cb3   :  { %v3266_v6 = vpop.f32.mrf.mxu3 }
0x1cb4   :  { %v3276_v2 = vsel %vm323_vm3, %v3266_v6, -inf  ;;  %v3368_v11 = vpop.f32.mrf.mxu1 }
0x1cb5   :  { %3277 = vmax.xlane.f32.xlu0 %v3276_v2 }
0x1cbb   :  { %v3268_v16 = vpop.f32.mrf.mxu3 }
0x1cbc   :  { %v3573_v9 = vpop.f32.mrf.mxu1 }
0x1cbd   :  { %v3582_v19 = vsel %vm316_vm15, %v3573_v9, -inf }
0x1cbe   :  { %3583 = vmax.xlane.f32.xlu2 %v3582_v19 }
0x1cc3   :  { %v3468_v44 = vpop.f32.mrf.mxu3 }
0x1cc4   :  { %v3477_v3 = vsel %vm316_vm15, %v3468_v44, -inf  ;;  %v6524_v46 = vpop.f32.mrf.mxu1 }
0x1cc5   :  { %3478 = vmax.xlane.f32.xlu0 %v3477_v3  ;;  %v3585_v39 = vsel %vm316_vm15, %v6524_v46, -inf }
0x1cc6   :  { %3586 = vmax.xlane.f32.xlu1 %v3585_v39 }
0x1ccb   :  { %v6528_v5 = vpop.f32.mrf.mxu3 }
0x1ccc   :  { %v3480_v47 = vsel %vm316_vm15, %v6528_v5, -inf }
0x1ccd   :  { %3481 = vmax.xlane.f32.xlu2 %v3480_v47 }
0x1cdf   :  { %3407 = vrot.lane.b32.xlu1 %v6491_v12, %s5158_s29 }
0x1ce5   :  { %3409 = vrot.lane.b32.xlu2 %v6484_v15, %s5158_s29 }
0x1d11   :  { %v3372_v60 = vpop.xlane.xlu2 %3371 }
0x1d12   :  { %v3379_v31 = vsub.f32 %v3361_v1, %v3372_v60 }
0x1d14   :  { %v3382_v21 = vmul.f32 1.442695, %v3379_v31 }
0x1d16   :  { %5056 = vpow2.f32 %v3382_v21 }
0x1d18   :  { %v3272_v22 = vpop.xlane.xlu0 %3271 }
0x1d19   :  { %v3279_v23 = vsub.f32 %v3261_v35, %v3272_v22  ;;  %v3375_v50 = vpop.xlane.xlu1 %3374 }
0x1d1a   :  { %v3380_v28 = vsub.f32 %v3363_v40, %v3375_v50 }
0x1d1b   :  { %v3282_v10 = vmul.f32 1.442695, %v3279_v23 }
0x1d1c   :  { %v6536_v33 = vpop.eup %5056  ;;  %v3384_v30 = vmul.f32 1.442695, %v3380_v28 }
0x1d1d   :  { %5058 = vpow2.f32 %v3282_v10  ;;  %v3388_v32 = vsel %vm316_vm15, %v6536_v33, 0.0 }
0x1d1e   :  { %5060 = vpow2.f32 %v3384_v30  ;;  %3389 = vadd.xlane.f32.xlu1 %v3388_v32 }
0x1d20   :  { %v3275_v37 = vpop.xlane.xlu2 %3274 }
0x1d21   :  { %v3280_v0 = vsub.f32 %v3263_v45, %v3275_v37  ;;  %v3378_v41 = vpop.xlane.xlu1 %3377 }
0x1d22   :  { %v3381_v48 = vsub.f32 %v3366_v54, %v3378_v41 }
0x1d23   :  { %v6540_v42 = vpop.eup %5058  ;;  %v3284_v29 = vmul.f32 1.442695, %v3280_v0 }
0x1d24   :  { %v6542_v38 = vpop.eup %5060  ;;  %v3288_v13 = vsel %vm316_vm15, %v6540_v42, 0.0  ;;  %v3386_v17 = vmul.f32 1.442695, %v3381_v48 }
0x1d25   :  { %5062 = vpow2.f32 %v3284_v29  ;;  %v3391_v52 = vsel %vm316_vm15, %v6542_v38, 0.0 }
0x1d26   :  { %3392 = vadd.xlane.f32.xlu0 %v3391_v52  ;;  %3289 = vadd.xlane.f32.xlu1 %v3288_v13  ;;  %5064 = vpow2.f32 %v3386_v17 }
0x1d28   :  { %v3278_v24 = vpop.xlane.xlu0 %3277 }
0x1d29   :  { %v3281_v34 = vsub.f32 %v3266_v6, %v3278_v24 }
0x1d2b   :  { %v6548_v43 = vpop.eup %5062  ;;  %v3286_v62 = vmul.f32 1.442695, %v3281_v34 }
0x1d2c   :  { %v3291_v55 = vsel %vm316_vm15, %v6548_v43, 0.0  ;;  %v6552_v25 = vpop.eup %5064 }
0x1d2d   :  { %5066 = vpow2.f32 %v3286_v62  ;;  %v3394_v56 = vsel %vm323_vm3, %v6552_v25, 0.0 }
0x1d2e   :  { %3292 = vadd.xlane.f32.xlu0 %v3291_v55 }
0x1d31   :  { %v3584_v36 = vpop.xlane.xlu2 %3583 }
0x1d32   :  { %v3591_v51 = vsub.f32 %v3573_v9, %v3584_v36  ;;  %v5126_v36 = vld [vmem:[%s6764_s1 + $0x30] sm:$0xff] }
0x1d33   :  { %v6556_v61 = vpop.eup %5066 }
0x1d34   :  { %v3594_v1 = vmul.f32 1.442695, %v3591_v51  ;;  %v3294_v63 = vsel %vm323_vm3, %v6556_v61, 0.0 }
0x1d36   :  { %5068 = vpow2.f32 %v3594_v1  ;;  %3395 = vadd.xlane.f32.xlu0 %v3394_v56  ;;  %v5128_v1 = vld [vmem:[%s6764_s1 + $0x20] sm:$0xff] }
0x1d38   :  { %v3479_v35 = vpop.xlane.xlu0 %3478 }
0x1d39   :  { %v3486_v40 = vsub.f32 %v3468_v44, %v3479_v35  ;;  %v3587_v58 = vpop.xlane.xlu1 %3586 }
0x1d3a   :  { %v3592_v54 = vsub.f32 %v6524_v46, %v3587_v58 }
0x1d3b   :  { %v3489_v45 = vmul.f32 1.442695, %v3486_v40  ;;  %v5129_v40 = vld [vmem:[%s6764_s1 + $0x18] sm:$0xff] }
0x1d3c   :  { %v6558_v49 = vpop.eup %5068  ;;  %v3596_v2 = vmul.f32 1.442695, %v3592_v54 }
0x1d3d   :  { %5070 = vpow2.f32 %v3489_v45  ;;  %v3600_v6 = vsel %vm316_vm15, %v6558_v49, 0.0 }
0x1d3e   :  { %3295 = vadd.xlane.f32.xlu0 %v3294_v63  ;;  %3601 = vadd.xlane.f32.xlu2 %v3600_v6  ;;  %5072 = vpow2.f32 %v3596_v2 }
0x1d3f   :  { %3619 = vrot.lane.b32.xlu1 %v6484_v15, %s5164_s11 }
0x1d40   :  { %v3482_v11 = vpop.xlane.xlu2 %3481 }
0x1d41   :  { %v3487_v47 = vsub.f32 %v6528_v5, %v3482_v11 }
0x1d43   :  { %v6567_v16 = vpop.eup %5070  ;;  %v3491_v60 = vmul.f32 1.442695, %v3487_v47 }
0x1d44   :  { %v3495_v9 = vsel %vm316_vm15, %v6567_v16, 0.0  ;;  %v6572_v3 = vpop.eup %5072 }
0x1d45   :  { %v3603_v46 = vsel %vm316_vm15, %v6572_v3, 0.0  ;;  %5074 = vpow2.f32 %v3491_v60 }
0x1d46   :  { %3496 = vadd.xlane.f32.xlu0 %v3495_v9 }
0x1d48   :  { %v3410_v19 = vpop.permute.xlu2 %3409 }
0x1d49   :  { %v3419_v44 = vand.u32 %v3410_v19, %v5337_v59 }
0x1d4b   :  { %3427 = vmatpush.bf16.msrb.mxu2 %v3419_v44  ;;  %v6581_v31 = vpop.eup %5074 }
0x1d4c   :  { %v3498_v21 = vsel %vm316_vm15, %v6581_v31, 0.0 }
0x1d4e   :  { %3604 = vadd.xlane.f32.xlu0 %v3603_v46 }
0x1d51   :  { %v3408_v39 = vpop.permute.xlu1 %3407 }
0x1d52   :  { %3428 = vmatpush.bf16.msrb.mxu2 %v3408_v39 }
0x1d56   :  { %3617 = vrot.lane.b32.xlu2 %v6491_v12, %s5164_s11 }
0x1d62   :  { %3514 = vrot.lane.b32.xlu0 %v6484_v15, %s5163_s10 }
0x1d69   :  { %3499 = vadd.xlane.f32.xlu1 %v3498_v21 }
0x1d6a   :  { %3512 = vrot.lane.b32.xlu0 %v6491_v12, %s5163_s10 }
0x1d72   :  { %3441 = vrot.lane.b32.xlu0 %v6476_v8, %s5163_s10 }
0x1d7a   :  { %3546 = vrot.lane.b32.xlu0 %v6476_v8, %s5164_s11 }
0x1d91   :  { %v3390_v5 = vpop.xlane.xlu1 %3389 }
0x1d92   :  { %5076 = vrcp.f32 %v3390_v5 }
0x1d98   :  { %v5077_v23 = vpop.eup %5076 }
0x1d99   :  { %v3393_v22 = vpop.xlane.xlu0 %3392  ;;  %v3290_v15 = vpop.xlane.xlu1 %3289  ;;  %v3400_v28 = vmul.f32 %v5077_v23, %v6536_v33 }
0x1d9a   :  { %5078 = vrcp.f32 %v3393_v22 }
0x1d9b   :  { %5080 = vrcp.f32 %v3290_v15 }
0x1da0   :  { %v5079_v50 = vpop.eup %5078 }
0x1da1   :  { %v3401_v10 = vmul.f32 %v5079_v50, %v6542_v38  ;;  %v3293_v30 = vpop.xlane.xlu0 %3292  ;;  %v5081_v32 = vpop.eup %5080 }
0x1da2   :  { %5082 = vrcp.f32 %v3293_v30  ;;  %v3300_v8 = vmul.f32 %v5081_v32, %v6540_v42 }
0x1da3   :  { %v3403_v12 = vpack.c.bf16 %v3401_v10, %v3400_v28 }
0x1da5   :  { %4561 = vmatmul.msk.bf16.vlgmr.msrb.gmra.mxu2 %vm316_vm15, %v3403_v12 }
0x1da8   :  { %v5083_v37 = vpop.eup %5082 }
0x1da9   :  { %v3301_v0 = vmul.f32 %v5083_v37, %v6548_v43  ;;  %v3396_v41 = vpop.xlane.xlu0 %3395 }
0x1daa   :  { %5084 = vrcp.f32 %v3396_v41  ;;  %v4764_v41 = vld [vmem:[%s6767_s4 + $0x38] sm:$0xff] }
0x1dab   :  { %v3303_v29 = vpack.c.bf16 %v3301_v0, %v3300_v8  ;;  %3738 = vmatpush.bf16.msrb.mxu3 %v4764_v41 }
0x1dad   :  { %4557 = vmatmul.msk.bf16.vlgmr.msrb.gmra.mxu0 %vm316_vm15, %v3303_v29  ;;  %v4763_v29 = vld [vmem:[%s6767_s4 + $0x30] sm:$0xff] }
0x1daf   :  { %3739 = vmatpush.bf16.msrb.mxu3 %v4763_v29 }
0x1db0   :  { %v5085_v48 = vpop.eup %5084 }
0x1db1   :  { %v3402_v33 = vmul.f32 %v5085_v48, %v6552_v25  ;;  %v3296_v38 = vpop.xlane.xlu0 %3295  ;;  %v3620_v52 = vpop.permute.xlu1 %3619  ;;  %v5127_v25 = vld [vmem:[%s6764_s1 + $0x28] sm:$0xff] }
0x1db2   :  { %5086 = vrcp.f32 %v3296_v38  ;;  %v3629_v13 = vand.u32 %v3620_v52, %v5337_v59  ;;  %v3602_v17 = vpop.xlane.xlu2 %3601  ;;  %v4761_v38 = vld [vmem:[%s6767_s4 + $0x20] sm:$0xff] }
0x1db3   :  { %v3404_v24 = vpack.c.bf16 %v3402_v33, %v3402_v33  ;;  %5088 = vrcp.f32 %v3602_v17  ;;  %v4762_v33 = vld [vmem:[%s6767_s4 + $0x28] sm:$0xff]  ;;  %s5166_s4 = smov 1  }
0x1db4   :  { %3637 = vmatpush.bf16.msra.mxu2 %v3629_v13  ;;  %3740 = vmatpush.bf16.msrb.mxu3 %v4762_v33 }
0x1db5   :  { %4562 = vmatmul.msk.bf16.gmra.mxu2 %vm316_vm15, %v3404_v24 }
0x1db8   :  { %v5087_v42 = vpop.eup %5086  ;;  %3741 = vmatpush.bf16.msrb.mxu3 %v4761_v38 }
0x1db9   :  { %v3302_v43 = vmul.f32 %v5087_v42, %v6556_v61  ;;  %v3497_v34 = vpop.xlane.xlu0 %3496  ;;  %v5089_v56 = vpop.eup %5088 }
0x1dba   :  { %v3618_v55 = vpop.permute.xlu2 %3617  ;;  %v3612_v58 = vmul.f32 %v5089_v56, %v6558_v49 }
0x1dbb   :  { %3638 = vmatpush.bf16.msra.mxu2 %v3618_v55  ;;  %v3304_v62 = vpack.c.bf16 %v3302_v43, %v3302_v43 }
0x1dbd   :  { %4558 = vmatmul.msk.bf16.gmra.mxu0 %vm316_vm15, %v3304_v62 }
0x1dbf   :  { %4036 = vmatpush.bf16.msrb.mxu2 %v5126_v36 }
0x1dc1   :  { %v3605_v51 = vpop.xlane.xlu0 %3604 }
0x1dc2   :  { %5090 = vrcp.f32 %v3605_v51 }
0x1dc3   :  { %4037 = vmatpush.bf16.msrb.mxu2 %v5127_v25  ;;  %5092 = vrcp.f32 %v3497_v34 }
0x1dc7   :  { %4038 = vmatpush.bf16.msrb.mxu2 %v5128_v1 }
0x1dc8   :  { %v5091_v35 = vpop.eup %5090 }
0x1dc9   :  { %v3613_v61 = vmul.f32 %v5091_v35, %v6572_v3  ;;  %v5093_v11 = vpop.eup %5092 }
0x1dca   :  { %v3507_v19 = vmul.f32 %v5093_v11, %v6567_v16 }
0x1dcb   :  { %4039 = vmatpush.bf16.msrb.mxu2 %v5129_v40  ;;  %v3615_v45 = vpack.c.bf16 %v3613_v61, %v3612_v58 }
0x1dcd   :  { %4569 = vmatmul.msk.bf16.vlgmr.msra.gmra.mxu2 %vm316_vm15, %v3615_v45 }
0x1dd4   :  { %v3515_v54 = vpop.permute.xlu0 %3514 }
0x1dd5   :  { %v3524_v63 = vand.u32 %v3515_v54, %v5337_v59 }
0x1dd7   :  { %3532 = vmatpush.bf16.msra.mxu0 %v3524_v63 }
0x1ddc   :  { %v3513_v6 = vpop.permute.xlu0 %3512  ;;  %v3500_v2 = vpop.xlane.xlu1 %3499 }
0x1ddd   :  { %5094 = vrcp.f32 %v3500_v2  ;;  %3533 = vmatpush.bf16.msra.mxu0 %v3513_v6 }
0x1de3   :  { %v5095_v9 = vpop.eup %5094 }
0x1de4   :  { %v3508_v49 = vmul.f32 %v5095_v9, %v6581_v31  ;;  %v3442_v44 = vpop.permute.xlu0 %3441 }
0x1de5   :  { %4564 = vmatmul.msk.bf16.gmra.mxu3 %vm285_vm14, %v3442_v44 }
0x1de6   :  { %v3510_v3 = vpack.c.bf16 %v3508_v49, %v3507_v19  ;;  %v6654_v49 = vperm.slane %v6463_v57, 2 }
0x1de8   :  { %4565 = vmatmul.msk.bf16.vlgmr.msra.gmra.mxu0 %vm316_vm15, %v3510_v3 }
0x1dec   :  { %v3547_v46 = vpop.permute.xlu0 %3546 }
0x1ded   :  { %4568 = vmatmul.msk.bf16.gmra.mxu1 %vm285_vm14, %v3547_v46 }
0x1e28   :  { %v3430_v59 = vpop.f32.mrf.mxu2 }
0x1e2a   :  { %v3323_v39 = vpop.f32.mrf.mxu0 }
0x1e30   :  { %v3432_v47 = vpop.f32.mrf.mxu2 }
0x1e31   :  { %v4833_v60 = vpack.i.bf16 %v3432_v47, %v3430_v59 }
0x1e32   :  { %v3325_v21 = vpop.f32.mrf.mxu0 }
0x1e33   :  { %4834 = vrot.lane.b32.xlu1 %v4833_v60, %s5161_s8 }
0x1e38   :  { %v6624_v5 = vpop.f32.mrf.mxu2 }
0x1e3a   :  { %v6626_v16 = vpop.f32.mrf.mxu0 }
0x1e40   :  { %v3437_v31 = vpop.f32.mrf.mxu2 }
0x1e42   :  { %v3330_v22 = vpop.f32.mrf.mxu0 }
0x1e50   :  { %v3640_v15 = vpop.f32.mrf.mxu2 }
0x1e58   :  { %v3642_v23 = vpop.f32.mrf.mxu2 }
0x1e59   :  { %v4843_v50 = vpack.i.bf16 %v3642_v23, %v3640_v15 }
0x1e5b   :  { %4844 = vrot.lane.b32.xlu0 %v4843_v50, %s5159_s30 }
0x1e65   :  { %v3535_v28 = vpop.f32.mrf.mxu0 }
0x1e68   :  { %v3473_v10 = vpop.f32.mrf.mxu3 }
0x1e69   :  { %v3483_v0 = vsel %vm323_vm3, %v3473_v10, -inf }
0x1e6a   :  { %v3578_v30 = vpop.f32.mrf.mxu1 }
0x1e6b   :  { %v3588_v48 = vsel %vm323_vm3, %v3578_v30, -inf }
0x1e6d   :  { %v3537_v12 = vpop.f32.mrf.mxu0 }
0x1e6e   :  { %v4838_v32 = vpack.i.bf16 %v3537_v12, %v3535_v28 }
0x1e70   :  { %v3475_v37 = vpop.f32.mrf.mxu3  ;;  %4839 = vrot.lane.b32.xlu2 %v4838_v32, %s5162_s9 }
0x1e72   :  { %v3580_v8 = vpop.f32.mrf.mxu1 }
0x1e85   :  { %3484 = vmax.xlane.f32.xlu0 %v3483_v0 }
0x1e99   :  { %3589 = vmax.xlane.f32.xlu2 %v3588_v48 }
0x1ea5   :  { %v4835_v52 = vpop.permute.xlu1 %4834 }
0x1ea6   :  { %v4837_v13 = vunpack.i.h.bf16 %v4835_v52  ;;  %v4836_v17 = vunpack.i.l.bf16 %v4835_v52 }
0x1ea8   :  { %v3686_v55 = vsel %vm285_vm14, %v3325_v21, %v4837_v13  ;;  %v3685_v62 = vsel %vm285_vm14, %v3323_v39, %v4836_v17  ;;  %v4768_v13 = vld [vmem:[%s6768_s5 + $0x78] sm:$0xff]  ;;  %v4767_v17 = vld [vmem:[%s6768_s5 + $0x70] sm:$0xff] }
0x1ea9   :  { %3894 = vmatpush.bf16.msrb.mxu0 %v4768_v13 }
0x1ead   :  { %3895 = vmatpush.bf16.msrb.mxu0 %v4767_v17 }
0x1eca   :  { %v4840_v24 = vpop.permute.xlu2 %4839 }
0x1ecb   :  { %v4842_v42 = vunpack.i.h.bf16 %v4840_v24  ;;  %v4841_v43 = vunpack.i.l.bf16 %v4840_v24  ;;  %v4766_v24 = vld [vmem:[%s6768_s5 + $0x68] sm:$0xff] }
0x1ecc   :  { %3896 = vmatpush.bf16.msrb.mxu0 %v4766_v24 }
0x1ecd   :  { %v4845_v34 = vpop.permute.xlu0 %4844  ;;  %v3688_v51 = vsel %vm739_vm4, %v3685_v62, %v4841_v43  ;;  %v3689_v1 = vsel %vm739_vm4, %v3686_v55, %v4842_v42  ;;  %v4765_v55 = vld [vmem:[%s6768_s5 + $0x60] sm:$0xff] }
0x1ece   :  { %v4847_v36 = vunpack.i.h.bf16 %v4845_v34  ;;  %v4846_v25 = vunpack.i.l.bf16 %v4845_v34 }
0x1ed0   :  { %v3692_v56 = vsel %vm74_vm0, %v3689_v1, %v4847_v36  ;;  %v3691_v35 = vsel %vm74_vm0, %v3688_v51, %v4846_v25  ;;  %3897 = vmatpush.bf16.msrb.mxu0 %v4765_v55 }
0x1ed1   :  { %v3694_v40 = vpack.c.bf16 %v3692_v56, %v3691_v35 }
0x1ed3   :  { %4595 = vmatmul.msk.bf16.vlgmr.msrb.gmra.mxu3 %vm100_vm1, %v3694_v40 }
0x1ef8   :  { %v3485_v58 = vpop.xlane.xlu0 %3484 }
0x1ef9   :  { %v3488_v61 = vsub.f32 %v3473_v10, %v3485_v58 }
0x1efb   :  { %v3493_v45 = vmul.f32 1.442695, %v3488_v61 }
0x1efd   :  { %5096 = vpow2.f32 %v3493_v45 }
0x1f03   :  { %v5097_v54 = vpop.eup %5096 }
0x1f04   :  { %v3501_v63 = vsel %vm323_vm3, %v5097_v54, 0.0 }
0x1f05   :  { %3502 = vadd.xlane.f32.xlu2 %v3501_v63 }
0x1f0c   :  { %v3590_v6 = vpop.xlane.xlu2 %3589 }
0x1f0d   :  { %v3593_v2 = vsub.f32 %v3578_v30, %v3590_v6 }
0x1f0f   :  { %v3598_v11 = vmul.f32 1.442695, %v3593_v2 }
0x1f11   :  { %5098 = vpow2.f32 %v3598_v11  ;;  %v6691_v11 = vperm.slane %v6463_v57, 3 }
0x1f17   :  { %v5099_v9 = vpop.eup %5098 }
0x1f18   :  { %v3606_v19 = vsel %vm323_vm3, %v5099_v9, 0.0 }
0x1f19   :  { %3607 = vadd.xlane.f32.xlu1 %v3606_v19 }
0x1f56   :  { %v3743_v44 = vpop.f32.mrf.mxu3 }
0x1f57   :  { %v3752_v3 = vadd.f32 %v3743_v44, %v6375_v7 }
0x1f59   :  { %v6658_v46 = vadd.f32 %v6654_v49, %v3752_v3  ;;  %v6694_v3 = vperm.slane %v6463_v57, 4 }
0x1f5b   :  { %v3759_v59 = vsel %vm100_vm1, %v6658_v46, 0.0 }
0x1f5c   :  { %3760 = vadd.xlane.f32.xlu0 %v3759_v59 }
0x1f5e   :  { %v3745_v39 = vpop.f32.mrf.mxu3 }
0x1f5f   :  { %v3753_v47 = vadd.f32 %v3745_v39, %v6380_v53 }
0x1f61   :  { %v3757_v60 = vadd.f32 %v6654_v49, %v3753_v47 }
0x1f63   :  { %v3762_v21 = vsel %vm100_vm1, %v3757_v60, 0.0 }
0x1f64   :  { %3763 = vadd.xlane.f32.xlu2 %v3762_v21 }
0x1f78   :  { %v3503_v31 = vpop.xlane.xlu2 %3502 }
0x1f79   :  { %5100 = vrcp.f32 %v3503_v31 }
0x1f7c   :  { %3656 = vrot.lane.b32.xlu2 %v6624_v5, %s5161_s8 }
0x1f7f   :  { %v5101_v7 = vpop.eup %5100 }
0x1f80   :  { %v3509_v22 = vmul.f32 %v5101_v7, %v5097_v54 }
0x1f82   :  { %v3511_v15 = vpack.c.bf16 %v3509_v22, %v3509_v22 }
0x1f84   :  { %4566 = vmatmul.msk.bf16.gmra.mxu0 %vm316_vm15, %v3511_v15 }
0x1f8c   :  { %v3608_v23 = vpop.xlane.xlu1 %3607 }
0x1f8d   :  { %5102 = vrcp.f32 %v3608_v23 }
0x1f93   :  { %v5103_v50 = vpop.eup %5102 }
0x1f94   :  { %v3614_v28 = vmul.f32 %v5103_v50, %v5099_v9 }
0x1f96   :  { %v3616_v53 = vpack.c.bf16 %v3614_v28, %v3614_v28 }
0x1f98   :  { %4570 = vmatmul.msk.bf16.gmra.mxu2 %vm316_vm15, %v3616_v53 }
0x1fcf   :  { %v3761_v10 = vpop.xlane.xlu0 %3760 }
0x1fd0   :  { %v3768_v30 = vmul.f32 %v3761_v10, %v5245_v26  ;;  %v4776_v10 = vld [vmem:[%s6768_s5 + $0xb8] sm:$0xff] }
0x1fd1   :  { %3985 = vmatpush.bf16.msrb.mxu1 %v4776_v10 }
0x1fd2   :  { %v3771_v12 = vsub.f32 %v6658_v46, %v3768_v30  ;;  %v4775_v30 = vld [vmem:[%s6768_s5 + $0xb0] sm:$0xff] }
0x1fd4   :  { %v3774_v32 = vmul.f32 %v3771_v12, %v3771_v12 }
0x1fd5   :  { %3986 = vmatpush.bf16.msrb.mxu1 %v4775_v30 }
0x1fd6   :  { %v3777_v5 = vsel %vm100_vm1, %v3774_v32, 0.0  ;;  %v4772_v32 = vld [vmem:[%s6768_s5 + $0x98] sm:$0xff] }
0x1fd7   :  { %3778 = vadd.xlane.f32.xlu0 %v3777_v5  ;;  %v3764_v37 = vpop.xlane.xlu2 %3763  ;;  %v4771_v5 = vld [vmem:[%s6768_s5 + $0x90] sm:$0xff] }
0x1fd8   :  { %v3769_v8 = vmul.f32 %v3764_v37, %v5245_v26  ;;  %v4770_v37 = vld [vmem:[%s6768_s5 + $0x88] sm:$0xff] }
0x1fda   :  { %v3772_v0 = vsub.f32 %v3757_v60, %v3769_v8  ;;  %v4769_v8 = vld [vmem:[%s6768_s5 + $0x80] sm:$0xff] }
0x1fdc   :  { %v3775_v41 = vmul.f32 %v3772_v0, %v3772_v0 }
0x1fde   :  { %v3780_v29 = vsel %vm100_vm1, %v3775_v41, 0.0 }
0x1fdf   :  { %3781 = vadd.xlane.f32.xlu1 %v3780_v29  ;;  %v3657_v7 = vpop.permute.xlu2 %3656 }
0x1fe0   :  { %v3687_v15 = vsel %vm285_vm14, %v6626_v16, %v3657_v7  ;;  %v4774_v16 = vld [vmem:[%s6768_s5 + $0xa8] sm:$0xff] }
0x1fe1   :  { %3987 = vmatpush.bf16.msrb.mxu1 %v4774_v16 }
0x2001   :  { %v3540_v48 = vpop.f32.mrf.mxu0 }
0x2002   :  { %3668 = vrot.lane.b32.xlu0 %v3540_v48, %s5162_s9 }
0x2009   :  { %v3542_v33 = vpop.f32.mrf.mxu0 }
0x201b   :  { %v3645_v38 = vpop.f32.mrf.mxu2 }
0x201c   :  { %3680 = vrot.lane.b32.xlu1 %v3645_v38, %s5159_s30 }
0x2023   :  { %v3647_v52 = vpop.f32.mrf.mxu2 }
0x204a   :  { %v3779_v42 = vpop.xlane.xlu0 %3778 }
0x204b   :  { %v3786_v43 = vmul.f32 %v3779_v42, %v5245_v26 }
0x204d   :  { %v3789_v34 = vadd.f32 1e-05, %v3786_v43 }
0x204f   :  { %5104 = vrsqrt.f32 %v3789_v34  ;;  %vm3798_vm3 = vweird.f32 %v3789_v34 }
0x2052   :  { %v3782_v62 = vpop.xlane.xlu1 %3781 }
0x2053   :  { %v3787_v36 = vmul.f32 %v3782_v62, %v5245_v26 }
0x2055   :  { %v5105_v25 = vpop.eup %5104  ;;  %v3790_v51 = vadd.f32 1e-05, %v3787_v36 }
0x2056   :  { %v3793_v1 = vmul.f32 %v5105_v25, %v3789_v34  ;;  %vm3799_vm15 = vweird.f32 %v5105_v25 }
0x2057   :  { %5106 = vrsqrt.f32 %v3790_v51  ;;  %vm3800_vm8 = vmor %vm3798_vm3, %vm3799_vm15  ;;  %vm3808_vm10 = vweird.f32 %v3790_v51 }
0x2058   :  { %v3794_v56 = vmul.f32 %v5105_v25, %v3793_v1 }
0x205a   :  { %v3795_v35 = vmul.f32 0.5, %v3794_v56 }
0x205c   :  { %v3796_v40 = vsub.f32 1.5, %v3795_v35 }
0x205d   :  { %v5107_v58 = vpop.eup %5106 }
0x205e   :  { %v3797_v61 = vmul.f32 %v5105_v25, %v3796_v40  ;;  %v3803_v45 = vmul.f32 %v5107_v58, %v3790_v51  ;;  %vm3809_vm9 = vweird.f32 %v5107_v58 }
0x205f   :  { %vm3810_vm11 = vmor %vm3808_vm10, %vm3809_vm9 }
0x2060   :  { %v3804_v54 = vmul.f32 %v5107_v58, %v3803_v45  ;;  %v3801_v63 = vsel %vm3800_vm8, %v5105_v25, %v3797_v61 }
0x2061   :  { %v3822_v9 = vmul.f32 %v3801_v63, %v3771_v12  ;;  %v4773_v12 = vld [vmem:[%s6768_s5 + $0xa0] sm:$0xff]  ;;  %s5165_s5 = smov [#allocation2]  }
0x2062   :  { %v3805_v6 = vmul.f32 0.5, %v3804_v54  ;;  %3988 = vmatpush.bf16.msrb.mxu1 %v4773_v12  ;;  %s4051_s22 = sshll.u32 %s5165_s5, 4  ;;  %s4052_s22 = int_to_ptr.vmem [resolvable:$true] %s4051_s22 }
0x2063   :  { %v3826_v59 = vmul.f32 %v6691_v11, %v3822_v9  ;;  %v4002_v9 = vperm.slane %v6463_v57, 5 }
0x2064   :  { %v3806_v2 = vsub.f32 1.5, %v3805_v6 }
0x2065   :  { %v3830_v60 = vadd.f32 %v6694_v3, %v3826_v59 }
0x2066   :  { %v3807_v19 = vmul.f32 %v5107_v58, %v3806_v2  ;;  %3989 = vmatpush.bf16.msrb.mxu1 %v4772_v32 }
0x2068   :  { %v3811_v44 = vsel %vm3810_vm11, %v5107_v58, %v3807_v19 }
0x2069   :  { %v3823_v39 = vmul.f32 %v3811_v44, %v3772_v0  ;;  %v6731_v0 = vperm.slane %v6463_v57, 6 }
0x206a   :  { %3990 = vmatpush.bf16.msrb.mxu1 %v4771_v5 }
0x206b   :  { %v3827_v47 = vmul.f32 %v6691_v11, %v3823_v39 }
0x206d   :  { %v3831_v21 = vadd.f32 %v6694_v3, %v3827_v47 }
0x206e   :  { %3991 = vmatpush.bf16.msrb.mxu1 %v4770_v37 }
0x206f   :  { %v3833_v31 = vpack.c.bf16 %v3831_v21, %v3830_v60 }
0x2071   :  { %4637 = vmatmul.msk.bf16.vlgmr.msrb.gmra.mxu0 %vm100_vm1, %v3833_v31 }
0x2072   :  { %3992 = vmatpush.bf16.msrb.mxu1 %v4769_v8 }
0x2074   :  { %v3669_v22 = vpop.permute.xlu0 %3668 }
0x2075   :  { %v3690_v23 = vsel %vm739_vm4, %v3687_v15, %v3669_v22 }
0x208e   :  { %v3681_v50 = vpop.permute.xlu1 %3680 }
0x208f   :  { %v3693_v28 = vsel %vm74_vm0, %v3690_v23, %v3681_v50 }
0x2090   :  { %v3695_v53 = vpack.c.bf16 %v3693_v28, %v3693_v28 }
0x2092   :  { %4596 = vmatmul.msk.bf16.gmra.mxu3 %vm100_vm1, %v3695_v53 }
0x20ee   :  { %v3899_v41 = vpop.f32.mrf.mxu0 }
0x20ef   :  { %v3900_v29 = vadd.f32 %v3899_v41, %v6731_v0 }
0x20f1   :  { %v3911_v48 = vmul.f32 0.044715, %v3900_v29  ;;  %v3908_v1 = vmul.f32 0.5, %v3900_v29 }
0x20f3   :  { %v3914_v33 = vmul.f32 %v3911_v48, %v3900_v29 }
0x20f5   :  { %v3917_v38 = vmul.f32 %v3914_v33, %v3900_v29 }
0x20f6   :  { %v3901_v52 = vpop.f32.mrf.mxu0 }
0x20f7   :  { %v3920_v13 = vadd.f32 %v3917_v38, %v3900_v29  ;;  %v3902_v17 = vadd.f32 %v3901_v52, %v6731_v0 }
0x20f9   :  { %v3912_v24 = vmul.f32 0.044715, %v3902_v17  ;;  %v3923_v42 = vmul.f32 0.7978846, %v3920_v13  ;;  %v3909_v56 = vmul.f32 0.5, %v3902_v17 }
0x20fb   :  { %v3915_v43 = vmul.f32 %v3912_v24, %v3902_v17  ;;  %5108 = vtanh.f32 %v3923_v42 }
0x20fd   :  { %v3918_v34 = vmul.f32 %v3915_v43, %v3902_v17 }
0x20ff   :  { %v3921_v55 = vadd.f32 %v3918_v34, %v3902_v17 }
0x2101   :  { %v3924_v62 = vmul.f32 0.7978846, %v3921_v55  ;;  %v5109_v36 = vpop.eup %5108 }
0x2102   :  { %v3929_v25 = vadd.f32 1.0, %v5109_v36 }
0x2103   :  { %5110 = vtanh.f32 %v3924_v62 }
0x2104   :  { %v3932_v40 = vmul.f32 %v3929_v25, %v3908_v1 }
0x2109   :  { %v5111_v51 = vpop.eup %5110 }
0x210a   :  { %v3930_v35 = vadd.f32 1.0, %v5111_v51 }
0x210c   :  { %v3933_v58 = vmul.f32 %v3930_v35, %v3909_v56 }
0x210e   :  { %v3935_v61 = vpack.c.bf16 %v3933_v58, %v3932_v40 }
0x2110   :  { %3993 = vmatmul.bf16.vlgmr.msrb.gmra.mxu1 %v3935_v61 }
0x2115   :  { %v3748_v45 = vpop.f32.mrf.mxu3 }
0x2116   :  { %v3754_v54 = vadd.f32 %v3748_v45, %v6385_v20 }
0x2118   :  { %v3758_v63 = vadd.f32 %v6654_v49, %v3754_v54 }
0x211a   :  { %v3765_v6 = vsel %vm107_vm2, %v3758_v63, 0.0 }
0x211b   :  { %3766 = vadd.xlane.f32.xlu0 %v3765_v6 }
0x211d   :  { %v3750_v2 = vpop.f32.mrf.mxu3 }
0x218d   :  { %v3994_v19 = vpop.f32.mrf.mxu1 }
0x218e   :  { %v4001_v44 = vadd.f32 %v3994_v19, %v6658_v46  ;;  %v3767_v59 = vpop.xlane.xlu0 %3766 }
0x218f   :  { %v3770_v39 = vmul.f32 %v3767_v59, %v5245_v26 }
0x2190   :  { %v4003_v47 = vadd.f32 %v4002_v9, %v4001_v44 }
0x2191   :  { %v3773_v60 = vsub.f32 %v3758_v63, %v3770_v39 }
0x2192   :  { %v4004_v21 = vsel %vm107_vm2, %v4003_v47, 0.0 }
0x2193   :  { %4005 = vadd.xlane.f32.xlu1 %v4004_v21  ;;  %v3776_v20 = vmul.f32 %v3773_v60, %v3773_v60 }
0x2195   :  { %v3996_v31 = vpop.f32.mrf.mxu1  ;;  %v3783_v49 = vsel %vm107_vm2, %v3776_v20, 0.0 }
0x2196   :  { %3784 = vadd.xlane.f32.xlu2 %v3783_v49 }
0x2206   :  { %v4006_v7 = vpop.xlane.xlu1 %4005 }
0x2207   :  { %v4007_v22 = vmul.f32 %v4006_v7, %v5245_v26 }
0x2209   :  { %v4008_v57 = vsub.f32 %v4003_v47, %v4007_v22  ;;  %v3785_v15 = vpop.xlane.xlu2 %3784 }
0x220a   :  { %v3788_v46 = vmul.f32 %v3785_v15, %v5245_v26 }
0x220b   :  { %v4009_v23 = vmul.f32 %v4008_v57, %v4008_v57 }
0x220c   :  { %v3791_v50 = vadd.f32 1e-05, %v3788_v46 }
0x220d   :  { %v4010_v28 = vsel %vm107_vm2, %v4009_v23, 0.0 }
0x220e   :  { %5112 = vrsqrt.f32 %v3791_v50  ;;  %4011 = vadd.xlane.f32.xlu0 %v4010_v28  ;;  %vm3818_vm14 = vweird.f32 %v3791_v50 }
0x2214   :  { %v5113_v53 = vpop.eup %5112 }
0x2215   :  { %v3813_v10 = vmul.f32 %v5113_v53, %v3791_v50  ;;  %vm3819_vm0 = vweird.f32 %v5113_v53 }
0x2216   :  { %vm3820_vm4 = vmor %vm3818_vm14, %vm3819_vm0 }
0x2217   :  { %v3814_v30 = vmul.f32 %v5113_v53, %v3813_v10 }
0x2219   :  { %v3815_v16 = vmul.f32 0.5, %v3814_v30 }
0x221b   :  { %v3816_v12 = vsub.f32 1.5, %v3815_v16 }
0x221d   :  { %v3817_v32 = vmul.f32 %v5113_v53, %v3816_v12 }
0x221f   :  { %v3821_v5 = vsel %vm3820_vm4, %v5113_v53, %v3817_v32 }
0x2220   :  { %v3824_v37 = vmul.f32 %v3821_v5, %v3773_v60 }
0x2222   :  { %v3828_v8 = vmul.f32 %v6691_v11, %v3824_v37 }
0x2224   :  { %v3832_v41 = vadd.f32 %v6694_v3, %v3828_v8 }
0x2226   :  { %v3834_v29 = vpack.c.bf16 %v3832_v41, %v3832_v41 }
0x2228   :  { %4638 = vmatmul.msk.bf16.gmra.mxu0 %vm100_vm1, %v3834_v29 }
0x2281   :  { %v4012_v48 = vpop.xlane.xlu0 %4011 }
0x2282   :  { %v4013_v33 = vmul.f32 %v4012_v48, %v5245_v26 }
0x2284   :  { %v4014_v38 = vadd.f32 1e-05, %v4013_v33 }
0x2286   :  { %5114 = vrsqrt.f32 %v4014_v38  ;;  %vm4021_vm12 = vweird.f32 %v4014_v38 }
0x228c   :  { %v5115_v52 = vpop.eup %5114 }
0x228d   :  { %v4016_v13 = vmul.f32 %v5115_v52, %v4014_v38  ;;  %vm4022_vm2 = vweird.f32 %v5115_v52 }
0x228e   :  { %vm4023_vm13 = vmor %vm4021_vm12, %vm4022_vm2 }
0x228f   :  { %v4017_v17 = vmul.f32 %v5115_v52, %v4016_v13 }
0x2291   :  { %v4018_v24 = vmul.f32 0.5, %v4017_v17 }
0x2293   :  { %v4019_v42 = vsub.f32 1.5, %v4018_v24 }
0x2295   :  { %v4020_v43 = vmul.f32 %v5115_v52, %v4019_v42 }
0x2297   :  { %v4024_v11 = vsel %vm4023_vm13, %v5115_v52, %v4020_v43 }
0x2298   :  { %v4025_v34 = vmul.f32 %v4024_v11, %v4008_v57 }
0x229a   :  { %v4026_v3 = vmul.f32 %v4025_v34, %v2030_v4 }
0x229c   :  { %v4027_v55 = vadd.f32 %v4026_v3, %v2033_v18 }
0x229e   :  { %v4028_v26 = vpack.c.bf16 %v4027_v55, %v4027_v55 }
0x22a0   :  { %4671 = vmatmul.msk.bf16.vlgmr.msrb.gmra.mxu2 %vm100_vm1, %v4028_v26 }
0x22a5   :  { %v3904_v62 = vpop.f32.mrf.mxu0 }
0x22a6   :  { %v3905_v36 = vadd.f32 %v3904_v62, %v6731_v0 }
0x22a8   :  { %v3913_v25 = vmul.f32 0.044715, %v3905_v36  ;;  %v3910_v61 = vmul.f32 0.5, %v3905_v36 }
0x22aa   :  { %v3916_v51 = vmul.f32 %v3913_v25, %v3905_v36 }
0x22ac   :  { %v3919_v1 = vmul.f32 %v3916_v51, %v3905_v36 }
0x22ad   :  { %v3906_v56 = vpop.f32.mrf.mxu0 }
0x22ae   :  { %v3922_v35 = vadd.f32 %v3919_v1, %v3905_v36 }
0x22b0   :  { %v3925_v40 = vmul.f32 0.7978846, %v3922_v35 }
0x22b2   :  { %5116 = vtanh.f32 %v3925_v40 }
0x22b8   :  { %v5117_v58 = vpop.eup %5116 }
0x22b9   :  { %v3931_v45 = vadd.f32 1.0, %v5117_v58 }
0x22bb   :  { %v3934_v4 = vmul.f32 %v3931_v45, %v3910_v61 }
0x22bd   :  { %v3936_v54 = vpack.c.bf16 %v3934_v4, %v3934_v4 }
0x22bf   :  { %3997 = vmatmul.bf16.gmra.mxu1 %v3936_v54 }
0x2323   :  { %v4041_v18 = vpop.f32.mrf.mxu2 }
0x2324   :  { %v4042_v0 = vadd.f32 %v4041_v18, %v2061_v27 }
0x2326   :  { %4046 = vst [vmem:[#allocation2 + $0x1] sm:$0x1] %v4042_v0 }
0x2327   :  { %4059 = dma.vmem_to_hbm [thread:$0]  %s4052_s22, 32, %s4054_s24, [#allocation3], %s5161_s8, %s5161_s8, %s5166_s4  }
0x232b   :  { %v4043_v63 = vpop.f32.mrf.mxu2 }
0x233c   :  { %v3998_v6 = vpop.f32.mrf.mxu1 }
0x2344   :  { %v3999_v2 = vpop.f32.mrf.mxu1 }
0x2345   :  { %5154 = dma.done.wait [#allocation3], 32  }
0x2346   :  { %5155 = vsyncadd [#allocation3], 4294967264 }
0x2347   :  { %4064 = vsyncpa [#allocation3], 1 }

</bundles_post_ra>
